<compile_context>
chip_gen: v7x
topology: tpu7x:2x2x1
jax: 0.10.0
libtpu: 0.0.40
codegen_flags: <defaults>
</compile_context>

<pallas_src>
import functools

import numpy as np
import jax
import jax.numpy as jnp
from jax import lax
from jax.experimental import pallas as pl
from jax.experimental.pallas import tpu as pltpu

_EPS = 1e-5
_VMEM_LIMIT = 48 * 1024 * 1024   # > 16/32 MiB scoped defaults, < v7x 64 MiB physical


# ---------------------------------------------------------------------------
# In-kernel helpers (operate on (C, P) values)
# ---------------------------------------------------------------------------
def _mm(w, x):
    """(Co, K) @ (K, P) -> (Co, P): single bf16 MXU pass, f32 accumulation."""
    return lax.dot_general(w.astype(jnp.bfloat16), x.astype(jnp.bfloat16),
                           (((1,), (0,)), ((), ())),
                           preferred_element_type=jnp.float32)


def _conv3x3(x, w_ref, col, W):
    """'same' 3x3 conv in (C, P = H*W) flat layout.

    x:     (Ci, P) f32 value
    w_ref: (3, Co, 3*Ci) bf16 ref -- per kh, the three kw taps folded into K
    col:   (1, P) f32 column index (p % W), supplied once per call
    The kw taps are column-rolled/masked once and folded into K; the kh row
    shifts are applied to the matmul *outputs* (Co rows, not 3*Ci), which
    halves the roll/select work and removes the per-kh sublane concat.
    """
    Ci, P = x.shape
    # column (dw) shifts of the input, masked at image left/right borders
    xl = jnp.where(col >= 1, jnp.roll(x, 1, axis=1), 0.0)        # dw = -1
    xr = jnp.where(col < W - 1, jnp.roll(x, -1, axis=1), 0.0)    # dw = +1
    xc = jnp.concatenate([xl, x, xr], axis=0).astype(jnp.bfloat16)   # (3*Ci, P)
    z_top = _mm(w_ref[0], xc)    # kh = 0  (dh = -1)
    z_mid = _mm(w_ref[1], xc)    # kh = 1
    z_bot = _mm(w_ref[2], xc)    # kh = 2  (dh = +1)
    # row (dh) shifts applied to the outputs, masked at top/bottom rows
    lane = lax.broadcasted_iota(jnp.int32, (1, P), 1)
    y = z_mid
    y = y + jnp.where(lane >= W, jnp.roll(z_top, W, axis=1), 0.0)
    y = y + jnp.where(lane < P - W, jnp.roll(z_bot, -W, axis=1), 0.0)
    return y


def _bn(v, s, b):                # inference batch-norm: per-channel scale/shift
    return v * s + b


def _prelu(v, a):
    return jnp.where(v >= 0.0, v, a * v)


def _leaky(v):
    return jnp.where(v >= 0.0, v, 0.01 * v)   # torch LeakyReLU default slope


# ---------------------------------------------------------------------------
# Kernels (one batch element per grid step)
# ---------------------------------------------------------------------------
def encoder_kernel(x_ref, col_ref,
                   w1_ref, s1_ref, b1_ref, a1_ref,
                   w21x_ref, w21l_ref, w22_ref, a2_ref,
                   w31x_ref, w31l1_ref, w31l2_ref, w32_ref,
                   s2_ref, b2_ref, a3_ref,
                   o_ref, *, W):
    x = x_ref[0].astype(jnp.float32)                              # (Cin_p, P)
    col = col_ref[...]                                            # (1, P)
    # layer1: conv1_1 -> bn1 -> prelu1            (dropout == identity)
    l1 = _prelu(_bn(_conv3x3(x, w1_ref, col, W), s1_ref[...], b1_ref[...]),
                a1_ref[...])
    # layer2: conv2_1 (1x1 over cat(x, l1), weights pre-split) -> conv2_2 -> prelu2
    t2 = _mm(w21x_ref[...], x) + _mm(w21l_ref[...], l1)
    l2 = _prelu(_conv3x3(t2, w22_ref, col, W), a2_ref[...])
    # layer3: conv3_1 (1x1 over cat(x, l1, l2)) -> conv3_2 -> bn2 -> prelu3
    t3 = _mm(w31x_ref[...], x) + _mm(w31l1_ref[...], l1) + _mm(w31l2_ref[...], l2)
    y = _prelu(_bn(_conv3x3(t3, w32_ref, col, W), s2_ref[...], b2_ref[...]),
               a3_ref[...])
    o_ref[0] = y.astype(o_ref.dtype)


def _decoder_body(up_ref, skip_ref, col_ref,
                  w11u_ref, w11s_ref, w12_ref,
                  w21u_ref, w21s_ref, w21l_ref, w22_ref, *, W):
    u = up_ref[0].astype(jnp.float32)                             # upsampled input
    s = skip_ref[0].astype(jnp.float32)                           # skip connection
    col = col_ref[...]
    # conv1_1 (1x1 over cat(up, skip), weights pre-split) -> conv1_2 -> leaky
    t1 = _mm(w11u_ref[...], u) + _mm(w11s_ref[...], s)
    l1 = _leaky(_conv3x3(t1, w12_ref, col, W))
    # conv2_1 (1x1 over cat(up, skip, l1)) -> conv2_2 -> leaky
    t2 = _mm(w21u_ref[...], u) + _mm(w21s_ref[...], s) + _mm(w21l_ref[...], l1)
    return _leaky(_conv3x3(t2, w22_ref, col, W))


def decoder_kernel(up_ref, skip_ref, col_ref,
                   w11u_ref, w11s_ref, w12_ref,
                   w21u_ref, w21s_ref, w21l_ref, w22_ref,
                   o_ref, *, W):
    y = _decoder_body(up_ref, skip_ref, col_ref, w11u_ref, w11s_ref, w12_ref,
                      w21u_ref, w21s_ref, w21l_ref, w22_ref, W=W)
    o_ref[0] = y.astype(o_ref.dtype)


def decoder_head_kernel(up_ref, skip_ref, col_ref,
                        w11u_ref, w11s_ref, w12_ref,
                        w21u_ref, w21s_ref, w21l_ref, w22_ref,
                        wh_ref, bh_ref,
                        o_ref, *, W):
    # last decoder block with the 1x1 out_conv (+folded final BN) fused in
    y = _decoder_body(up_ref, skip_ref, col_ref, w11u_ref, w11s_ref, w12_ref,
                      w21u_ref, w21s_ref, w21l_ref, w22_ref, W=W)
    o_ref[0] = (_mm(wh_ref[...], y) + bh_ref[...]).astype(o_ref.dtype)


# ---------------------------------------------------------------------------
# Wrapper utilities
# ---------------------------------------------------------------------------
def _full_spec(arr):
    zeros = (0,) * arr.ndim
    return pl.BlockSpec(arr.shape, lambda n, _z=zeros: _z)


@functools.lru_cache(maxsize=None)
def _col_index_np(H, W):
    # (1, P) f32 column index; avoids in-kernel integer div/mod and the old
    # (9, 1, P) mask DMA (row masks come from an in-kernel lane iota).
    return (np.arange(H * W, dtype=np.float32) % W).reshape(1, H * W)


def _compiler_params():
    return pltpu.CompilerParams(dimension_semantics=("parallel",),
                                vmem_limit_bytes=_VMEM_LIMIT)


# ---------------------------------------------------------------------------
# Block wrappers (NCHW in / NCHW out; activations stored bf16 between calls)
# ---------------------------------------------------------------------------
def encoder_block_pallas(x, kp, *, pool):
    if pool:
        N, C, H, W = x.shape
        # fused XLA reduce for the 2x2 max-pool (exact on bf16, no Pallas launch)
        x = x.reshape(N, C, H // 2, 2, W // 2, 2).max(axis=(3, 5))
    N, C, H, W = x.shape
    P = H * W
    cin_p, cout = kp["cin_p"], kp["cout"]
    xf = x.reshape(N, C, P)
    if C < cin_p:   # pad channels to a sublane multiple once, in the wrapper
        xf = jnp.pad(xf, ((0, 0), (0, cin_p - C), (0, 0)))
    col = jnp.asarray(_col_index_np(H, W))

    args = (col, kp["w1"], kp["s1"], kp["b1"], kp["a1"],
            kp["w21x"], kp["w21l"], kp["w22"], kp["a2"],
            kp["w31x"], kp["w31l1"], kp["w31l2"], kp["w32"],
            kp["s2"], kp["b2"], kp["a3"])
    out = pl.pallas_call(
        functools.partial(encoder_kernel, W=W),
        out_shape=jax.ShapeDtypeStruct((N, cout, P), jnp.bfloat16),
        grid=(N,),
        in_specs=[pl.BlockSpec((1, cin_p, P), lambda n: (n, 0, 0))]
                 + [_full_spec(a) for a in args],
        out_specs=pl.BlockSpec((1, cout, P), lambda n: (n, 0, 0)),
        compiler_params=_compiler_params(),
    )(xf, *args)
    return out.reshape(N, cout, H, W)


def decoder_block_pallas(skip, x, kp, head=None):
    # nearest-neighbour 2x upsample of tensor_in (wrapper XLA repeat).
    up = jnp.repeat(jnp.repeat(x, 2, axis=2), 2, axis=3)
    N, C, H, W = up.shape
    P = H * W
    cout = kp["cout"]
    uf = up.reshape(N, C, P)
    sf = skip.reshape(N, skip.shape[1], P)
    col = jnp.asarray(_col_index_np(H, W))

    args = [col, kp["w11u"], kp["w11s"], kp["w12"],
            kp["w21u"], kp["w21s"], kp["w21l"], kp["w22"]]
    if head is None:
        kern = functools.partial(decoder_kernel, W=W)
        out_c, out_dt = cout, jnp.bfloat16
    else:
        args += [head["w"], head["b"]]
        kern = functools.partial(decoder_head_kernel, W=W)
        out_c, out_dt = head["w"].shape[0], jnp.float32

    out = pl.pallas_call(
        kern,
        out_shape=jax.ShapeDtypeStruct((N, out_c, P), out_dt),
        grid=(N,),
        in_specs=[pl.BlockSpec((1, C, P), lambda n: (n, 0, 0)),
                  pl.BlockSpec((1, skip.shape[1], P), lambda n: (n, 0, 0))]
                 + [_full_spec(a) for a in args],
        out_specs=pl.BlockSpec((1, out_c, P), lambda n: (n, 0, 0)),
        compiler_params=_compiler_params(),
    )(uf, sf, *args)
    return out.reshape(N, out_c, H, W)


def eyeseg_pallas(x, kparams):
    x = x.astype(jnp.bfloat16)
    enc, dec = kparams["enc"], kparams["dec"]
    d1 = encoder_block_pallas(x,  enc[0], pool=False)   # down_size=None -> no pool
    d2 = encoder_block_pallas(d1, enc[1], pool=True)
    d3 = encoder_block_pallas(d2, enc[2], pool=True)
    d4 = encoder_block_pallas(d3, enc[3], pool=True)
    d5 = encoder_block_pallas(d4, enc[4], pool=True)
    u1 = decoder_block_pallas(d4, d5, dec[0])
    u2 = decoder_block_pallas(d3, u1, dec[1])
    u3 = decoder_block_pallas(d2, u2, dec[2])
    # last decoder block with the 1x1 head conv + final BN fused in
    return decoder_block_pallas(d1, u3, dec[3], head=kparams["head"])


# ---------------------------------------------------------------------------
# Parameter init (PyTorch-style OIHW weights) + kernel-side preparation
# ---------------------------------------------------------------------------
def _conv_w(key, cout, cin, kh, kw):
    n = kh * kw * cout
    return (jax.random.normal(key, (cout, cin, kh, kw)) * np.sqrt(1.0 / n)).astype(jnp.float32)


def _bn_params(key, c):
    k1, k2, k3, k4 = jax.random.split(key, 4)
    return dict(
        gamma=(1.0 + 0.1 * jax.random.normal(k1, (c,))).astype(jnp.float32),
        beta=(0.1 * jax.random.normal(k2, (c,))).astype(jnp.float32),
        mean=(0.1 * jax.random.normal(k3, (c,))).astype(jnp.float32),
        var=(0.5 + jax.random.uniform(k4, (c,))).astype(jnp.float32))


def init_encoder(key, cin, cout):
    ks = jax.random.split(key, 10)
    return dict(
        w1=_conv_w(ks[0], cout, cin, 3, 3),
        w21=_conv_w(ks[1], cout, cin + cout, 1, 1),
        w22=_conv_w(ks[2], cout, cout, 3, 3),
        w31=_conv_w(ks[3], cout, cin + 2 * cout, 1, 1),
        w32=_conv_w(ks[4], cout, cout, 3, 3),
        a1=(0.25 + 0.05 * jax.random.normal(ks[5], (cout,))).astype(jnp.float32),
        a2=(0.25 + 0.05 * jax.random.normal(ks[6], (cout,))).astype(jnp.float32),
        a3=(0.25 + 0.05 * jax.random.normal(ks[7], (cout,))).astype(jnp.float32),
        bn1=_bn_params(ks[8], cout),
        bn2=_bn_params(ks[9], cout))


def init_decoder(key, c):
    ks = jax.random.split(key, 4)
    return dict(
        w11=_conv_w(ks[0], c, 2 * c, 1, 1),
        w12=_conv_w(ks[1], c, c, 3, 3),
        w21=_conv_w(ks[2], c, 3 * c, 1, 1),
        w22=_conv_w(ks[3], c, c, 3, 3))


def init_head(key, c, cout):
    k1, k2, k3 = jax.random.split(key, 3)
    return dict(
        w=_conv_w(k1, cout, c, 1, 1),
        b=(0.1 * jax.random.normal(k2, (cout,))).astype(jnp.float32),
        bn=_bn_params(k3, cout))


def init_eyeseg(key, in_ch, out_ch, cs):
    ks = jax.random.split(key, 10)
    enc = [init_encoder(ks[0], in_ch, cs)] + [init_encoder(ks[i], cs, cs) for i in range(1, 5)]
    dec = [init_decoder(ks[5 + i], cs) for i in range(4)]
    return dict(enc=enc, dec=dec, head=init_head(ks[9], cs, out_ch))


def _ceil_to(x, m):
    return ((x + m - 1) // m) * m


def _fold3x3(w):
    """(Co, Ci, 3, 3) OIHW -> (3, Co, 3*Ci) bf16: per kh, kw taps folded into K."""
    return jnp.stack(
        [jnp.concatenate([w[:, :, kh, kw] for kw in range(3)], axis=1) for kh in range(3)],
        axis=0).astype(jnp.bfloat16)


def _fold_bn(bn):
    s = bn["gamma"] / jnp.sqrt(bn["var"] + _EPS)
    return s.reshape(-1, 1), (bn["beta"] - bn["mean"] * s).reshape(-1, 1)


def _pad_in(w, cin_p):
    pad = cin_p - w.shape[1]
    if pad == 0:
        return w
    widths = [(0, 0)] * w.ndim
    widths[1] = (0, pad)
    return jnp.pad(w, widths)


def _bf(a):
    return a.astype(jnp.bfloat16)


def prep_encoder(p, cin, cout):
    cin_p = _ceil_to(cin, 8)
    w21 = p["w21"][:, :, 0, 0]
    w31 = p["w31"][:, :, 0, 0]
    s1, b1 = _fold_bn(p["bn1"])
    s2, b2 = _fold_bn(p["bn2"])
    return dict(
        cin_p=cin_p, cout=cout,
        w1=_fold3x3(_pad_in(p["w1"], cin_p)),
        w21x=_bf(_pad_in(w21[:, :cin], cin_p)), w21l=_bf(w21[:, cin:]),
        w22=_fold3x3(p["w22"]),
        w31x=_bf(_pad_in(w31[:, :cin], cin_p)),
        w31l1=_bf(w31[:, cin:cin + cout]), w31l2=_bf(w31[:, cin + cout:]),
        w32=_fold3x3(p["w32"]),
        s1=s1, b1=b1, s2=s2, b2=b2,
        a1=p["a1"].reshape(cout, 1), a2=p["a2"].reshape(cout, 1),
        a3=p["a3"].reshape(cout, 1))


def prep_decoder(p, c):
    w11 = p["w11"][:, :, 0, 0]
    w21 = p["w21"][:, :, 0, 0]
    return dict(
        cout=c,
        w11u=_bf(w11[:, :c]), w11s=_bf(w11[:, c:]),
        w12=_fold3x3(p["w12"]),
        w21u=_bf(w21[:, :c]), w21s=_bf(w21[:, c:2 * c]), w21l=_bf(w21[:, 2 * c:]),
        w22=_fold3x3(p["w22"]))


def prep_head(p):
    s, sh = _fold_bn(p["bn"])
    w = p["w"][:, :, 0, 0]
    return dict(w=w * s, b=p["b"].reshape(-1, 1) * s + sh)


def prep_eyeseg(params, in_ch, out_ch, cs):
    enc = [prep_encoder(params["enc"][0], in_ch, cs)] + \
          [prep_encoder(params["enc"][i], cs, cs) for i in range(1, 5)]
    dec = [prep_decoder(params["dec"][i], cs) for i in range(4)]
    return dict(enc=enc, dec=dec, head=prep_head(params["head"]))


# ---------------------------------------------------------------------------
# Pure-JAX reference (NCHW, lax.conv, f32) for correctness checking
# ---------------------------------------------------------------------------
def _ref_conv(x, w, padding):
    return lax.conv_general_dilated(x, w, (1, 1), padding,
                                    dimension_numbers=("NCHW", "OIHW", "NCHW"),
                                    precision=lax.Precision.HIGHEST)


def _ref_bn(x, bn):
    s = bn["gamma"] / jnp.sqrt(bn["var"] + _EPS)
    return x * s[None, :, None, None] + (bn["beta"] - bn["mean"] * s)[None, :, None, None]


def _ref_prelu(x, a):
    return jnp.where(x >= 0, x, a[None, :, None, None] * x)


def _ref_leaky(x):
    return jnp.where(x >= 0, x, 0.01 * x)


def reference_encoder(x, p, pool):
    if pool:
        N, C, H, W = x.shape
        x = x.reshape(N, C, H // 2, 2, W // 2, 2).max(axis=(3, 5))
    l1 = _ref_prelu(_ref_bn(_ref_conv(x, p["w1"], ((1, 1), (1, 1))), p["bn1"]), p["a1"])
    c1 = jnp.concatenate([x, l1], axis=1)
    l2 = _ref_prelu(_ref_conv(_ref_conv(c1, p["w21"], "VALID"),
                              p["w22"], ((1, 1), (1, 1))), p["a2"])
    c2 = jnp.concatenate([c1, l2], axis=1)
    return _ref_prelu(_ref_bn(_ref_conv(_ref_conv(c2, p["w31"], "VALID"),
                                        p["w32"], ((1, 1), (1, 1))), p["bn2"]), p["a3"])


def reference_decoder(skip, x, p):
    up = jnp.repeat(jnp.repeat(x, 2, axis=2), 2, axis=3)
    c = jnp.concatenate([up, skip], axis=1)
    l1 = _ref_leaky(_ref_conv(_ref_conv(c, p["w11"], "VALID"), p["w12"], ((1, 1), (1, 1))))
    c1 = jnp.concatenate([c, l1], axis=1)
    return _ref_leaky(_ref_conv(_ref_conv(c1, p["w21"], "VALID"), p["w22"], ((1, 1), (1, 1))))


def reference_eyeseg(x, params):
    x = x.astype(jnp.float32)
    enc, dec = params["enc"], params["dec"]
    d1 = reference_encoder(x,  enc[0], False)
    d2 = reference_encoder(d1, enc[1], True)
    d3 = reference_encoder(d2, enc[2], True)
    d4 = reference_encoder(d3, enc[3], True)
    d5 = reference_encoder(d4, enc[4], True)
    u1 = reference_decoder(d4, d5, dec[0])
    u2 = reference_decoder(d3, u1, dec[1])
    u3 = reference_decoder(d2, u2, dec[2])
    u4 = reference_decoder(d1, u3, dec[3])
    h = params["head"]
    y = _ref_conv(u4, h["w"], "VALID") + h["b"][None, :, None, None]
    return _ref_bn(y, h["bn"])


# ---------------------------------------------------------------------------
if __name__ == "__main__":
    N, IN_CH, OUT_CH, CS, H0, W0 = 2, 3, 4, 8, 32, 32      # spatial must be /16 (4 pools)
    key = jax.random.PRNGKey(0)
    pkey, xkey = jax.random.split(key)
    params = init_eyeseg(pkey, IN_CH, OUT_CH, CS)
    kparams = prep_eyeseg(params, IN_CH, OUT_CH, CS)
    x = jax.random.normal(xkey, (N, IN_CH, H0, W0), dtype=jnp.float32)   # NCHW like PyTorch

    out = jax.block_until_ready(eyeseg_pallas(x, kparams))
    ref = jax.block_until_ready(reference_eyeseg(x, params))

    assert out.shape == (N, OUT_CH, H0, W0), out.shape
    # bf16 MXU passes + bf16 inter-block storage: percent-level deviation from
    # the f32/HIGHEST reference is expected (per the perf review).
    np.testing.assert_allclose(np.asarray(out), np.asarray(ref), rtol=5e-2, atol=1e-1)
    print("KERNEL_OK")
</pallas_src>

<mosaic_0001>
module attributes {stable_mosaic.version = 11 : i64} {
  func.func @encoder_kernel(%arg0: i32, %arg1: memref<1x8x1024xbf16, #tpu.memory_space<vmem>>, %arg2: memref<1x1024xf32, #tpu.memory_space<vmem>>, %arg3: memref<3x8x24xbf16, #tpu.memory_space<vmem>>, %arg4: memref<8x1xf32, #tpu.memory_space<vmem>>, %arg5: memref<8x1xf32, #tpu.memory_space<vmem>>, %arg6: memref<8x1xf32, #tpu.memory_space<vmem>>, %arg7: memref<8x8xbf16, #tpu.memory_space<vmem>>, %arg8: memref<8x8xbf16, #tpu.memory_space<vmem>>, %arg9: memref<3x8x24xbf16, #tpu.memory_space<vmem>>, %arg10: memref<8x1xf32, #tpu.memory_space<vmem>>, %arg11: memref<8x8xbf16, #tpu.memory_space<vmem>>, %arg12: memref<8x8xbf16, #tpu.memory_space<vmem>>, %arg13: memref<8x8xbf16, #tpu.memory_space<vmem>>, %arg14: memref<3x8x24xbf16, #tpu.memory_space<vmem>>, %arg15: memref<8x1xf32, #tpu.memory_space<vmem>>, %arg16: memref<8x1xf32, #tpu.memory_space<vmem>>, %arg17: memref<8x1xf32, #tpu.memory_space<vmem>>, %arg18: memref<1x8x1024xbf16, #tpu.memory_space<vmem>>) attributes {dimension_semantics = [#tpu.dimension_semantics<parallel>], iteration_bounds = array<i64: 2>, scalar_prefetch = 0 : i64, scratch_operands = 0 : i64, tpu.core_type = #tpu.core_type<tc>, window_params = [{transform_indices = @transform_0, window_bounds = array<i64: 1, 8, 1024>}, {pipeline_mode = #tpu.pipeline_mode<synchronous>, transform_indices = @transform_1, window_bounds = array<i64: 1, 1024>}, {pipeline_mode = #tpu.pipeline_mode<synchronous>, transform_indices = @transform_2, window_bounds = array<i64: 3, 8, 24>}, {pipeline_mode = #tpu.pipeline_mode<synchronous>, transform_indices = @transform_3, window_bounds = array<i64: 8, 1>}, {pipeline_mode = #tpu.pipeline_mode<synchronous>, transform_indices = @transform_4, window_bounds = array<i64: 8, 1>}, {pipeline_mode = #tpu.pipeline_mode<synchronous>, transform_indices = @transform_5, window_bounds = array<i64: 8, 1>}, {pipeline_mode = #tpu.pipeline_mode<synchronous>, transform_indices = @transform_6, window_bounds = array<i64: 8, 8>}, {pipeline_mode = #tpu.pipeline_mode<synchronous>, transform_indices = @transform_7, window_bounds = array<i64: 8, 8>}, {pipeline_mode = #tpu.pipeline_mode<synchronous>, transform_indices = @transform_8, window_bounds = array<i64: 3, 8, 24>}, {pipeline_mode = #tpu.pipeline_mode<synchronous>, transform_indices = @transform_9, window_bounds = array<i64: 8, 1>}, {pipeline_mode = #tpu.pipeline_mode<synchronous>, transform_indices = @transform_10, window_bounds = array<i64: 8, 8>}, {pipeline_mode = #tpu.pipeline_mode<synchronous>, transform_indices = @transform_11, window_bounds = array<i64: 8, 8>}, {pipeline_mode = #tpu.pipeline_mode<synchronous>, transform_indices = @transform_12, window_bounds = array<i64: 8, 8>}, {pipeline_mode = #tpu.pipeline_mode<synchronous>, transform_indices = @transform_13, window_bounds = array<i64: 3, 8, 24>}, {pipeline_mode = #tpu.pipeline_mode<synchronous>, transform_indices = @transform_14, window_bounds = array<i64: 8, 1>}, {pipeline_mode = #tpu.pipeline_mode<synchronous>, transform_indices = @transform_15, window_bounds = array<i64: 8, 1>}, {pipeline_mode = #tpu.pipeline_mode<synchronous>, transform_indices = @transform_16, window_bounds = array<i64: 8, 1>}, {transform_indices = @transform_17, window_bounds = array<i64: 1, 8, 1024>}]} {
    %c0 = arith.constant 0 : index
    %c0_0 = arith.constant 0 : index
    %c0_1 = arith.constant 0 : index
    %0 = vector.load %arg1[%c0, %c0_0, %c0_1] : memref<1x8x1024xbf16, #tpu.memory_space<vmem>>, vector<1x8x1024xbf16>
    %1 = vector.shape_cast %0 : vector<1x8x1024xbf16> to vector<8x1024xbf16>
    %2 = arith.extf %1 : vector<8x1024xbf16> to vector<8x1024xf32>
    %c0_2 = arith.constant 0 : index
    %c0_3 = arith.constant 0 : index
    %3 = vector.load %arg2[%c0_2, %c0_3] : memref<1x1024xf32, #tpu.memory_space<vmem>>, vector<1x1024xf32>
    %cst = arith.constant 1.000000e+00 : f32
    %4 = vector.broadcast %cst : f32 to vector<1x1024xf32>
    %5 = arith.cmpf oge, %3, %4 : vector<1x1024xf32>
    %6 = vector.extract_strided_slice %2 {offsets = [0, 1023], sizes = [8, 1], strides = [1, 1]} : vector<8x1024xf32> to vector<8x1xf32>
    %7 = vector.extract_strided_slice %2 {offsets = [0, 0], sizes = [8, 1023], strides = [1, 1]} : vector<8x1024xf32> to vector<8x1023xf32>
    %8 = tpu.concatenate %6, %7 in 1 : vector<8x1xf32>, vector<8x1023xf32> -> vector<8x1024xf32>
    %cst_4 = arith.constant 0.000000e+00 : f32
    %9 = vector.shape_cast %5 : vector<1x1024xi1> to vector<1x1024xi1>
    %10 = vector.broadcast %9 : vector<1x1024xi1> to vector<8x1024xi1>
    %11 = vector.broadcast %cst_4 : f32 to vector<8x1024xf32>
    %12 = arith.select %10, %8, %11 : vector<8x1024xi1>, vector<8x1024xf32>
    %cst_5 = arith.constant 3.100000e+01 : f32
    %13 = vector.broadcast %cst_5 : f32 to vector<1x1024xf32>
    %14 = arith.cmpf olt, %3, %13 : vector<1x1024xf32>
    %15 = vector.extract_strided_slice %2 {offsets = [0, 1], sizes = [8, 1023], strides = [1, 1]} : vector<8x1024xf32> to vector<8x1023xf32>
    %16 = vector.extract_strided_slice %2 {offsets = [0, 0], sizes = [8, 1], strides = [1, 1]} : vector<8x1024xf32> to vector<8x1xf32>
    %17 = tpu.concatenate %15, %16 in 1 : vector<8x1023xf32>, vector<8x1xf32> -> vector<8x1024xf32>
    %cst_6 = arith.constant 0.000000e+00 : f32
    %18 = vector.shape_cast %14 : vector<1x1024xi1> to vector<1x1024xi1>
    %19 = vector.broadcast %18 : vector<1x1024xi1> to vector<8x1024xi1>
    %20 = vector.broadcast %cst_6 : f32 to vector<8x1024xf32>
    %21 = arith.select %19, %17, %20 : vector<8x1024xi1>, vector<8x1024xf32>
    %22 = tpu.concatenate %12, %2, %21 in 0 : vector<8x1024xf32>, vector<8x1024xf32>, vector<8x1024xf32> -> vector<24x1024xf32>
    %23 = arith.truncf %22 : vector<24x1024xf32> to vector<24x1024xbf16>
    %c0_7 = arith.constant 0 : index
    %c0_8 = arith.constant 0 : index
    %c0_9 = arith.constant 0 : index
    %24 = vector.load %arg3[%c0_7, %c0_8, %c0_9] : memref<3x8x24xbf16, #tpu.memory_space<vmem>>, vector<1x8x24xbf16>
    %25 = vector.shape_cast %24 : vector<1x8x24xbf16> to vector<8x24xbf16>
    %cst_10 = arith.constant dense<0.000000e+00> : vector<8x1024xf32>
    %26 = tpu.matmul %25, %23, %cst_10 {dimension_numbers = #tpu.dot_dimension_numbers<[1], [0], [0], [1], [0, 0, 1, 1], [], []>} : vector<8x24xbf16>, vector<24x1024xbf16>, vector<8x1024xf32> -> vector<8x1024xf32>
    %c1 = arith.constant 1 : index
    %c0_11 = arith.constant 0 : index
    %c0_12 = arith.constant 0 : index
    %27 = vector.load %arg3[%c1, %c0_11, %c0_12] : memref<3x8x24xbf16, #tpu.memory_space<vmem>>, vector<1x8x24xbf16>
    %28 = vector.shape_cast %27 : vector<1x8x24xbf16> to vector<8x24xbf16>
    %cst_13 = arith.constant dense<0.000000e+00> : vector<8x1024xf32>
    %29 = tpu.matmul %28, %23, %cst_13 {dimension_numbers = #tpu.dot_dimension_numbers<[1], [0], [0], [1], [0, 0, 1, 1], [], []>} : vector<8x24xbf16>, vector<24x1024xbf16>, vector<8x1024xf32> -> vector<8x1024xf32>
    %c2 = arith.constant 2 : index
    %c0_14 = arith.constant 0 : index
    %c0_15 = arith.constant 0 : index
    %30 = vector.load %arg3[%c2, %c0_14, %c0_15] : memref<3x8x24xbf16, #tpu.memory_space<vmem>>, vector<1x8x24xbf16>
    %31 = vector.shape_cast %30 : vector<1x8x24xbf16> to vector<8x24xbf16>
    %cst_16 = arith.constant dense<0.000000e+00> : vector<8x1024xf32>
    %32 = tpu.matmul %31, %23, %cst_16 {dimension_numbers = #tpu.dot_dimension_numbers<[1], [0], [0], [1], [0, 0, 1, 1], [], []>} : vector<8x24xbf16>, vector<24x1024xbf16>, vector<8x1024xf32> -> vector<8x1024xf32>
    %33 = tpu.iota {dimensions = array<i32: 1>} : vector<1x1024xi32>
    %c32_i32 = arith.constant 32 : i32
    %34 = vector.broadcast %c32_i32 : i32 to vector<1x1024xi32>
    %35 = arith.cmpi sge, %33, %34 : vector<1x1024xi32>
    %36 = vector.extract_strided_slice %26 {offsets = [0, 992], sizes = [8, 32], strides = [1, 1]} : vector<8x1024xf32> to vector<8x32xf32>
    %37 = vector.extract_strided_slice %26 {offsets = [0, 0], sizes = [8, 992], strides = [1, 1]} : vector<8x1024xf32> to vector<8x992xf32>
    %38 = tpu.concatenate %36, %37 in 1 : vector<8x32xf32>, vector<8x992xf32> -> vector<8x1024xf32>
    %cst_17 = arith.constant 0.000000e+00 : f32
    %39 = vector.shape_cast %35 : vector<1x1024xi1> to vector<1x1024xi1>
    %40 = vector.broadcast %39 : vector<1x1024xi1> to vector<8x1024xi1>
    %41 = vector.broadcast %cst_17 : f32 to vector<8x1024xf32>
    %42 = arith.select %40, %38, %41 : vector<8x1024xi1>, vector<8x1024xf32>
    %43 = arith.addf %29, %42 : vector<8x1024xf32>
    %c992_i32 = arith.constant 992 : i32
    %44 = vector.broadcast %c992_i32 : i32 to vector<1x1024xi32>
    %45 = arith.cmpi slt, %33, %44 : vector<1x1024xi32>
    %46 = vector.extract_strided_slice %32 {offsets = [0, 32], sizes = [8, 992], strides = [1, 1]} : vector<8x1024xf32> to vector<8x992xf32>
    %47 = vector.extract_strided_slice %32 {offsets = [0, 0], sizes = [8, 32], strides = [1, 1]} : vector<8x1024xf32> to vector<8x32xf32>
    %48 = tpu.concatenate %46, %47 in 1 : vector<8x992xf32>, vector<8x32xf32> -> vector<8x1024xf32>
    %cst_18 = arith.constant 0.000000e+00 : f32
    %49 = vector.shape_cast %45 : vector<1x1024xi1> to vector<1x1024xi1>
    %50 = vector.broadcast %49 : vector<1x1024xi1> to vector<8x1024xi1>
    %51 = vector.broadcast %cst_18 : f32 to vector<8x1024xf32>
    %52 = arith.select %50, %48, %51 : vector<8x1024xi1>, vector<8x1024xf32>
    %53 = arith.addf %43, %52 : vector<8x1024xf32>
    %c0_19 = arith.constant 0 : index
    %c0_20 = arith.constant 0 : index
    %54 = vector.load %arg4[%c0_19, %c0_20] : memref<8x1xf32, #tpu.memory_space<vmem>>, vector<8x1xf32>
    %c0_21 = arith.constant 0 : index
    %c0_22 = arith.constant 0 : index
    %55 = vector.load %arg5[%c0_21, %c0_22] : memref<8x1xf32, #tpu.memory_space<vmem>>, vector<8x1xf32>
    %56 = vector.broadcast %54 : vector<8x1xf32> to vector<8x1024xf32>
    %57 = arith.mulf %53, %56 : vector<8x1024xf32>
    %58 = vector.broadcast %55 : vector<8x1xf32> to vector<8x1024xf32>
    %59 = arith.addf %57, %58 : vector<8x1024xf32>
    %c0_23 = arith.constant 0 : index
    %c0_24 = arith.constant 0 : index
    %60 = vector.load %arg6[%c0_23, %c0_24] : memref<8x1xf32, #tpu.memory_space<vmem>>, vector<8x1xf32>
    %cst_25 = arith.constant 0.000000e+00 : f32
    %61 = vector.broadcast %cst_25 : f32 to vector<8x1024xf32>
    %62 = arith.cmpf oge, %59, %61 : vector<8x1024xf32>
    %63 = vector.broadcast %60 : vector<8x1xf32> to vector<8x1024xf32>
    %64 = arith.mulf %63, %59 : vector<8x1024xf32>
    %65 = arith.select %62, %59, %64 : vector<8x1024xi1>, vector<8x1024xf32>
    %c0_26 = arith.constant 0 : index
    %c0_27 = arith.constant 0 : index
    %66 = vector.load %arg7[%c0_26, %c0_27] : memref<8x8xbf16, #tpu.memory_space<vmem>>, vector<8x8xbf16>
    %67 = arith.truncf %2 : vector<8x1024xf32> to vector<8x1024xbf16>
    %cst_28 = arith.constant dense<0.000000e+00> : vector<8x1024xf32>
    %68 = tpu.matmul %66, %67, %cst_28 {dimension_numbers = #tpu.dot_dimension_numbers<[1], [0], [0], [1], [0, 0, 1, 1], [], []>} : vector<8x8xbf16>, vector<8x1024xbf16>, vector<8x1024xf32> -> vector<8x1024xf32>
    %c0_29 = arith.constant 0 : index
    %c0_30 = arith.constant 0 : index
    %69 = vector.load %arg8[%c0_29, %c0_30] : memref<8x8xbf16, #tpu.memory_space<vmem>>, vector<8x8xbf16>
    %70 = arith.truncf %65 : vector<8x1024xf32> to vector<8x1024xbf16>
    %cst_31 = arith.constant dense<0.000000e+00> : vector<8x1024xf32>
    %71 = tpu.matmul %69, %70, %cst_31 {dimension_numbers = #tpu.dot_dimension_numbers<[1], [0], [0], [1], [0, 0, 1, 1], [], []>} : vector<8x8xbf16>, vector<8x1024xbf16>, vector<8x1024xf32> -> vector<8x1024xf32>
    %72 = arith.addf %68, %71 : vector<8x1024xf32>
    %cst_32 = arith.constant 1.000000e+00 : f32
    %73 = vector.broadcast %cst_32 : f32 to vector<1x1024xf32>
    %74 = arith.cmpf oge, %3, %73 : vector<1x1024xf32>
    %75 = vector.extract_strided_slice %72 {offsets = [0, 1023], sizes = [8, 1], strides = [1, 1]} : vector<8x1024xf32> to vector<8x1xf32>
    %76 = vector.extract_strided_slice %72 {offsets = [0, 0], sizes = [8, 1023], strides = [1, 1]} : vector<8x1024xf32> to vector<8x1023xf32>
    %77 = tpu.concatenate %75, %76 in 1 : vector<8x1xf32>, vector<8x1023xf32> -> vector<8x1024xf32>
    %cst_33 = arith.constant 0.000000e+00 : f32
    %78 = vector.shape_cast %74 : vector<1x1024xi1> to vector<1x1024xi1>
    %79 = vector.broadcast %78 : vector<1x1024xi1> to vector<8x1024xi1>
    %80 = vector.broadcast %cst_33 : f32 to vector<8x1024xf32>
    %81 = arith.select %79, %77, %80 : vector<8x1024xi1>, vector<8x1024xf32>
    %cst_34 = arith.constant 3.100000e+01 : f32
    %82 = vector.broadcast %cst_34 : f32 to vector<1x1024xf32>
    %83 = arith.cmpf olt, %3, %82 : vector<1x1024xf32>
    %84 = vector.extract_strided_slice %72 {offsets = [0, 1], sizes = [8, 1023], strides = [1, 1]} : vector<8x1024xf32> to vector<8x1023xf32>
    %85 = vector.extract_strided_slice %72 {offsets = [0, 0], sizes = [8, 1], strides = [1, 1]} : vector<8x1024xf32> to vector<8x1xf32>
    %86 = tpu.concatenate %84, %85 in 1 : vector<8x1023xf32>, vector<8x1xf32> -> vector<8x1024xf32>
    %cst_35 = arith.constant 0.000000e+00 : f32
    %87 = vector.shape_cast %83 : vector<1x1024xi1> to vector<1x1024xi1>
    %88 = vector.broadcast %87 : vector<1x1024xi1> to vector<8x1024xi1>
    %89 = vector.broadcast %cst_35 : f32 to vector<8x1024xf32>
    %90 = arith.select %88, %86, %89 : vector<8x1024xi1>, vector<8x1024xf32>
    %91 = tpu.concatenate %81, %72, %90 in 0 : vector<8x1024xf32>, vector<8x1024xf32>, vector<8x1024xf32> -> vector<24x1024xf32>
    %92 = arith.truncf %91 : vector<24x1024xf32> to vector<24x1024xbf16>
    %c0_36 = arith.constant 0 : index
    %c0_37 = arith.constant 0 : index
    %c0_38 = arith.constant 0 : index
    %93 = vector.load %arg9[%c0_36, %c0_37, %c0_38] : memref<3x8x24xbf16, #tpu.memory_space<vmem>>, vector<1x8x24xbf16>
    %94 = vector.shape_cast %93 : vector<1x8x24xbf16> to vector<8x24xbf16>
    %cst_39 = arith.constant dense<0.000000e+00> : vector<8x1024xf32>
    %95 = tpu.matmul %94, %92, %cst_39 {dimension_numbers = #tpu.dot_dimension_numbers<[1], [0], [0], [1], [0, 0, 1, 1], [], []>} : vector<8x24xbf16>, vector<24x1024xbf16>, vector<8x1024xf32> -> vector<8x1024xf32>
    %c1_40 = arith.constant 1 : index
    %c0_41 = arith.constant 0 : index
    %c0_42 = arith.constant 0 : index
    %96 = vector.load %arg9[%c1_40, %c0_41, %c0_42] : memref<3x8x24xbf16, #tpu.memory_space<vmem>>, vector<1x8x24xbf16>
    %97 = vector.shape_cast %96 : vector<1x8x24xbf16> to vector<8x24xbf16>
    %cst_43 = arith.constant dense<0.000000e+00> : vector<8x1024xf32>
    %98 = tpu.matmul %97, %92, %cst_43 {dimension_numbers = #tpu.dot_dimension_numbers<[1], [0], [0], [1], [0, 0, 1, 1], [], []>} : vector<8x24xbf16>, vector<24x1024xbf16>, vector<8x1024xf32> -> vector<8x1024xf32>
    %c2_44 = arith.constant 2 : index
    %c0_45 = arith.constant 0 : index
    %c0_46 = arith.constant 0 : index
    %99 = vector.load %arg9[%c2_44, %c0_45, %c0_46] : memref<3x8x24xbf16, #tpu.memory_space<vmem>>, vector<1x8x24xbf16>
    %100 = vector.shape_cast %99 : vector<1x8x24xbf16> to vector<8x24xbf16>
    %cst_47 = arith.constant dense<0.000000e+00> : vector<8x1024xf32>
    %101 = tpu.matmul %100, %92, %cst_47 {dimension_numbers = #tpu.dot_dimension_numbers<[1], [0], [0], [1], [0, 0, 1, 1], [], []>} : vector<8x24xbf16>, vector<24x1024xbf16>, vector<8x1024xf32> -> vector<8x1024xf32>
    %102 = tpu.iota {dimensions = array<i32: 1>} : vector<1x1024xi32>
    %c32_i32_48 = arith.constant 32 : i32
    %103 = vector.broadcast %c32_i32_48 : i32 to vector<1x1024xi32>
    %104 = arith.cmpi sge, %102, %103 : vector<1x1024xi32>
    %105 = vector.extract_strided_slice %95 {offsets = [0, 992], sizes = [8, 32], strides = [1, 1]} : vector<8x1024xf32> to vector<8x32xf32>
    %106 = vector.extract_strided_slice %95 {offsets = [0, 0], sizes = [8, 992], strides = [1, 1]} : vector<8x1024xf32> to vector<8x992xf32>
    %107 = tpu.concatenate %105, %106 in 1 : vector<8x32xf32>, vector<8x992xf32> -> vector<8x1024xf32>
    %cst_49 = arith.constant 0.000000e+00 : f32
    %108 = vector.shape_cast %104 : vector<1x1024xi1> to vector<1x1024xi1>
    %109 = vector.broadcast %108 : vector<1x1024xi1> to vector<8x1024xi1>
    %110 = vector.broadcast %cst_49 : f32 to vector<8x1024xf32>
    %111 = arith.select %109, %107, %110 : vector<8x1024xi1>, vector<8x1024xf32>
    %112 = arith.addf %98, %111 : vector<8x1024xf32>
    %c992_i32_50 = arith.constant 992 : i32
    %113 = vector.broadcast %c992_i32_50 : i32 to vector<1x1024xi32>
    %114 = arith.cmpi slt, %102, %113 : vector<1x1024xi32>
    %115 = vector.extract_strided_slice %101 {offsets = [0, 32], sizes = [8, 992], strides = [1, 1]} : vector<8x1024xf32> to vector<8x992xf32>
    %116 = vector.extract_strided_slice %101 {offsets = [0, 0], sizes = [8, 32], strides = [1, 1]} : vector<8x1024xf32> to vector<8x32xf32>
    %117 = tpu.concatenate %115, %116 in 1 : vector<8x992xf32>, vector<8x32xf32> -> vector<8x1024xf32>
    %cst_51 = arith.constant 0.000000e+00 : f32
    %118 = vector.shape_cast %114 : vector<1x1024xi1> to vector<1x1024xi1>
    %119 = vector.broadcast %118 : vector<1x1024xi1> to vector<8x1024xi1>
    %120 = vector.broadcast %cst_51 : f32 to vector<8x1024xf32>
    %121 = arith.select %119, %117, %120 : vector<8x1024xi1>, vector<8x1024xf32>
    %122 = arith.addf %112, %121 : vector<8x1024xf32>
    %c0_52 = arith.constant 0 : index
    %c0_53 = arith.constant 0 : index
    %123 = vector.load %arg10[%c0_52, %c0_53] : memref<8x1xf32, #tpu.memory_space<vmem>>, vector<8x1xf32>
    %cst_54 = arith.constant 0.000000e+00 : f32
    %124 = vector.broadcast %cst_54 : f32 to vector<8x1024xf32>
    %125 = arith.cmpf oge, %122, %124 : vector<8x1024xf32>
    %126 = vector.broadcast %123 : vector<8x1xf32> to vector<8x1024xf32>
    %127 = arith.mulf %126, %122 : vector<8x1024xf32>
    %128 = arith.select %125, %122, %127 : vector<8x1024xi1>, vector<8x1024xf32>
    %c0_55 = arith.constant 0 : index
    %c0_56 = arith.constant 0 : index
    %129 = vector.load %arg11[%c0_55, %c0_56] : memref<8x8xbf16, #tpu.memory_space<vmem>>, vector<8x8xbf16>
    %130 = arith.truncf %2 : vector<8x1024xf32> to vector<8x1024xbf16>
    %cst_57 = arith.constant dense<0.000000e+00> : vector<8x1024xf32>
    %131 = tpu.matmul %129, %130, %cst_57 {dimension_numbers = #tpu.dot_dimension_numbers<[1], [0], [0], [1], [0, 0, 1, 1], [], []>} : vector<8x8xbf16>, vector<8x1024xbf16>, vector<8x1024xf32> -> vector<8x1024xf32>
    %c0_58 = arith.constant 0 : index
    %c0_59 = arith.constant 0 : index
    %132 = vector.load %arg12[%c0_58, %c0_59] : memref<8x8xbf16, #tpu.memory_space<vmem>>, vector<8x8xbf16>
    %133 = arith.truncf %65 : vector<8x1024xf32> to vector<8x1024xbf16>
    %cst_60 = arith.constant dense<0.000000e+00> : vector<8x1024xf32>
    %134 = tpu.matmul %132, %133, %cst_60 {dimension_numbers = #tpu.dot_dimension_numbers<[1], [0], [0], [1], [0, 0, 1, 1], [], []>} : vector<8x8xbf16>, vector<8x1024xbf16>, vector<8x1024xf32> -> vector<8x1024xf32>
    %135 = arith.addf %131, %134 : vector<8x1024xf32>
    %c0_61 = arith.constant 0 : index
    %c0_62 = arith.constant 0 : index
    %136 = vector.load %arg13[%c0_61, %c0_62] : memref<8x8xbf16, #tpu.memory_space<vmem>>, vector<8x8xbf16>
    %137 = arith.truncf %128 : vector<8x1024xf32> to vector<8x1024xbf16>
    %cst_63 = arith.constant dense<0.000000e+00> : vector<8x1024xf32>
    %138 = tpu.matmul %136, %137, %cst_63 {dimension_numbers = #tpu.dot_dimension_numbers<[1], [0], [0], [1], [0, 0, 1, 1], [], []>} : vector<8x8xbf16>, vector<8x1024xbf16>, vector<8x1024xf32> -> vector<8x1024xf32>
    %139 = arith.addf %135, %138 : vector<8x1024xf32>
    %cst_64 = arith.constant 1.000000e+00 : f32
    %140 = vector.broadcast %cst_64 : f32 to vector<1x1024xf32>
    %141 = arith.cmpf oge, %3, %140 : vector<1x1024xf32>
    %142 = vector.extract_strided_slice %139 {offsets = [0, 1023], sizes = [8, 1], strides = [1, 1]} : vector<8x1024xf32> to vector<8x1xf32>
    %143 = vector.extract_strided_slice %139 {offsets = [0, 0], sizes = [8, 1023], strides = [1, 1]} : vector<8x1024xf32> to vector<8x1023xf32>
    %144 = tpu.concatenate %142, %143 in 1 : vector<8x1xf32>, vector<8x1023xf32> -> vector<8x1024xf32>
    %cst_65 = arith.constant 0.000000e+00 : f32
    %145 = vector.shape_cast %141 : vector<1x1024xi1> to vector<1x1024xi1>
    %146 = vector.broadcast %145 : vector<1x1024xi1> to vector<8x1024xi1>
    %147 = vector.broadcast %cst_65 : f32 to vector<8x1024xf32>
    %148 = arith.select %146, %144, %147 : vector<8x1024xi1>, vector<8x1024xf32>
    %cst_66 = arith.constant 3.100000e+01 : f32
    %149 = vector.broadcast %cst_66 : f32 to vector<1x1024xf32>
    %150 = arith.cmpf olt, %3, %149 : vector<1x1024xf32>
    %151 = vector.extract_strided_slice %139 {offsets = [0, 1], sizes = [8, 1023], strides = [1, 1]} : vector<8x1024xf32> to vector<8x1023xf32>
    %152 = vector.extract_strided_slice %139 {offsets = [0, 0], sizes = [8, 1], strides = [1, 1]} : vector<8x1024xf32> to vector<8x1xf32>
    %153 = tpu.concatenate %151, %152 in 1 : vector<8x1023xf32>, vector<8x1xf32> -> vector<8x1024xf32>
    %cst_67 = arith.constant 0.000000e+00 : f32
    %154 = vector.shape_cast %150 : vector<1x1024xi1> to vector<1x1024xi1>
    %155 = vector.broadcast %154 : vector<1x1024xi1> to vector<8x1024xi1>
    %156 = vector.broadcast %cst_67 : f32 to vector<8x1024xf32>
    %157 = arith.select %155, %153, %156 : vector<8x1024xi1>, vector<8x1024xf32>
    %158 = tpu.concatenate %148, %139, %157 in 0 : vector<8x1024xf32>, vector<8x1024xf32>, vector<8x1024xf32> -> vector<24x1024xf32>
    %159 = arith.truncf %158 : vector<24x1024xf32> to vector<24x1024xbf16>
    %c0_68 = arith.constant 0 : index
    %c0_69 = arith.constant 0 : index
    %c0_70 = arith.constant 0 : index
    %160 = vector.load %arg14[%c0_68, %c0_69, %c0_70] : memref<3x8x24xbf16, #tpu.memory_space<vmem>>, vector<1x8x24xbf16>
    %161 = vector.shape_cast %160 : vector<1x8x24xbf16> to vector<8x24xbf16>
    %cst_71 = arith.constant dense<0.000000e+00> : vector<8x1024xf32>
    %162 = tpu.matmul %161, %159, %cst_71 {dimension_numbers = #tpu.dot_dimension_numbers<[1], [0], [0], [1], [0, 0, 1, 1], [], []>} : vector<8x24xbf16>, vector<24x1024xbf16>, vector<8x1024xf32> -> vector<8x1024xf32>
    %c1_72 = arith.constant 1 : index
    %c0_73 = arith.constant 0 : index
    %c0_74 = arith.constant 0 : index
    %163 = vector.load %arg14[%c1_72, %c0_73, %c0_74] : memref<3x8x24xbf16, #tpu.memory_space<vmem>>, vector<1x8x24xbf16>
    %164 = vector.shape_cast %163 : vector<1x8x24xbf16> to vector<8x24xbf16>
    %cst_75 = arith.constant dense<0.000000e+00> : vector<8x1024xf32>
    %165 = tpu.matmul %164, %159, %cst_75 {dimension_numbers = #tpu.dot_dimension_numbers<[1], [0], [0], [1], [0, 0, 1, 1], [], []>} : vector<8x24xbf16>, vector<24x1024xbf16>, vector<8x1024xf32> -> vector<8x1024xf32>
    %c2_76 = arith.constant 2 : index
    %c0_77 = arith.constant 0 : index
    %c0_78 = arith.constant 0 : index
    %166 = vector.load %arg14[%c2_76, %c0_77, %c0_78] : memref<3x8x24xbf16, #tpu.memory_space<vmem>>, vector<1x8x24xbf16>
    %167 = vector.shape_cast %166 : vector<1x8x24xbf16> to vector<8x24xbf16>
    %cst_79 = arith.constant dense<0.000000e+00> : vector<8x1024xf32>
    %168 = tpu.matmul %167, %159, %cst_79 {dimension_numbers = #tpu.dot_dimension_numbers<[1], [0], [0], [1], [0, 0, 1, 1], [], []>} : vector<8x24xbf16>, vector<24x1024xbf16>, vector<8x1024xf32> -> vector<8x1024xf32>
    %169 = tpu.iota {dimensions = array<i32: 1>} : vector<1x1024xi32>
    %c32_i32_80 = arith.constant 32 : i32
    %170 = vector.broadcast %c32_i32_80 : i32 to vector<1x1024xi32>
    %171 = arith.cmpi sge, %169, %170 : vector<1x1024xi32>
    %172 = vector.extract_strided_slice %162 {offsets = [0, 992], sizes = [8, 32], strides = [1, 1]} : vector<8x1024xf32> to vector<8x32xf32>
    %173 = vector.extract_strided_slice %162 {offsets = [0, 0], sizes = [8, 992], strides = [1, 1]} : vector<8x1024xf32> to vector<8x992xf32>
    %174 = tpu.concatenate %172, %173 in 1 : vector<8x32xf32>, vector<8x992xf32> -> vector<8x1024xf32>
    %cst_81 = arith.constant 0.000000e+00 : f32
    %175 = vector.shape_cast %171 : vector<1x1024xi1> to vector<1x1024xi1>
    %176 = vector.broadcast %175 : vector<1x1024xi1> to vector<8x1024xi1>
    %177 = vector.broadcast %cst_81 : f32 to vector<8x1024xf32>
    %178 = arith.select %176, %174, %177 : vector<8x1024xi1>, vector<8x1024xf32>
    %179 = arith.addf %165, %178 : vector<8x1024xf32>
    %c992_i32_82 = arith.constant 992 : i32
    %180 = vector.broadcast %c992_i32_82 : i32 to vector<1x1024xi32>
    %181 = arith.cmpi slt, %169, %180 : vector<1x1024xi32>
    %182 = vector.extract_strided_slice %168 {offsets = [0, 32], sizes = [8, 992], strides = [1, 1]} : vector<8x1024xf32> to vector<8x992xf32>
    %183 = vector.extract_strided_slice %168 {offsets = [0, 0], sizes = [8, 32], strides = [1, 1]} : vector<8x1024xf32> to vector<8x32xf32>
    %184 = tpu.concatenate %182, %183 in 1 : vector<8x992xf32>, vector<8x32xf32> -> vector<8x1024xf32>
    %cst_83 = arith.constant 0.000000e+00 : f32
    %185 = vector.shape_cast %181 : vector<1x1024xi1> to vector<1x1024xi1>
    %186 = vector.broadcast %185 : vector<1x1024xi1> to vector<8x1024xi1>
    %187 = vector.broadcast %cst_83 : f32 to vector<8x1024xf32>
    %188 = arith.select %186, %184, %187 : vector<8x1024xi1>, vector<8x1024xf32>
    %189 = arith.addf %179, %188 : vector<8x1024xf32>
    %c0_84 = arith.constant 0 : index
    %c0_85 = arith.constant 0 : index
    %190 = vector.load %arg15[%c0_84, %c0_85] : memref<8x1xf32, #tpu.memory_space<vmem>>, vector<8x1xf32>
    %c0_86 = arith.constant 0 : index
    %c0_87 = arith.constant 0 : index
    %191 = vector.load %arg16[%c0_86, %c0_87] : memref<8x1xf32, #tpu.memory_space<vmem>>, vector<8x1xf32>
    %192 = vector.broadcast %190 : vector<8x1xf32> to vector<8x1024xf32>
    %193 = arith.mulf %189, %192 : vector<8x1024xf32>
    %194 = vector.broadcast %191 : vector<8x1xf32> to vector<8x1024xf32>
    %195 = arith.addf %193, %194 : vector<8x1024xf32>
    %c0_88 = arith.constant 0 : index
    %c0_89 = arith.constant 0 : index
    %196 = vector.load %arg17[%c0_88, %c0_89] : memref<8x1xf32, #tpu.memory_space<vmem>>, vector<8x1xf32>
    %cst_90 = arith.constant 0.000000e+00 : f32
    %197 = vector.broadcast %cst_90 : f32 to vector<8x1024xf32>
    %198 = arith.cmpf oge, %195, %197 : vector<8x1024xf32>
    %199 = vector.broadcast %196 : vector<8x1xf32> to vector<8x1024xf32>
    %200 = arith.mulf %199, %195 : vector<8x1024xf32>
    %201 = arith.select %198, %195, %200 : vector<8x1024xi1>, vector<8x1024xf32>
    %202 = arith.truncf %201 : vector<8x1024xf32> to vector<8x1024xbf16>
    %c0_91 = arith.constant 0 : index
    %c0_92 = arith.constant 0 : index
    %c0_93 = arith.constant 0 : index
    %203 = vector.load %arg18[%c0_91, %c0_92, %c0_93] : memref<1x8x1024xbf16, #tpu.memory_space<vmem>>, vector<1x8x1024xbf16>
    %204 = vector.shape_cast %203 : vector<1x8x1024xbf16> to vector<8x1024xbf16>
    %205 = vector.shape_cast %202 : vector<8x1024xbf16> to vector<1x8x1024xbf16>
    tpu.vector_store %arg18[%c0_91, %c0_92, %c0_93], %205 {strides = array<i32>} : memref<1x8x1024xbf16, #tpu.memory_space<vmem>>, vector<1x8x1024xbf16>,
    return
  }
  func.func @transform_0(%arg0: i32) -> (i32, i32, i32) {
    %c0_i32 = arith.constant 0 : i32
    %c0_i32_0 = arith.constant 0 : i32
    %c0_i32_1 = arith.constant 0 : i32
    return %arg0, %c0_i32, %c0_i32_0 : i32, i32, i32
  }
  func.func @transform_1(%arg0: i32) -> (i32, i32) {
    %c0_i32 = arith.constant 0 : i32
    %c0_i32_0 = arith.constant 0 : i32
    %c0_i32_1 = arith.constant 0 : i32
    return %c0_i32, %c0_i32_0 : i32, i32
  }
  func.func @transform_2(%arg0: i32) -> (i32, i32, i32) {
    %c0_i32 = arith.constant 0 : i32
    %c0_i32_0 = arith.constant 0 : i32
    %c0_i32_1 = arith.constant 0 : i32
    %c0_i32_2 = arith.constant 0 : i32
    return %c0_i32, %c0_i32_0, %c0_i32_1 : i32, i32, i32
  }
  func.func @transform_3(%arg0: i32) -> (i32, i32) {
    %c0_i32 = arith.constant 0 : i32
    %c0_i32_0 = arith.constant 0 : i32
    %c0_i32_1 = arith.constant 0 : i32
    return %c0_i32, %c0_i32_0 : i32, i32
  }
  func.func @transform_4(%arg0: i32) -> (i32, i32) {
    %c0_i32 = arith.constant 0 : i32
    %c0_i32_0 = arith.constant 0 : i32
    %c0_i32_1 = arith.constant 0 : i32
    return %c0_i32, %c0_i32_0 : i32, i32
  }
  func.func @transform_5(%arg0: i32) -> (i32, i32) {
    %c0_i32 = arith.constant 0 : i32
    %c0_i32_0 = arith.constant 0 : i32
    %c0_i32_1 = arith.constant 0 : i32
    return %c0_i32, %c0_i32_0 : i32, i32
  }
  func.func @transform_6(%arg0: i32) -> (i32, i32) {
    %c0_i32 = arith.constant 0 : i32
    %c0_i32_0 = arith.constant 0 : i32
    %c0_i32_1 = arith.constant 0 : i32
    return %c0_i32, %c0_i32_0 : i32, i32
  }
  func.func @transform_7(%arg0: i32) -> (i32, i32) {
    %c0_i32 = arith.constant 0 : i32
    %c0_i32_0 = arith.constant 0 : i32
    %c0_i32_1 = arith.constant 0 : i32
    return %c0_i32, %c0_i32_0 : i32, i32
  }
  func.func @transform_8(%arg0: i32) -> (i32, i32, i32) {
    %c0_i32 = arith.constant 0 : i32
    %c0_i32_0 = arith.constant 0 : i32
    %c0_i32_1 = arith.constant 0 : i32
    %c0_i32_2 = arith.constant 0 : i32
    return %c0_i32, %c0_i32_0, %c0_i32_1 : i32, i32, i32
  }
  func.func @transform_9(%arg0: i32) -> (i32, i32) {
    %c0_i32 = arith.constant 0 : i32
    %c0_i32_0 = arith.constant 0 : i32
    %c0_i32_1 = arith.constant 0 : i32
    return %c0_i32, %c0_i32_0 : i32, i32
  }
  func.func @transform_10(%arg0: i32) -> (i32, i32) {
    %c0_i32 = arith.constant 0 : i32
    %c0_i32_0 = arith.constant 0 : i32
    %c0_i32_1 = arith.constant 0 : i32
    return %c0_i32, %c0_i32_0 : i32, i32
  }
  func.func @transform_11(%arg0: i32) -> (i32, i32) {
    %c0_i32 = arith.constant 0 : i32
    %c0_i32_0 = arith.constant 0 : i32
    %c0_i32_1 = arith.constant 0 : i32
    return %c0_i32, %c0_i32_0 : i32, i32
  }
  func.func @transform_12(%arg0: i32) -> (i32, i32) {
    %c0_i32 = arith.constant 0 : i32
    %c0_i32_0 = arith.constant 0 : i32
    %c0_i32_1 = arith.constant 0 : i32
    return %c0_i32, %c0_i32_0 : i32, i32
  }
  func.func @transform_13(%arg0: i32) -> (i32, i32, i32) {
    %c0_i32 = arith.constant 0 : i32
    %c0_i32_0 = arith.constant 0 : i32
    %c0_i32_1 = arith.constant 0 : i32
    %c0_i32_2 = arith.constant 0 : i32
    return %c0_i32, %c0_i32_0, %c0_i32_1 : i32, i32, i32
  }
  func.func @transform_14(%arg0: i32) -> (i32, i32) {
    %c0_i32 = arith.constant 0 : i32
    %c0_i32_0 = arith.constant 0 : i32
    %c0_i32_1 = arith.constant 0 : i32
    return %c0_i32, %c0_i32_0 : i32, i32
  }
  func.func @transform_15(%arg0: i32) -> (i32, i32) {
    %c0_i32 = arith.constant 0 : i32
    %c0_i32_0 = arith.constant 0 : i32
    %c0_i32_1 = arith.constant 0 : i32
    return %c0_i32, %c0_i32_0 : i32, i32
  }
  func.func @transform_16(%arg0: i32) -> (i32, i32) {
    %c0_i32 = arith.constant 0 : i32
    %c0_i32_0 = arith.constant 0 : i32
    %c0_i32_1 = arith.constant 0 : i32
    return %c0_i32, %c0_i32_0 : i32, i32
  }
  func.func @transform_17(%arg0: i32) -> (i32, i32, i32) {
    %c0_i32 = arith.constant 0 : i32
    %c0_i32_0 = arith.constant 0 : i32
    %c0_i32_1 = arith.constant 0 : i32
    return %arg0, %c0_i32, %c0_i32_0 : i32, i32, i32
  }
}

</mosaic_0001>

<bundles_post_ra>
// kernel: tpu_custom_call.1
= control target key start
LH: loop header
LB: loop body
LE: loop exit
PB: predicated region body
PF: predicated region fallthrough
CT: control target
= control target key end

     0   :  { %s6297_s0 = inlined_call_operand.hbm [shape: bf16[2,8,1024], index: 0, kind: input, shape index: {}]   ;;  %s6298_s1 = inlined_call_operand.vmem [shape: f32[1,1024], index: 1, kind: input, shape index: {}]   ;;  %s6299_s2 = inlined_call_operand.vmem [shape: bf16[3,8,24], index: 2, kind: input, shape index: {}]   ;;  %s6300_s3 = inlined_call_operand.vmem [shape: f32[8,1], index: 3, kind: input, shape index: {}]   ;;  %s6301_s4 = inlined_call_operand.vmem [shape: f32[8,1], index: 4, kind: input, shape index: {}]   ;;  %s6302_s5 = inlined_call_operand.vmem [shape: f32[8,1], index: 5, kind: input, shape index: {}]   ;;  %s6303_s6 = inlined_call_operand.vmem [shape: bf16[8,8], index: 6, kind: input, shape index: {}]   ;;  %s6304_s7 = inlined_call_operand.vmem [shape: bf16[8,8], index: 7, kind: input, shape index: {}]   ;;  %s6305_s8 = inlined_call_operand.vmem [shape: bf16[3,8,24], index: 8, kind: input, shape index: {}]   ;;  %s6306_s9 = inlined_call_operand.vmem [shape: f32[8,1], index: 9, kind: input, shape index: {}]   ;;  %s6307_s10 = inlined_call_operand.vmem [shape: bf16[8,8], index: 10, kind: input, shape index: {}]   ;;  %s6308_s11 = inlined_call_operand.vmem [shape: bf16[8,8], index: 11, kind: input, shape index: {}]   ;;  %s6309_s12 = inlined_call_operand.vmem [shape: bf16[8,8], index: 12, kind: input, shape index: {}]   ;;  %s6310_s13 = inlined_call_operand.vmem [shape: bf16[3,8,24], index: 13, kind: input, shape index: {}]   ;;  %s6311_s14 = inlined_call_operand.vmem [shape: f32[8,1], index: 14, kind: input, shape index: {}]   ;;  %s6312_s15 = inlined_call_operand.vmem [shape: f32[8,1], index: 15, kind: input, shape index: {}]   ;;  %s6313_s16 = inlined_call_operand.vmem [shape: f32[8,1], index: 16, kind: input, shape index: {}]   ;;  %s6314_s17 = inlined_call_operand.hbm [shape: bf16[2,8,1024], index: 17, kind: output, shape index: {}]  }
   0x1   :  { %6343 = sst [smem:[#allocation13_spill]] %s6297_s0 }
   0x2   :  { %6344 = sst [smem:[#allocation14_spill]] %s6298_s1 }
   0x3   :  { %6345 = sst [smem:[#allocation15_spill]] %s6299_s2 }
   0x4   :  { %6346 = sst [smem:[#allocation16_spill]] %s6313_s16 }
   0x5   :  { %6347 = sst [smem:[#allocation17_spill]] %s6314_s17 }
   0x6   :  { %22 = vsyncpa [#allocation3], 0 }
   0x7   :  { %24 = vsyncpa [#allocation3 + $0x1], 0 }
   0x8   :  { %25 = vsyncpa [#allocation4], 0 }
   0x9   :  { %27 = vsyncpa [#allocation4 + $0x1], 0  ;;  %s4943_s24 = smov 0   ;;  %s4945_s25 = smov 0  }
   0xa   :  { %s4947_s26 = smov 0   ;;  %s4949_s27 = smov 0  }
   0xb LB: > { %6348 = sst [smem:[#allocation8_spill]] %s4831_s24  ;;  %s4964_s28 = sadd.s32 4294967295, %s4843_s27   ;;  %s4843_s27 = sphi %s4949_s27, %s6577_s27   ;;  %s4839_s26 = sphi %s4947_s26, %s6581_s26   ;;  %s4835_s25 = sphi %s4945_s25, %s6580_s25   ;;  %s4831_s24 = sphi %s4943_s24, %s6579_s24  }
   0xc   : > { %6349 = sst [smem:[#allocation9_spill]] %s4964_s28  ;;  %s4176_s29 = sadd.s32 4294967294, %s4843_s27  }
   0xd   : > { %s4968_s0 = sadd.s32 1, %s4843_s27   ;;  %s40_s30 = sadd.s32 1, %s4839_s26 }
   0xe   : > { %6350 = sst [smem:[#allocation10_spill]] %s4968_s0  ;;  %s37_s18 = ssub.s32 %s4843_s27, %s4968_s0 }
   0xf   : > { %p47_p0 = scmp.ne.s32.totalorder %s4839_s26, %s4835_s25  ;;  %p38_p1 = scmp.eq.s32.totalorder %s37_s18, 0 }
  0x10   : > { %p48_p2 = scmp.eq.s32.totalorder %s4843_s27, 0  ;;  %p53_p3 = scmp.ne.s32.totalorder %s4835_s25, %s4831_s24 }
  0x11   : > { %p54_p4 = scmp.eq.s32.totalorder %s4964_s28, 0  ;;  %p413_p7 = scmp.eq.s32.totalorder %s4964_s28, 1 }
  0x12   : > { %s4980_s19 = scalar_select %p38_p1, %s4839_s26, %s40_s30  }
  0x13   : > { %p4982_p5 = por %p48_p2, %p47_p0  ;;  %p4986_p6 = por %p54_p4, %p53_p3 }
  0x14   : > { %6351 = sst [smem:[#allocation11_spill]] %s4980_s19  ;;  %p419_p8 = scmp.eq.s32.totalorder %s4176_s29, 1 }
  0x15   : > { %p4602_p10 = scmp.lt.s32.totalorder %s4843_s27, 2  ;;  %p4993_p11 = por %p413_p7, %p47_p0 }
  0x16   : > { %p4997_p12 = por %p419_p8, %p53_p3  ;;  %s487_s23 = sand.u32 1, %s4839_s26  }
  0x17   : > { %s6354_s21 = scalar_select %p4993_p11, 1, 0 }
  0x18   : > { %s6356_s22 = scalar_select %p4997_p12, 1, 0 }
  0x19   : > { %6355 = sst [smem:[#allocation12_spill]] %s6354_s21  ;;  %s4536_s30 = sshll.u32 %s4843_s27, 9 }
  0x1a   : > { %s4179_s18 = sshll.u32 %s487_s23, 5  ;;  %s6357_s24 = sld [smem:[#allocation13_spill]] }
  0x1b   : > { %s491_s29 = scalar_lea.vmem [#allocation2], %s4179_s18  ;;  %p5010_p13 = pnand %p4602_p10, %p4982_p5 }
  0x1c   : > { %s499_s28 = sshll.u32 %s491_s29, 4  ;;  %s488_s0 = scalar_lea.sflag [#allocation3], %s487_s23  ;;  %s5014_s28 = int_to_ptr.vmem [resolvable:$true] %s499_s28 }
  0x1d   : > { %p4749_p3 = pneg %p5010_p13 }
  0x20   : > { %s6358_s17 = smov %s6357_s24  ;;  %s5006_s16 = scalar_lea.hbm %s6357_s24, %s4536_s30 }
  0x21   : > { %s4747_s24 = scalar_lea.hbm %s5006_s16, 512  ;;  %s4752_s30 = scalar_lea.hbm %s6358_s17, 1024 }
  0x22   : > { %p4748_p2 = scmp.ne.s32.totalorder %s5006_s16, %s4747_s24  ;;  %p4753_p5 = scmp.lt.u32.totalorder %s5006_s16, %s6358_s17 }
  0x23   : > { %p4754_p8 = scmp.lt.u32.totalorder %s4752_s30, %s4747_s24  ;;  %p4756_p9 = scmp.lt.u32.totalorder %s4747_s24, %s5006_s16 }
  0x24   : > { %p4750_p4 = pnand %p4749_p3, %p4748_p2 }
  0x25   : > { %p4755_p10 = por %p4754_p8, %p4753_p5 }
  0x26   : > { %p4751_p7 = pneg %p4750_p4 }
  0x27   : > { %p4757_p0 = por %p4756_p9, %p4755_p10 }
  0x29   : > { %p4758_p1 = pnand %p4757_p0, %p4751_p7 }
  0x2b   : > { %4761 = shalt.err (!%p4758_p1)
}
  0x2c   : > { %s4762_s23 = scalar_lea.vmem %s5014_s28, 512  ;;  %s4845_s19 = smov [#allocation2]  }
  0x2d   : > { %p4763_p2 = scmp.ne.s32.totalorder %s5014_s28, %s4762_s23  ;;  %s4767_s1 = sshll.u32 %s4845_s19, 4  ;;  %s4768_s1 = int_to_ptr.vmem [resolvable:$false] %s4767_s1 }
  0x2e   : > { %s4769_s18 = scalar_lea.vmem %s4768_s1, 1024  ;;  %p4770_p11 = scmp.lt.s32.totalorder %s5014_s28, %s4768_s1 }
  0x2f   : > { %p4765_p4 = pnand %p4763_p2, %p4749_p3  ;;  %p4771_p5 = scmp.lt.s32.totalorder %s4769_s18, %s4762_s23 }
  0x31   : > { %p4766_p12 = pneg %p4765_p4  ;;  %p4772_p8 = por %p4771_p5, %p4770_p11 }
  0x33   : > { %p4773_p9 = pnand %p4772_p8, %p4766_p12 }
  0x35   : > { %4776 = shalt.err (!%p4773_p9)
}
  0x36   : > { %4597 = dma.hbm_to_vmem [thread:$0]  (!%p5010_p13), %s5006_s16, 512, %s5014_s28, %s488_s0  }
  0x37   : > { %p6360_p0 = scmp.lt.s32.totalorder %s4843_s27, 3  ;;  %p6361_p1 = scmp.ge.s32.totalorder %s4843_s27, 1 }
  0x39   : > { %p505_p3 = pnand %p6361_p1, %p6360_p0 }
  0x3a   : > { %s5048_s24 = sand.u32 (!%p505_p3), 1, %s4835_s25  }
  0x3b   : > { %508 = sbr.rel (%p505_p3) target bundleno = 2059 (0x80b), region = 88  ;;  %s6324_s30 = sshll.u32 (!%p505_p3), %s5048_s24, 5 }
  0x3c   : > { %s511_s29 = scalar_lea.sflag (!%p505_p3), [#allocation3], %s5048_s24  ;;  %s514_s21 = scalar_lea.vmem (!%p505_p3), [#allocation2], %s6324_s30 }
  0x42   : > { %4822 = dma.done.wait (%p4986_p6), %s511_s29, 512  }
  0x43   : > { %4824 = vsyncadd (%p4986_p6), %s511_s29, 4294966784  ;;  %v4846_v0 = vmov 0   ;;  %v5062_v1 = vld [vmem:[%s514_s21] sm:$0xff]  ;;  %v5064_v2 = vld [vmem:[%s514_s21 + $0x8] sm:$0xff]  ;;  %s4847_s16 = smov 127   ;;  %s4848_s28 = smov 1   ;;  %v623_v20 = vlaneseq }
  0x44   : > { %833 = vmatprep.mubr.bf16.mxu0 %v4846_v0  ;;  %874 = vmatprep.mubr.bf16.mxu1 %v4846_v0  ;;  %v5066_v3 = vld [vmem:[%s514_s21 + $0x18] sm:$0xff]  ;;  %v570_v4 = vunpack.c.l.bf16 %v5062_v1  ;;  %v571_v5 = vunpack.c.h.bf16 %v5062_v1  ;;  %v5071_v6 = vunpack.c.l.bf16 %v5064_v2  ;;  %v5076_v8 = vld [vmem:[%s514_s21 + $0x10] sm:$0xff]  ;;  %v573_v11 = vunpack.c.h.bf16 %v5064_v2  ;;  %v1469_v17 = vld [vmem:[%s6301_s4] sm:$0xff]  ;;  %s6362_s30 = sld [smem:[#allocation14_spill]]  ;;  %s6373_s2 = sld [smem:[#allocation15_spill]] }
  0x45   : > { %4673 = vset.pattern.permute.xlu1 %v4846_v0  ;;  %4672 = vset.pattern.permute.xlu0 %v4846_v0  ;;  %v5074_v7 = vunpack.c.h.bf16 %v5066_v3  ;;  %v574_v12 = vunpack.c.l.bf16 %v5076_v8  ;;  %v5092_v13 = vunpack.c.h.bf16 %v5076_v8  ;;  %v5099_v15 = vunpack.c.l.bf16 %v5066_v3  ;;  %v1468_v18 = vld [vmem:[%s6300_s3] sm:$0xff]  ;;  %s4850_s18 = smov 32   ;;  %s4851_s29 = smov 96  }
  0x46   : > { %v4652_v9 = vpack.i.bf16 %v571_v5, %v570_v4  ;;  %v1496_v19 = vld [vmem:[%s6302_s5] sm:$0xff]  ;;  %v5125_v22 = vshrl.u32 %v623_v20, 7  ;;  %vm6331_vm2 = vcmask 1039360   ;;  %vm6340_vm3 = vcmask 7168   ;;  %s6550_s1 = sld [smem:[#allocation16_spill]]  ;;  %s6571_s20 = sld [smem:[#allocation12_spill]] }
  0x47   : > { %v4647_v10 = vpack.i.bf16 %v5071_v6, %v5074_v7  ;;  %v4657_v14 = vpack.i.bf16 %v574_v12, %v573_v11  ;;  %v4667_v16 = vpack.i.bf16 %v5099_v15, %v5092_v13  ;;  %vm6328_vm6 = vcmask 1043456   ;;  %v4461_v42 = vld [vmem:[%s6310_s13 + $0x4] sm:$0xf] }
  0x48   : > { %4653 = vrot.lane.b32.xlu1 %v4652_v9, %s4847_s16  ;;  %4643 = vrot.lane.b32.xlu0 %v4652_v9, %s4848_s28  ;;  %v629_v23 = vsub.s32 1, %v5125_v22  ;;  %v625_v24 = vsub.s32 0, %v5125_v22  ;;  %v645_v29 = vsub.s32 5, %v5125_v22  ;;  %v637_v30 = vsub.s32 3, %v5125_v22 }
  0x49   : > { %v633_v35 = vsub.s32 2, %v5125_v22  ;;  %vm4849_vm8 = vmmov 1   ;;  %v641_v45 = vsub.s32 4, %v5125_v22  ;;  %v649_v9 = vsub.s32 6, %v5125_v22 }
  0x4a   : > { %v578_v21 = vld [vmem:[%s6362_s30] sm:$0xff] }
  0x4b   : > { %vm579_vm0 = vcmp.ge.f32.partialorder %v578_v21, 1.0  ;;  %vm671_vm1 = vcmp.lt.f32.partialorder %v578_v21, 31.0 }
  0x4c   : > { %676 = vrot.lane.b32.xlu1 %v5071_v6, %s4847_s16  ;;  %4648 = vrot.lane.b32.xlu0 %v4647_v10, %s4848_s28  ;;  %v5130_v25 = vsel %vm579_vm0, 1, %v4846_v0  ;;  %v5133_v26 = vsel %vm671_vm1, 1, %v4846_v0  ;;  %v653_v10 = vsub.s32 7, %v5125_v22  ;;  %p6573_p11 = scmp.ne.s32.totalorder %s6571_s20, 0 }
  0x4d   : > { %v630_v27 = vrot.slane %v5130_v25, %v629_v23  ;;  %v5137_v28 = vrot.slane %v5133_v26, %v625_v24  ;;  %v5142_v31 = vrot.slane %v5133_v26, %v629_v23  ;;  %v626_v34 = vrot.slane %v5130_v25, %v625_v24 }
  0x4e   : > { %v646_v40 = vrot.slane %v5130_v25, %v645_v29  ;;  %v638_v41 = vrot.slane %v5130_v25, %v637_v30  ;;  %v634_v50 = vrot.slane %v5130_v25, %v633_v35  ;;  %v5180_v54 = vrot.slane %v5133_v26, %v645_v29 }
  0x4f   : > { %vm656_vm4 = vcmp.eq.s32.totalorder %v630_v27, 1  ;;  %vm6326_vm5 = vcmp.eq.s32.totalorder %v5137_v28, 1  ;;  %vm6325_vm7 = vcmp.eq.s32.totalorder %v5142_v31, 1  ;;  %vm655_vm10 = vcmp.eq.s32.totalorder %v626_v34, 1 }
  0x50   : > { %601 = vrot.lane.b32.xlu1 %v5092_v13, %s4848_s28  ;;  %4658 = vrot.lane.b32.xlu0 %v4657_v14, %s4848_s28  ;;  %vm5155_vm9 = vmpackc.low %vm4849_vm8, %vm656_vm4  ;;  %vm660_vm11 = vcmp.eq.s32.totalorder %v646_v40, 1  ;;  %vm658_vm12 = vcmp.eq.s32.totalorder %v638_v41, 1  ;;  %v5188_v56 = vrot.slane %v5133_v26, %v637_v30  ;;  %v642_v61 = vrot.slane %v5130_v25, %v641_v45 }
  0x51   : > { %vm5196_vm13 = vmpackc.low %vm4849_vm8, %vm655_vm10  ;;  %vm657_vm14 = vcmp.eq.s32.totalorder %v634_v50, 1  ;;  %vm6330_vm15 = vcmp.eq.s32.totalorder %v5180_v54, 1  ;;  %vm6333_vm4 = vcmask 195584   ;;  %v5264_v41 = vrot.slane %v5133_v26, %v649_v9 }
  0x52   : > { %vm5216_vm0 = vmpackc.low %vm4849_vm8, %vm660_vm11  ;;  %vm6327_vm1 = vcmp.eq.s32.totalorder %v5188_v56, 1  ;;  %vm659_vm11 = vcmp.eq.s32.totalorder %v642_v61, 1  ;;  %v650_v61 = vrot.slane %v5130_v25, %v649_v9 }
  0x53   : > { %vm5231_vm10 = vmpackc.low %vm4849_vm8, %vm658_vm12 }
  0x54   : > { %4668 = vrot.lane.b32.xlu1 %v4667_v16, %s4847_s16  ;;  %4663 = vrot.lane.b32.xlu0 %v4657_v14, %s4847_s16  ;;  %vm5251_vm12 = vmpackc.low %vm4849_vm8, %vm657_vm14 }
  0x58   : > { %686 = vrot.lane.b32.xlu1 %v5074_v7, %s4847_s16  ;;  %603 = vrot.lane.b32.xlu0 %v5099_v15, %s4848_s28 }
  0x5c   : > { %1485 = vperm.xlu1 %4673, %v1469_v17   ;;  %1472 = vperm.xlu0 %4672, %v1468_v18   ;;  %v5222_v18 = vrot.slane %v5133_v26, %v633_v35 }
  0x60   : > { %1507 = vperm.xlu1 %4673, %v1496_v19   ;;  %v5225_v19 = vrot.slane %v5133_v26, %v641_v45 }
  0x62   : > { %vm6329_vm14 = vcmp.eq.s32.totalorder %v5225_v19, 1 }
  0xba   : > { %v5144_v32 = vpop.permute.xlu1 %4653  ;;  %v4644_v33 = vpop.permute.xlu0 %4643 }
  0xbb   : > { %v4656_v36 = vunpack.i.h.bf16 %v5144_v32  ;;  %v4655_v37 = vunpack.i.l.bf16 %v5144_v32  ;;  %v4646_v38 = vunpack.i.h.bf16 %v4644_v33  ;;  %v4645_v39 = vunpack.i.l.bf16 %v4644_v33 }
  0xbd   : > { %v606_v43 = vsel %vm6340_vm3, %v4645_v39, %v4646_v38  ;;  %v689_v44 = vsel %vm6331_vm2, %v4655_v37, %v4656_v36 }
  0xbe   : > { %v5164_v46 = vpop.permute.xlu1 %676  ;;  %v5166_v47 = vpop.permute.xlu0 %4648  ;;  %v5170_v48 = vpack.c.bf16 %v571_v5, %v606_v43  ;;  %v747_v49 = vsel %vm6326_vm5, %v689_v44, 0.0  ;;  %v5267_v43 = vrot.slane %v5133_v26, %v653_v10  ;;  %vm6332_vm5 = vcmp.eq.s32.totalorder %v5222_v18, 1 }
  0xbf   : > { %v690_v51 = vsel %vm6331_vm2, %v4656_v36, %v5164_v46  ;;  %v4651_v52 = vunpack.i.h.bf16 %v5166_v47  ;;  %v4650_v53 = vunpack.i.l.bf16 %v5166_v47  ;;  %v763_v60 = vpack.c.bf16 %v747_v49, %v747_v49 }
  0xc0   : > { %v748_v55 = vsel %vm6325_vm7, %v690_v51, 0.0  ;;  %4187 = vmatprep.subr.msk.bf16.mxu0 %vm5155_vm9, %v5170_v48  ;;  %vm5286_vm7 = vmpackc.low %vm4849_vm8, %vm659_vm11 }
  0xc1   : > { %v5190_v57 = vpack.c.bf16 %v748_v55, %v748_v55  ;;  %v621_v58 = vsel %vm6340_vm3, %v4650_v53, %v4645_v39  ;;  %v607_v17 = vsel %vm6340_vm3, %v4646_v38, %v4651_v52  ;;  %v5238_v23 = vsel %vm6328_vm6, %v763_v60, 0 }
  0xc2   : > { %v5201_v62 = vpop.permute.xlu1 %601  ;;  %v4659_v63 = vpop.permute.xlu0 %4658  ;;  %v5205_v5 = vpack.c.bf16 %v570_v4, %v621_v58  ;;  %v5256_v36 = vpack.c.bf16 %v5071_v6, %v607_v17  ;;  %v5272_v6 = vld [vmem:[%s6373_s2] sm:$0xf] }
  0xc3   : > { %v4661_v14 = vunpack.i.h.bf16 %v4659_v63  ;;  %v4660_v16 = vunpack.i.l.bf16 %v4659_v63 }
  0xc4   : > { %4190 = vmatpush1.bf16.msk.msra.mxu0 %vm5196_vm13, %v5205_v5 }
  0xc5   : > { %v610_v21 = vsel %vm6340_vm3, %v4661_v14, %v5201_v62  ;;  %4191 = vmatprep.subr.msk.bf16.mxu0 %vm6328_vm6, %v5190_v57  ;;  %v608_v24 = vsel %vm6340_vm3, %v4651_v52, %v4660_v16  ;;  %v609_v29 = vsel %vm6340_vm3, %v4660_v16, %v4661_v14 }
  0xc6   : > { %v5242_v27 = vpack.c.bf16 %v5092_v13, %v610_v21  ;;  %v4669_v30 = vpop.permute.xlu1 %4668  ;;  %v4664_v33 = vpop.permute.xlu0 %4663  ;;  %v5247_v34 = vpack.c.bf16 %v573_v11, %v608_v24  ;;  %v654_v11 = vrot.slane %v5130_v25, %v653_v10  ;;  %v5292_v50 = vpack.c.bf16 %v574_v12, %v609_v29 }
  0xc7   : > { %v4671_v38 = vunpack.i.h.bf16 %v4669_v30  ;;  %v4670_v13 = vunpack.i.l.bf16 %v4669_v30  ;;  %v4666_v39 = vunpack.i.h.bf16 %v4664_v33  ;;  %v4665_v40 = vunpack.i.l.bf16 %v4664_v33 }
  0xc8   : > { %804 = vmatpush1.bf16.msra.mxu0 %v5238_v23  ;;  %4195 = vmatprep.subr.msk.bf16.mxu1 %vm5231_vm10, %v5247_v34  ;;  %vm662_vm11 = vcmp.eq.s32.totalorder %v654_v11, 1  ;;  %v6383_v29 = vmov 0 }
  0xc9   : > { %v694_v44 = vsel %vm6331_vm2, %v4670_v13, %v4671_v38  ;;  %v693_v45 = vsel %vm6331_vm2, %v4666_v39, %v4670_v13  ;;  %v692_v49 = vsel %vm6331_vm2, %v4665_v40, %v4666_v39  ;;  %4198 = vmatpush1.bf16.msk.msra.mxu1 %vm5251_vm12, %v5256_v36  ;;  %4203 = vmatprep.subr.msk.bf16.mxu0 %vm5216_vm0, %v5242_v27 }
  0xca   : > { %v750_v51 = vsel %vm6327_vm1, %v692_v49, 0.0  ;;  %v687_v52 = vpop.permute.xlu1 %686  ;;  %v604_v55 = vpop.permute.xlu0 %603  ;;  %v691_v58 = vsel %vm6331_vm2, %v5164_v46, %v4665_v40  ;;  %v752_v60 = vsel %vm6330_vm15, %v694_v44, 0.0  ;;  %v751_v63 = vsel %vm6329_vm14, %v693_v45, 0.0  ;;  %vm5329_vm15 = vmpackc.low %vm4849_vm8, %vm662_vm11 }
  0xcb   : > { %v612_v12 = vsel %vm6340_vm3, %v604_v55, %v4650_v53  ;;  %4192 = vmatmul.mubr.msk.bf16.vlgmr.msra.gmra.mrb[0].mxu0 %vm6333_vm4, %v5272_v6  ;;  %vm6335_vm1 = vcmp.eq.s32.totalorder %v5264_v41, 1  ;;  %v695_v25 = vsel %vm6331_vm2, %v4671_v38, %v687_v52  ;;  %v705_v46 = vsel %vm6331_vm2, %v687_v52, %v4655_v37  ;;  %v4218_v38 = vld [vmem:[%s6373_s2 + $0x8] sm:$0xf] }
  0xcc   : > { %4206 = vmatpush1.bf16.msk.msra.mxu0 %vm5286_vm7, %v5292_v50  ;;  %915 = vmatprep.mubr.bf16.mxu0 %v4846_v0  ;;  %v5319_v47 = vpack.c.bf16 %v750_v51, %v750_v51  ;;  %v749_v53 = vsel %vm6332_vm5, %v691_v58, 0.0  ;;  %v5324_v9 = vpack.c.bf16 %v5074_v7, %v612_v12  ;;  %v5326_v14 = vpack.c.bf16 %v752_v60, %v752_v60 }
  0xcd   : > { %v765_v10 = vpack.c.bf16 %v749_v53, %v749_v53  ;;  %v767_v16 = vpack.c.bf16 %v751_v63, %v751_v63  ;;  %vm661_vm14 = vcmp.eq.s32.totalorder %v650_v61, 1  ;;  %vm6378_vm2 = vcmask 1043456  }
  0xce   : > { %4199 = vmatprep.subr.msk.bf16.mxu1 %vm6378_vm2, %v5319_v47  ;;  %v611_v32 = vsel %vm6340_vm3, %v5201_v62, %v604_v55  ;;  %vm6379_vm5 = vmmov %vm6378_vm2  ;;  %v753_v21 = vsel %vm6335_vm1, %v695_v25, 0.0  ;;  %vm6382_vm11 = vcmp.eq.s32.totalorder %v5267_v43, 1 }
  0xcf   : > { %v784_v37 = vsel %vm6379_vm5, %v765_v10, 0  ;;  %vm6380_vm4 = vmmov %vm6378_vm2  ;;  %v754_v24 = vsel %vm6382_vm11, %v705_v46, 0.0  ;;  %v4213_v62 = vpack.c.bf16 %v5099_v15, %v611_v32  ;;  %v769_v30 = vpack.c.bf16 %v753_v21, %v753_v21 }
  0xd0   : > { %4207 = vmatprep.subr.msk.bf16.mxu0 %vm6380_vm4, %v5326_v14  ;;  %vm6381_vm6 = vmmov %vm6378_vm2  ;;  %845 = vmatpush1.bf16.msra.mxu1 %v784_v37  ;;  %v770_v33 = vpack.c.bf16 %v754_v24, %v754_v24  ;;  %vm6385_vm5 = vcmask 195584  }
  0xd1   : > { %v790_v7 = vsel %vm6381_vm6, %v767_v16, 0  ;;  %vm5346_vm2 = vmpackc.low %vm4849_vm8, %vm661_vm14  ;;  %4211 = vmatprep.subr.msk.bf16.mxu1 %vm5329_vm15, %v5324_v9 }
  0xd2   : > { %886 = vmatpush1.bf16.msra.mxu0 %v790_v7  ;;  %v6384_v29 = vsel %vm5346_vm2, 4294967295, %v6383_v29  ;;  %vm6386_vm6 = vmmov %vm6385_vm5 }
  0xd3   : > { %4221 = vmatprep.subr.msk.bf16.mxu0 %vm5155_vm9, %v5170_v48  ;;  %4200 = vmatmul.mubr.msk.bf16.vlgmr.msra.gmra.mrb[0].mxu1 %vm6385_vm5, %v5272_v6  ;;  %vm6387_vm8 = vmmov %vm6380_vm4 }
  0xd4   : > { %4214 = vmatpush1.bf16.msk.msra.mxu1 %vm5346_vm2, %v4213_v62  ;;  %956 = vmatprep.mubr.bf16.mxu1 %v4846_v0  ;;  %vm6388_vm14 = vmmov %vm6380_vm4 }
  0xd5   : > { %4208 = vmatmul.mubr.msk.bf16.vlgmr.msra.gmra.mrb[4].mxu0 %vm6386_vm6, %v5272_v6  ;;  %4215 = vmatprep.subr.msk.bf16.mxu1 %vm6387_vm8, %v770_v33  ;;  %v796_v15 = vsel %vm6388_vm14, %v769_v30, 0  ;;  %vm6389_vm11 = vmmov %vm6385_vm5 }
  0xd6   : > { %4224 = vmatpush1.bf16.msk.msra.mxu0 %vm5196_vm13, %v5205_v5  ;;  %1004 = vmatprep.mubr.bf16.mxu0 %v4846_v0  ;;  %vm6390_vm6 = vmmov %vm6380_vm4 }
  0xd7   : > { %4225 = vmatprep.subr.msk.bf16.mxu0 %vm6380_vm4, %v5190_v57  ;;  %vm6391_vm8 = vmmov %vm6380_vm4 }
  0xd8   : > { %927 = vmatpush1.bf16.msra.mxu1 %v796_v15  ;;  %vm6392_vm4 = vmmov %vm6385_vm5 }
  0xd9   : > { %4229 = vmatprep.subr.msk.bf16.mxu1 %vm5231_vm10, %v5247_v34  ;;  %vm6393_vm14 = vmmov %vm6392_vm4 }
  0xda   : > { %975 = vmatpush1.bf16.msra.mxu0 %v5238_v23 }
  0xdb   : > { %4237 = vmatprep.subr.msk.bf16.mxu0 %vm5216_vm0, %v5242_v27  ;;  %4216 = vmatmul.mubr.msk.bf16.vlgmr.msra.gmra.mrb[4].mxu1 %vm6389_vm11, %v5272_v6  ;;  %vm6394_vm11 = vmmov %vm6390_vm6 }
  0xdc   : > { %4232 = vmatpush1.bf16.msk.msra.mxu1 %vm5251_vm12, %v5256_v36  ;;  %1045 = vmatprep.mubr.bf16.mxu1 %v4846_v0 }
  0xdd   : > { %4226 = vmatmul.mubr.msk.bf16.vlgmr.msra.gmra.mrb[8].mxu0 %vm6385_vm5, %v4218_v38  ;;  %4233 = vmatprep.subr.msk.bf16.mxu1 %vm6390_vm6, %v5319_v47  ;;  %vm6395_vm5 = vmmov %vm6390_vm6 }
  0xde   : > { %4240 = vmatpush1.bf16.msk.msra.mxu0 %vm5286_vm7, %v5292_v50  ;;  %1086 = vmatprep.mubr.bf16.mxu0 %v4846_v0  ;;  %vm6396_vm6 = vmmov %vm6392_vm4 }
  0xdf   : > { %4241 = vmatprep.subr.msk.bf16.mxu0 %vm6391_vm8, %v5326_v14  ;;  %vm6397_vm8 = vmmov %vm6392_vm4 }
  0xe0   : > { %1016 = vmatpush1.bf16.msra.mxu1 %v784_v37 }
  0xe1   : > { %4245 = vmatprep.subr.msk.bf16.mxu1 %vm5329_vm15, %v5324_v9 }
  0xe2   : > { %1057 = vmatpush1.bf16.msra.mxu0 %v790_v7 }
  0xe3   : > { %4253 = vmatprep.subr.msk.bf16.mxu0 %vm5155_vm9, %v5170_v48  ;;  %4234 = vmatmul.mubr.msk.bf16.vlgmr.msra.gmra.mrb[8].mxu1 %vm6392_vm4, %v4218_v38  ;;  %v4217_v48 = vld [vmem:[%s6373_s2 + $0x4] sm:$0xf]  ;;  %vm6398_vm4 = vmmov %vm6395_vm5 }
  0xe4   : > { %4248 = vmatpush1.bf16.msk.msra.mxu1 %vm5346_vm2, %v4213_v62  ;;  %1127 = vmatprep.mubr.bf16.mxu1 %v4846_v0 }
  0xe5   : > { %4242 = vmatmul.mubr.msk.bf16.vlgmr.msra.gmra.mrb[12].mxu0 %vm6393_vm14, %v4218_v38  ;;  %4249 = vmatprep.subr.msk.bf16.mxu1 %vm6394_vm11, %v770_v33  ;;  %vm6399_vm14 = vmmov %vm6398_vm4 }
  0xe6   : > { %4256 = vmatpush1.bf16.msk.msra.mxu0 %vm5196_vm13, %v5205_v5  ;;  %1254 = vmatprep.mubr.bf16.mxu0 %v4846_v0  ;;  %vm6400_vm11 = vmmov %vm6396_vm6 }
  0xe7   : > { %4257 = vmatprep.subr.msk.bf16.mxu0 %vm6395_vm5, %v5190_v57  ;;  %vm6401_vm5 = vmmov %vm6396_vm6 }
  0xe8   : > { %1098 = vmatpush1.bf16.msra.mxu1 %v796_v15 }
  0xe9   : > { %4261 = vmatprep.subr.msk.bf16.mxu1 %vm5231_vm10, %v5247_v34 }
  0xea   : > { %1225 = vmatpush1.bf16.msra.mxu0 %v5238_v23 }
  0xeb   : > { %4269 = vmatprep.subr.msk.bf16.mxu0 %vm5216_vm0, %v5242_v27  ;;  %4250 = vmatmul.mubr.msk.bf16.vlgmr.msra.gmra.mrb[12].mxu1 %vm6396_vm6, %v4218_v38  ;;  %vm6402_vm6 = vmmov %vm6398_vm4 }
  0xec   : > { %4264 = vmatpush1.bf16.msk.msra.mxu1 %vm5251_vm12, %v5256_v36  ;;  %1295 = vmatprep.mubr.bf16.mxu1 %v4846_v0 }
  0xed   : > { %4258 = vmatmul.mubr.msk.bf16.vlgmr.msra.gmra.mrb[16].mxu0 %vm6397_vm8, %v4217_v48  ;;  %4265 = vmatprep.subr.msk.bf16.mxu1 %vm6398_vm4, %v5319_v47  ;;  %vm6403_vm8 = vmmov %vm6401_vm5  ;;  %vm6338_vm4 = vcmask 261120  }
  0xee   : > { %4272 = vmatpush1.bf16.msk.msra.mxu0 %vm5286_vm7, %v5292_v50  ;;  %1336 = vmatprep.mubr.bf16.mxu0 %v4846_v0 }
  0xef   : > { %4273 = vmatprep.subr.msk.bf16.mxu0 %vm6399_vm14, %v5326_v14  ;;  %vm6337_vm14 = vcmask 785408  }
  0xf0   : > { %1266 = vmatpush1.bf16.msra.mxu1 %v784_v37 }
  0xf1   : > { %4277 = vmatprep.subr.msk.bf16.mxu1 %vm5329_vm15, %v5324_v9 }
  0xf2   : > { %1307 = vmatpush1.bf16.msra.mxu0 %v790_v7 }
  0xf3   : > { %4266 = vmatmul.mubr.msk.bf16.vlgmr.msra.gmra.mrb[16].mxu1 %vm6400_vm11, %v4217_v48 }
  0xf4   : > { %4280 = vmatpush1.bf16.msk.msra.mxu1 %vm5346_vm2, %v4213_v62  ;;  %1377 = vmatprep.mubr.bf16.mxu1 %v4846_v0 }
  0xf5   : > { %4274 = vmatmul.mubr.msk.bf16.vlgmr.msra.gmra.mrb[20].mxu0 %vm6401_vm5, %v4217_v48  ;;  %4281 = vmatprep.subr.msk.bf16.mxu1 %vm6402_vm6, %v770_v33 }
  0xf6   : > { %1596 = vmatprep.mubr.bf16.mxu0 %v4846_v0 }
  0xf8   : > { %1348 = vmatpush1.bf16.msra.mxu1 %v796_v15 }
  0xfb   : > { %4282 = vmatmul.mubr.msk.bf16.vlgmr.msra.gmra.mrb[20].mxu1 %vm6403_vm8, %v4217_v48 }
  0xfc   : > { %1637 = vmatprep.mubr.bf16.mxu1 %v4846_v0 }
 0x19e   : > { %v835_v57 = vpop.f32.mrb[0].mxu0 }
 0x19f   : > { %v837_v5 = vpop.f32.mrb[1].mxu0 }
 0x1a0   : > { %v839_v23 = vpop.f32.mrb[2].mxu0 }
 0x1a1   : > { %v840_v27 = vpop.f32.mrb[3].mxu0 }
 0x1a6   : > { %v876_v34 = vpop.f32.mrb[0].mxu1 }
 0x1a7   : > { %1168 = vrot.lane.b32.xlu1 %v876_v34, %s4850_s18  ;;  %v878_v13 = vpop.f32.mrb[1].mxu1 }
 0x1a8   : > { %v917_v36 = vpop.f32.mrb[4].mxu0  ;;  %1170 = vrot.lane.b32.xlu0 %v878_v13, %s4850_s18  ;;  %v880_v40 = vpop.f32.mrb[2].mxu1 }
 0x1a9   : > { %v919_v39 = vpop.f32.mrb[5].mxu0  ;;  %v881_v6 = vpop.f32.mrb[3].mxu1 }
 0x1aa   : > { %v921_v11 = vpop.f32.mrb[6].mxu0 }
 0x1ab   : > { %v922_v44 = vpop.f32.mrb[7].mxu0  ;;  %1164 = vrot.lane.b32.xlu1 %v835_v57, %s4850_s18  ;;  %v5475_v11 = vpop.permute.xlu0 %1472 }
 0x1ae   : > { %v958_v45 = vpop.f32.mrb[4].mxu1 }
 0x1af   : > { %v960_v50 = vpop.f32.mrb[5].mxu1  ;;  %1166 = vrot.lane.b32.xlu1 %v837_v5, %s4850_s18 }
 0x1b0   : > { %v1006_v49 = vpop.f32.mrb[8].mxu0  ;;  %1154 = vrot.lane.b32.xlu0 %v960_v50, %s4850_s18  ;;  %v962_v52 = vpop.f32.mrb[6].mxu1 }
 0x1b1   : > { %v1008_v51 = vpop.f32.mrb[9].mxu0  ;;  %v963_v58 = vpop.f32.mrb[7].mxu1 }
 0x1b2   : > { %v1010_v55 = vpop.f32.mrb[10].mxu0 }
 0x1b3   : > { %v1011_v60 = vpop.f32.mrb[11].mxu0  ;;  %1176 = vrot.lane.b32.xlu1 %v958_v45, %s4850_s18 }
 0x1b4   : > { %1174 = vrot.lane.b32.xlu0 %v919_v39, %s4850_s18  ;;  %v5471_v39 = vpop.permute.xlu1 %1485 }
 0x1b6   : > { %v1047_v61 = vpop.f32.mrb[8].mxu1 }
 0x1b7   : > { %v1049_v63 = vpop.f32.mrb[9].mxu1 }
 0x1b8   : > { %v1088_v12 = vpop.f32.mrb[12].mxu0  ;;  %v1051_v46 = vpop.f32.mrb[10].mxu1  ;;  %1408 = vrot.lane.b32.xlu1 %v1049_v63, %s4851_s29  ;;  %1406 = vrot.lane.b32.xlu0 %v1047_v61, %s4851_s29 }
 0x1b9   : > { %v1090_v25 = vpop.f32.mrb[13].mxu0  ;;  %v1052_v53 = vpop.f32.mrb[11].mxu1 }
 0x1ba   : > { %v1092_v47 = vpop.f32.mrb[14].mxu0  ;;  %v5473_v40 = vpop.permute.xlu1 %1507 }
 0x1bb   : > { %v1093_v9 = vpop.f32.mrb[15].mxu0 }
 0x1bc   : > { %1404 = vrot.lane.b32.xlu1 %v1008_v51, %s4851_s29  ;;  %1410 = vrot.lane.b32.xlu0 %v1088_v12, %s4851_s29  ;;  %v5480_v51 = vand.u32 127, %v623_v20 }
 0x1be   : > { %v1129_v10 = vpop.f32.mrb[12].mxu1  ;;  %vm6334_vm11 = vcmp.ge.s32.totalorder %v5480_v51, 32 }
 0x1bf   : > { %v1131_v16 = vpop.f32.mrb[13].mxu1 }
 0x1c0   : > { %v1256_v14 = vpop.f32.mrb[16].mxu0  ;;  %1414 = vrot.lane.b32.xlu1 %v1129_v10, %s4851_s29  ;;  %1402 = vrot.lane.b32.xlu0 %v1006_v49, %s4851_s29  ;;  %v1133_v37 = vpop.f32.mrb[14].mxu1 }
 0x1c1   : > { %v1258_v32 = vpop.f32.mrb[17].mxu0  ;;  %v1134_v21 = vpop.f32.mrb[15].mxu1 }
 0x1c2   : > { %v1260_v7 = vpop.f32.mrb[18].mxu0 }
 0x1c3   : > { %v1261_v24 = vpop.f32.mrb[19].mxu0 }
 0x1c4   : > { %1416 = vrot.lane.b32.xlu0 %v1131_v16, %s4851_s29  ;;  %1412 = vrot.lane.b32.xlu1 %v1090_v25, %s4851_s29 }
 0x1c6   : > { %v1297_v62 = vpop.f32.mrb[16].mxu1 }
 0x1c7   : > { %v1299_v33 = vpop.f32.mrb[17].mxu1 }
 0x1c8   : > { %v5466_v30 = vpop.f32.mrb[20].mxu0  ;;  %1172 = vrot.lane.b32.xlu0 %v917_v36, %s4850_s18  ;;  %v1301_v38 = vpop.f32.mrb[18].mxu1 }
 0x1c9   : > { %v5468_v15 = vpop.f32.mrb[21].mxu0  ;;  %v1302_v57 = vpop.f32.mrb[19].mxu1 }
 0x1ca   : > { %v1342_v48 = vpop.f32.mrb[22].mxu0  ;;  %v5500_v57 = vadd.s32 896, %v5480_v51 }
 0x1cb   : > { %v1343_v5 = vpop.f32.mrb[23].mxu0 }
 0x1cc   : > { %vm6336_vm6 = vcmp.lt.s32.totalorder %v5500_v57, 992 }
 0x1ce   : > { %v1379_v23 = vpop.f32.mrb[20].mxu1 }
 0x1cf   : > { %v1381_v27 = vpop.f32.mrb[21].mxu1 }
 0x1d0   : > { %v1383_v34 = vpop.f32.mrb[22].mxu1 }
 0x1d1   : > { %v1384_v13 = vpop.f32.mrb[23].mxu1 }
 0x219   : > { %v1169_v6 = vpop.permute.xlu1 %1168 }
 0x21a   : > { %v5477_v45 = vpop.permute.xlu0 %1170 }
 0x21b   : > { %v1181_v12 = vsel %vm6338_vm4, %v1169_v6, %v5477_v45 }
 0x21c   : > { %v1300_v47 = vadd.f32 %v1299_v33, %v1181_v12 }
 0x21d   : > { %v1165_v44 = vpop.permute.xlu1 %1164 }
 0x221   : > { %v1167_v49 = vpop.permute.xlu1 %1166 }
 0x222   : > { %v1155_v36 = vpop.permute.xlu0 %1154  ;;  %v1180_v55 = vsel %vm6338_vm4, %v1167_v49, %v1169_v6  ;;  %v1179_v25 = vsel %vm6338_vm4, %v1165_v44, %v1167_v49 }
 0x223   : > { %v1298_v58 = vadd.f32 %v1297_v62, %v1180_v55  ;;  %v1194_v63 = vsel %vm6338_vm4, %v1155_v36, %v1165_v44  ;;  %v1259_v9 = vadd.f32 %v1258_v32, %v1179_v25 }
 0x224   : > { %v1211_v53 = vsel %vm6334_vm11, %v1194_v63, 0.0  ;;  %vm6339_vm11 = vcmask 64512  }
 0x225   : > { %v1177_v50 = vpop.permute.xlu1 %1176  ;;  %v1257_v48 = vadd.f32 %v1256_v14, %v1211_v53 }
 0x226   : > { %v5482_v52 = vpop.permute.xlu0 %1174  ;;  %v1185_v44 = vsel %vm6338_vm4, %v1177_v50, %v1155_v36 }
 0x227   : > { %v1184_v33 = vsel %vm6338_vm4, %v5482_v52, %v1177_v50  ;;  %v1382_v36 = vadd.f32 %v1381_v27, %v1185_v44 }
 0x22a   : > { %v1409_v60 = vpop.permute.xlu1 %1408  ;;  %v1407_v61 = vpop.permute.xlu0 %1406 }
 0x22b   : > { %v1421_v20 = vsel %vm6337_vm14, %v1407_v61, %v1409_v60 }
 0x22c   : > { %v1462_v46 = vadd.f32 %v1421_v20, %v1298_v58 }
 0x22e   : > { %v1477_v10 = vmul.f32 %v5475_v11, %v1462_v46  ;;  %v1405_v16 = vpop.permute.xlu1 %1404  ;;  %v1411_v37 = vpop.permute.xlu0 %1410 }
 0x22f   : > { %v1420_v7 = vsel %vm6337_vm14, %v1405_v16, %v1407_v61  ;;  %v1422_v21 = vsel %vm6337_vm14, %v1409_v60, %v1411_v37  ;;  %v1380_v61 = vadd.f32 %v1379_v23, %v1184_v33 }
 0x230   : > { %v1490_v24 = vadd.f32 %v5471_v39, %v1477_v10  ;;  %v1461_v62 = vadd.f32 %v1420_v7, %v1259_v9  ;;  %v1463_v38 = vadd.f32 %v1422_v21, %v1300_v47 }
 0x232   : > { %v1476_v32 = vmul.f32 %v5475_v11, %v1461_v62  ;;  %v1478_v5 = vmul.f32 %v5475_v11, %v1463_v38  ;;  %v1415_v34 = vpop.permute.xlu1 %1414  ;;  %v1403_v13 = vpop.permute.xlu0 %1402  ;;  %vm1499_vm5 = vcmp.ge.f32.partialorder %v1490_v24, 0.0  ;;  %v1512_v6 = vmul.f32 %v5473_v40, %v1490_v24 }
 0x233   : > { %v1419_v49 = vsel %vm6337_vm14, %v1403_v13, %v1405_v16 }
 0x234   : > { %v1489_v14 = vadd.f32 %v5471_v39, %v1476_v32  ;;  %v1491_v55 = vadd.f32 %v5471_v39, %v1478_v5  ;;  %v1460_v58 = vadd.f32 %v1419_v49, %v1257_v48  ;;  %v1520_v60 = vsel %vm1499_vm5, %v1490_v24, %v1512_v6 }
 0x235   : > { %v1530_v53 = vpack.c.bf16 %v1520_v60, %v1520_v60 }
 0x236   : > { %v1511_v12 = vmul.f32 %v5473_v40, %v1489_v14  ;;  %v1513_v63 = vmul.f32 %v5473_v40, %v1491_v55  ;;  %v1475_v25 = vmul.f32 %v5475_v11, %v1460_v58  ;;  %v1417_v20 = vpop.permute.xlu0 %1416  ;;  %v1413_v46 = vpop.permute.xlu1 %1412  ;;  %vm1498_vm8 = vcmp.ge.f32.partialorder %v1489_v14, 0.0 }
 0x237   : > { %v1425_v50 = vsel %vm6337_vm14, %v1415_v34, %v1417_v20  ;;  %v1435_v47 = vsel %vm6337_vm14, %v1417_v20, %v1403_v13  ;;  %v1423_v21 = vsel %vm6337_vm14, %v1411_v37, %v1413_v46  ;;  %vm1500_vm5 = vcmp.ge.f32.partialorder %v1491_v55, 0.0 }
 0x238   : > { %v1488_v23 = vadd.f32 %v5471_v39, %v1475_v25  ;;  %v1459_v9 = vsel %vm6336_vm6, %v1435_v47, 0.0  ;;  %v1466_v10 = vadd.f32 %v1425_v50, %v1380_v61  ;;  %v1519_v16 = vsel %vm1498_vm8, %v1489_v14, %v1511_v12 }
 0x239   : > { %v1467_v7 = vadd.f32 %v1459_v9, %v1382_v36  ;;  %v5519_v24 = vpack.c.bf16 %v1519_v16, %v1519_v16  ;;  %v1521_v38 = vsel %vm1500_vm5, %v1491_v55, %v1513_v63  ;;  %vm6404_vm8 = vcmask 1043456  }
 0x23a   : > { %v1481_v27 = vmul.f32 %v5475_v11, %v1466_v10  ;;  %v1173_v62 = vpop.permute.xlu0 %1172  ;;  %vm1497_vm1 = vcmp.ge.f32.partialorder %v1488_v23, 0.0  ;;  %v1510_v48 = vmul.f32 %v5473_v40, %v1488_v23  ;;  %v5530_v37 = vpack.c.bf16 %v1521_v38, %v1521_v38  ;;  %vm6405_vm5 = vmmov %vm6404_vm8 }
 0x23b   : > { %v1482_v33 = vmul.f32 %v5475_v11, %v1467_v7  ;;  %v1182_v32 = vsel %vm6338_vm4, %v5477_v45, %v1173_v62  ;;  %v1183_v5 = vsel %vm6338_vm4, %v1173_v62, %v5482_v52  ;;  %4283 = vmatprep.subr.msk.bf16.mxu0 %vm6404_vm8, %v5519_v24  ;;  %v1424_v55 = vsel %vm6337_vm14, %v1413_v46, %v1415_v34  ;;  %vm6406_vm6 = vmmov %vm6405_vm5 }
 0x23c   : > { %v1494_v13 = vadd.f32 %v5471_v39, %v1481_v27  ;;  %v1339_v6 = vadd.f32 %v5466_v30, %v1182_v32  ;;  %v1341_v44 = vadd.f32 %v5468_v15, %v1183_v5  ;;  %v1518_v49 = vsel %vm1497_vm1, %v1488_v23, %v1510_v48  ;;  %4285 = vmatprep.subr.msk.bf16.mxu1 %vm6405_vm5, %v5530_v37  ;;  %v1527_v30 = vld [vmem:[%s6304_s7] sm:$0xf]  ;;  %vm6407_vm8 = vmmov %vm6405_vm5 }
 0x23d   : > { %v1495_v14 = vadd.f32 %v5471_v39, %v1482_v33  ;;  %v5540_v45 = vsel %vm6406_vm6, %v1530_v53, 0  ;;  %v1528_v52 = vpack.c.bf16 %v1518_v49, %v1518_v49  ;;  %v5557_v36 = vcombine.high %v5064_v2, %v5064_v2  ;;  %vm6408_vm6 = vmmov %vm6405_vm5  ;;  %v1526_v32 = vld [vmem:[%s6303_s6] sm:$0xf] }
 0x23e   : > { %v1464_v58 = vadd.f32 %v1423_v21, %v1339_v6  ;;  %v1465_v60 = vadd.f32 %v1424_v55, %v1341_v44  ;;  %1606 = vmatpush1.bf16.msra.mxu1 %v5540_v45  ;;  %vm1503_vm1 = vcmp.ge.f32.partialorder %v1494_v13, 0.0  ;;  %v1516_v15 = vmul.f32 %v5473_v40, %v1494_v13 }
 0x23f   : > { %v5548_v34 = vsel %vm6407_vm8, %v1528_v52, 0  ;;  %vm1504_vm14 = vcmp.ge.f32.partialorder %v1495_v14, 0.0  ;;  %v1517_v61 = vmul.f32 %v5473_v40, %v1495_v14  ;;  %vm6410_vm8 = vmmov %vm6408_vm6  ;;  %v5585_v27 = vcombine.high %v5062_v1, %v5062_v1 }
 0x240   : > { %v1479_v12 = vmul.f32 %v5475_v11, %v1464_v58  ;;  %v1480_v63 = vmul.f32 %v5475_v11, %v1465_v60  ;;  %1565 = vmatpush1.bf16.msra.mxu0 %v5548_v34  ;;  %v1524_v25 = vsel %vm1503_vm1, %v1494_v13, %v1516_v15  ;;  %v4293_v11 = vcombine.low %v5064_v2, %v5064_v2 }
 0x241   : > { %4286 = vmatmul.mubr.msk.bf16.vlgmr.msra.gmra.mrb[24].mxu1 %vm6339_vm11, %v1527_v30  ;;  %v1525_v20 = vsel %vm1504_vm14, %v1495_v14, %v1517_v61  ;;  %v1534_v46 = vpack.c.bf16 %v1524_v25, %v1524_v25  ;;  %vm6409_vm14 = vmmov %vm6405_vm5  ;;  %v5591_v62 = vcombine.high %v5066_v3, %v5066_v3  ;;  %v4297_v48 = vcombine.low %v5066_v3, %v5066_v3 }
 0x242   : > { %v1492_v50 = vadd.f32 %v5471_v39, %v1479_v12  ;;  %v1493_v47 = vadd.f32 %v5471_v39, %v1480_v63  ;;  %v5561_v53 = vpack.c.bf16 %v1525_v20, %v1525_v20  ;;  %1719 = vmatprep.mubr.bf16.mxu1 %v4846_v0  ;;  %v5579_v16 = vsel %vm6408_vm6, %v4293_v11, 0 }
 0x243   : > { %4284 = vmatmul.mubr.msk.bf16.vlgmr.msra.gmra.mrb[24].mxu0 %vm6339_vm11, %v1527_v30  ;;  %v5568_v23 = vsel %vm6408_vm6, %v1534_v46, 0  ;;  %v5611_v33 = vcombine.high %v5076_v8, %v5076_v8  ;;  %v4295_v3 = vcombine.low %v5076_v8, %v5076_v8  ;;  %vm6432_vm4 = vcmp.eq.s32.totalorder %v5225_v19, 1 }
 0x244   : > { %4289 = vmatprep.subr.msk.bf16.mxu1 %vm6409_vm14, %v5561_v53  ;;  %vm1502_vm5 = vcmp.ge.f32.partialorder %v1493_v47, 0.0  ;;  %v1515_v9 = vmul.f32 %v5473_v40, %v1493_v47  ;;  %vm1501_vm1 = vcmp.ge.f32.partialorder %v1492_v50, 0.0  ;;  %v1514_v39 = vmul.f32 %v5473_v40, %v1492_v50  ;;  %1678 = vmatprep.mubr.bf16.mxu0 %v4846_v0  ;;  %vm6411_vm14 = vmmov %vm6408_vm6 }
 0x245   : > { %1688 = vmatpush1.bf16.msra.mxu1 %v5568_v23  ;;  %v4291_v40 = vcombine.low %v5062_v1, %v5062_v1 }
 0x246   : > { %v1523_v10 = vsel %vm1502_vm5, %v1493_v47, %v1515_v9  ;;  %v1522_v2 = vsel %vm1501_vm1, %v1492_v50, %v1514_v39  ;;  %4301 = vmatprep.subr.msk.bf16.mxu1 %vm6410_vm8, %v5557_v36  ;;  %vm6412_vm5 = vmmov %vm6408_vm6  ;;  %v2681_v9 = vld [vmem:[%s6306_s9] sm:$0xff] }
 0x247   : > { %v5581_v7 = vpack.c.bf16 %v1523_v10, %v1523_v10  ;;  %v1532_v21 = vpack.c.bf16 %v1522_v2, %v1522_v2  ;;  %vm6413_vm1 = vmmov %vm6412_vm5 }
 0x248   : > { %vm6414_vm8 = vmmov %vm6413_vm1  ;;  %v5632_v13 = vsel %vm6413_vm1, %v4295_v3, 0 }
 0x249   : > { %4290 = vmatmul.mubr.msk.bf16.vlgmr.msra.gmra.mrb[28].mxu1 %vm6339_vm11, %v1527_v30  ;;  %4287 = vmatprep.subr.msk.bf16.mxu0 %vm6411_vm14, %v5581_v7  ;;  %v5597_v38 = vsel %vm6412_vm5, %v1532_v21, 0  ;;  %v5605_v1 = vsel %vm6414_vm8, %v4291_v40, 0  ;;  %vm6415_vm6 = vmmov %vm6413_vm1  ;;  %vm6418_vm8 = vcmask 1039360  }
 0x24a   : > { %1647 = vmatpush1.bf16.msra.mxu0 %v5597_v38  ;;  %1817 = vmatpush1.bf16.msra.mxu1 %v5579_v16  ;;  %vm6416_vm14 = vmmov %vm6413_vm1 }
 0x24b   : > { %1848 = vmatprep.mubr.bf16.mxu1 %v4846_v0  ;;  %4299 = vmatprep.subr.msk.bf16.mxu0 %vm6413_vm1, %v5585_v27  ;;  %v5622_v5 = vsel %vm6416_vm14, %v4297_v48, 0  ;;  %vm6417_vm5 = vmmov %vm6413_vm1 }
 0x24c   : > { %4305 = vmatprep.subr.msk.bf16.mxu1 %vm6415_vm6, %v5591_v62  ;;  %vm6419_vm6 = vcmp.eq.s32.totalorder %v5137_v28, 1  ;;  %vm6420_vm14 = vmmov %vm6418_vm8 }
 0x24d   : > { %4288 = vmatmul.mubr.msk.bf16.vlgmr.msra.gmra.mrb[28].mxu0 %vm6339_vm11, %v1527_v30 }
 0x24e   : > { %1776 = vmatpush1.bf16.msra.mxu0 %v5605_v1  ;;  %1807 = vmatprep.mubr.bf16.mxu0 %v4846_v0 }
 0x24f   : > { %4303 = vmatprep.subr.msk.bf16.mxu0 %vm6417_vm5, %v5611_v33  ;;  %vm6421_vm5 = vcmp.eq.s32.totalorder %v5142_v31, 1 }
 0x251   : > { %4302 = vmatmul.mubr.msk.bf16.vlgmr.msra.gmra.mrb[24].mxu1 %vm6339_vm11, %v1526_v32 }
 0x252   : > { %1899 = vmatpush1.bf16.msra.mxu1 %v5622_v5  ;;  %1930 = vmatprep.mubr.bf16.mxu1 %v4846_v0 }
 0x255   : > { %4300 = vmatmul.mubr.msk.bf16.vlgmr.msra.gmra.mrb[24].mxu0 %vm6339_vm11, %v1526_v32 }
 0x256   : > { %1858 = vmatpush1.bf16.msra.mxu0 %v5632_v13  ;;  %1889 = vmatprep.mubr.bf16.mxu0 %v4846_v0 }
 0x259   : > { %4306 = vmatmul.mubr.msk.bf16.vlgmr.msra.gmra.mrb[28].mxu1 %vm6339_vm11, %v1526_v32 }
 0x25a   : > { %2146 = vmatprep.mubr.bf16.mxu1 %v4846_v0 }
 0x25d   : > { %4304 = vmatmul.mubr.msk.bf16.vlgmr.msra.gmra.mrb[28].mxu0 %vm6339_vm11, %v1526_v32 }
 0x25e   : > { %2105 = vmatprep.mubr.bf16.mxu0 %v4846_v0 }
 0x324   : > { %v1850_v8 = vpop.f32.mrb[24].mxu1 }
 0x325   : > { %v1852_v6 = vpop.f32.mrb[25].mxu1 }
 0x326   : > { %v1854_v44 = vpop.f32.mrb[26].mxu1 }
 0x327   : > { %v1855_v49 = vpop.f32.mrb[27].mxu1 }
 0x328   : > { %v1809_v14 = vpop.f32.mrb[24].mxu0 }
 0x329   : > { %v1811_v55 = vpop.f32.mrb[25].mxu0 }
 0x32a   : > { %v4679_v52 = vpack.i.bf16 %v1811_v55, %v1809_v14  ;;  %v1813_v58 = vpop.f32.mrb[26].mxu0 }
 0x32b   : > { %v1814_v60 = vpop.f32.mrb[27].mxu0 }
 0x32c   : > { %v5641_v30 = vpop.f32.mrb[28].mxu1  ;;  %4675 = vrot.lane.b32.xlu0 %v4679_v52, %s4848_s28 }
 0x32d   : > { %v5644_v15 = vpop.f32.mrb[29].mxu1 }
 0x32e   : > { %v4684_v61 = vpack.i.bf16 %v1850_v8, %v5644_v15  ;;  %v1936_v12 = vpop.f32.mrb[30].mxu1 }
 0x32f   : > { %v1937_v63 = vpop.f32.mrb[31].mxu1 }
 0x330   : > { %4685 = vrot.lane.b32.xlu1 %v4684_v61, %s4848_s28  ;;  %4680 = vrot.lane.b32.xlu0 %v4679_v52, %s4847_s16  ;;  %v1891_v25 = vpop.f32.mrb[28].mxu0 }
 0x331   : > { %v4694_v20 = vpack.i.bf16 %v1891_v25, %v1852_v6  ;;  %v1893_v46 = vpop.f32.mrb[29].mxu0 }
 0x332   : > { %v4699_v50 = vpack.i.bf16 %v5641_v30, %v1893_v46  ;;  %v1895_v47 = vpop.f32.mrb[30].mxu0 }
 0x333   : > { %v1896_v11 = vpop.f32.mrb[31].mxu0 }
 0x334   : > { %1992 = vrot.lane.b32.xlu1 %v1850_v8, %s4847_s16  ;;  %4690 = vrot.lane.b32.xlu0 %v4694_v20, %s4848_s28 }
 0x338   : > { %1960 = vrot.lane.b32.xlu1 %v1893_v46, %s4848_s28  ;;  %4695 = vrot.lane.b32.xlu0 %v4694_v20, %s4847_s16 }
 0x33c   : > { %4700 = vrot.lane.b32.xlu1 %v4699_v50, %s4847_s16  ;;  %1962 = vrot.lane.b32.xlu0 %v5641_v30, %s4848_s28 }
 0x340   : > { %2002 = vrot.lane.b32.xlu1 %v5644_v15, %s4847_s16  ;;  %2692 = vperm.xlu0 %4672, %v2681_v9  }
 0x39e   : > { %v4676_v39 = vpop.permute.xlu0 %4675 }
 0x39f   : > { %v4678_v10 = vunpack.i.h.bf16 %v4676_v39  ;;  %v4677_v2 = vunpack.i.l.bf16 %v4676_v39 }
 0x3a1   : > { %v1964_v21 = vsel %vm6340_vm3, %v4677_v2, %v4678_v10 }
 0x3a2   : > { %v5663_v40 = vpack.c.bf16 %v1811_v55, %v1964_v21  ;;  %v4686_v48 = vpop.permute.xlu1 %4685  ;;  %v5665_v32 = vpop.permute.xlu0 %4680 }
 0x3a3   : > { %v4688_v3 = vunpack.i.h.bf16 %v4686_v48  ;;  %v4687_v44 = vunpack.i.l.bf16 %v4686_v48  ;;  %v4683_v49 = vunpack.i.h.bf16 %v5665_v32  ;;  %v4682_v52 = vunpack.i.l.bf16 %v5665_v32 }
 0x3a4   : > { %4309 = vmatprep.subr.msk.bf16.mxu0 %vm5155_vm9, %v5663_v40 }
 0x3a5   : > { %v1979_v58 = vsel %vm6340_vm3, %v4687_v44, %v4677_v2  ;;  %v2004_v60 = vsel %vm6418_vm8, %v4682_v52, %v4683_v49  ;;  %v1965_v55 = vsel %vm6340_vm3, %v4678_v10, %v4688_v3  ;;  %vm6422_vm8 = vmmov %vm6413_vm1 }
 0x3a6   : > { %v5675_v61 = vpack.c.bf16 %v1809_v14, %v1979_v58  ;;  %v1993_v12 = vpop.permute.xlu1 %1992  ;;  %v4691_v63 = vpop.permute.xlu0 %4690  ;;  %v2021_v20 = vsel %vm6419_vm6, %v2004_v60, 0.0  ;;  %v5691_v21 = vpack.c.bf16 %v1850_v8, %v1965_v55  ;;  %v2045_v8 = vld [vmem:[%s6305_s8] sm:$0xf]  ;;  %vm6423_vm6 = vmmov %vm6420_vm14 }
 0x3a7   : > { %v2005_v50 = vsel %vm6420_vm14, %v4683_v49, %v1993_v12  ;;  %v4693_v47 = vunpack.i.h.bf16 %v4691_v63  ;;  %v4692_v11 = vunpack.i.l.bf16 %v4691_v63  ;;  %v2037_v9 = vpack.c.bf16 %v2021_v20, %v2021_v20  ;;  %vm6424_vm14 = vmmov %vm6423_vm6 }
 0x3a8   : > { %v2022_v39 = vsel %vm6421_vm5, %v2005_v50, 0.0  ;;  %4312 = vmatpush1.bf16.msk.msra.mxu0 %vm5196_vm13, %v5675_v61  ;;  %vm6425_vm5 = vcmp.eq.s32.totalorder %v5188_v56, 1  ;;  %vm6433_vm11 = vmmov %vm6423_vm6 }
 0x3a9   : > { %v5685_v10 = vpack.c.bf16 %v2022_v39, %v2022_v39  ;;  %v1966_v14 = vsel %vm6340_vm3, %v4688_v3, %v4692_v11  ;;  %v5689_v2 = vsel %vm6413_vm1, %v2037_v9, 0  ;;  %v1967_v58 = vsel %vm6340_vm3, %v4692_v11, %v4693_v47 }
 0x3aa   : > { %v5693_v48 = vpack.c.bf16 %v1852_v6, %v1966_v14  ;;  %v1961_v32 = vpop.permute.xlu1 %1960  ;;  %v4696_v49 = vpop.permute.xlu0 %4695  ;;  %vm6426_vm1 = vcmp.eq.s32.totalorder %v5222_v18, 1 }
 0x3ab   : > { %v1968_v60 = vsel %vm6340_vm3, %v4693_v47, %v1961_v32  ;;  %4313 = vmatprep.subr.msk.bf16.mxu0 %vm6422_vm8, %v5685_v10  ;;  %v4698_v63 = vunpack.i.h.bf16 %v4696_v49  ;;  %v4697_v20 = vunpack.i.l.bf16 %v4696_v49  ;;  %vm6427_vm8 = vcmask 195584  }
 0x3ac   : > { %v5699_v50 = vpack.c.bf16 %v1893_v46, %v1968_v60  ;;  %2076 = vmatpush1.bf16.msra.mxu0 %v5689_v2  ;;  %4317 = vmatprep.subr.msk.bf16.mxu1 %vm5231_vm10, %v5693_v48  ;;  %v5713_v46 = vpack.c.bf16 %v1891_v25, %v1967_v58 }
 0x3ad   : > { %v2006_v6 = vsel %vm6423_vm6, %v1993_v12, %v4697_v20  ;;  %v2007_v3 = vsel %vm6424_vm14, %v4697_v20, %v4698_v63  ;;  %4320 = vmatpush1.bf16.msk.msra.mxu1 %vm5251_vm12, %v5691_v21  ;;  %vm6428_vm14 = vmmov %vm6423_vm6 }
 0x3ae   : > { %v2024_v55 = vsel %vm6425_vm5, %v2007_v3, 0.0  ;;  %4325 = vmatprep.subr.msk.bf16.mxu0 %vm5216_vm0, %v5699_v50  ;;  %v4701_v47 = vpop.permute.xlu1 %4700  ;;  %v1963_v11 = vpop.permute.xlu0 %1962  ;;  %v2023_v12 = vsel %vm6426_vm1, %v2006_v6, 0.0  ;;  %vm6429_vm5 = vcmp.eq.s32.totalorder %v5180_v54, 1  ;;  %vm6430_vm1 = vcmask 1043456  }
 0x3af   : > { %v4703_v9 = vunpack.i.h.bf16 %v4701_v47  ;;  %v4702_v39 = vunpack.i.l.bf16 %v4701_v47  ;;  %v1970_v14 = vsel %vm6340_vm3, %v1963_v11, %v4687_v44  ;;  %4314 = vmatmul.mubr.msk.bf16.vlgmr.msra.gmra.mrb[32].mxu0 %vm6427_vm8, %v2045_v8  ;;  %v5730_v49 = vpack.c.bf16 %v2024_v55, %v2024_v55  ;;  %vm6431_vm8 = vmmov %vm6430_vm1 }
 0x3b0   : > { %v5725_v25 = vpack.c.bf16 %v5644_v15, %v1970_v14  ;;  %4328 = vmatpush1.bf16.msk.msra.mxu0 %vm5286_vm7, %v5713_v46  ;;  %v2039_v58 = vpack.c.bf16 %v2023_v12, %v2023_v12  ;;  %2187 = vmatprep.mubr.bf16.mxu0 %v4846_v0  ;;  %v1969_v6 = vsel %vm6340_vm3, %v1961_v32, %v1963_v11 }
 0x3b1   : > { %v2008_v60 = vsel %vm6423_vm6, %v4698_v63, %v4702_v39  ;;  %v2009_v20 = vsel %vm6428_vm14, %v4702_v39, %v4703_v9  ;;  %4321 = vmatprep.subr.msk.bf16.mxu1 %vm6430_vm1, %v5730_v49  ;;  %vm6434_vm14 = vcmp.eq.s32.totalorder %v5264_v41, 1  ;;  %v4335_v11 = vpack.c.bf16 %v5641_v30, %v1969_v6 }
 0x3b2   : > { %v2026_v44 = vsel %vm6429_vm5, %v2009_v20, 0.0  ;;  %v2003_v15 = vpop.permute.xlu1 %2002  ;;  %v2056_v3 = vsel %vm6431_vm8, %v2039_v58, 0  ;;  %v2025_v55 = vsel %vm6432_vm4, %v2008_v60, 0.0  ;;  %vm6435_vm5 = vcmp.eq.s32.totalorder %v5267_v43, 1  ;;  %vm6436_vm4 = vmmov %vm6430_vm1  ;;  %v4340_v60 = vld [vmem:[%s6305_s8 + $0x8] sm:$0xf] }
 0x3b3   : > { %v2010_v63 = vsel %vm6433_vm11, %v4703_v9, %v2003_v15  ;;  %v2020_v47 = vsel %vm6423_vm6, %v2003_v15, %v4682_v52  ;;  %2117 = vmatpush1.bf16.msra.mxu1 %v2056_v3  ;;  %v2042_v12 = vpack.c.bf16 %v2026_v44, %v2026_v44  ;;  %v2041_v39 = vpack.c.bf16 %v2025_v55, %v2025_v55  ;;  %vm6437_vm11 = vmmov %vm6430_vm1 }
 0x3b4   : > { %v2027_v14 = vsel %vm6434_vm14, %v2010_v63, 0.0  ;;  %v2028_v32 = vsel %vm6435_vm5, %v2020_v47, 0.0  ;;  %4333 = vmatprep.subr.msk.bf16.mxu1 %vm5329_vm15, %v5725_v25  ;;  %vm6438_vm1 = vcmask 195584   ;;  %vm6439_vm8 = vmmov %vm6436_vm4 }
 0x3b5   : > { %v2044_v58 = vpack.c.bf16 %v2028_v32, %v2028_v32  ;;  %4329 = vmatprep.subr.msk.bf16.mxu0 %vm6436_vm4, %v2042_v12  ;;  %v2062_v52 = vsel %vm6437_vm11, %v2041_v39, 0  ;;  %v2043_v9 = vpack.c.bf16 %v2027_v14, %v2027_v14  ;;  %vm6440_vm6 = vmmov %vm6438_vm1 }
 0x3b6   : > { %4322 = vmatmul.mubr.msk.bf16.vlgmr.msra.gmra.mrb[32].mxu1 %vm6438_vm1, %v2045_v8  ;;  %2158 = vmatpush1.bf16.msra.mxu0 %v2062_v52  ;;  %vm6441_vm14 = vmmov %vm6436_vm4 }
 0x3b7   : > { %4336 = vmatpush1.bf16.msk.msra.mxu1 %vm5346_vm2, %v4335_v11  ;;  %4343 = vmatprep.subr.msk.bf16.mxu0 %vm5155_vm9, %v5663_v40  ;;  %v2068_v30 = vsel %vm6441_vm14, %v2043_v9, 0  ;;  %vm6442_vm5 = vmmov %vm6436_vm4 }
 0x3b8   : > { %4337 = vmatprep.subr.msk.bf16.mxu1 %vm6439_vm8, %v2044_v58  ;;  %2228 = vmatprep.mubr.bf16.mxu1 %v4846_v0  ;;  %vm6443_vm4 = vmmov %vm6438_vm1 }
 0x3b9   : > { %4330 = vmatmul.mubr.msk.bf16.vlgmr.msra.gmra.mrb[36].mxu0 %vm6440_vm6, %v2045_v8  ;;  %vm6444_vm11 = vmmov %vm6442_vm5 }
 0x3ba   : > { %4346 = vmatpush1.bf16.msk.msra.mxu0 %vm5196_vm13, %v5675_v61  ;;  %2276 = vmatprep.mubr.bf16.mxu0 %v4846_v0  ;;  %vm6445_vm8 = vmmov %vm6442_vm5 }
 0x3bb   : > { %2199 = vmatpush1.bf16.msra.mxu1 %v2068_v30  ;;  %4347 = vmatprep.subr.msk.bf16.mxu0 %vm6442_vm5, %v5685_v10  ;;  %vm6446_vm6 = vmmov %vm6438_vm1 }
 0x3bc   : > { %4351 = vmatprep.subr.msk.bf16.mxu1 %vm5231_vm10, %v5693_v48  ;;  %vm6447_vm14 = vmmov %vm6442_vm5 }
 0x3bd   : > { %vm6448_vm5 = vmmov %vm6438_vm1 }
 0x3be   : > { %4338 = vmatmul.mubr.msk.bf16.vlgmr.msra.gmra.mrb[36].mxu1 %vm6443_vm4, %v2045_v8  ;;  %2247 = vmatpush1.bf16.msra.mxu0 %v5689_v2  ;;  %vm6449_vm4 = vmmov %vm6445_vm8 }
 0x3bf   : > { %4354 = vmatpush1.bf16.msk.msra.mxu1 %vm5251_vm12, %v5691_v21  ;;  %4359 = vmatprep.subr.msk.bf16.mxu0 %vm5216_vm0, %v5699_v50 }
 0x3c0   : > { %4355 = vmatprep.subr.msk.bf16.mxu1 %vm6444_vm11, %v5730_v49  ;;  %2317 = vmatprep.mubr.bf16.mxu1 %v4846_v0  ;;  %vm6450_vm11 = vmmov %vm6438_vm1 }
 0x3c1   : > { %4348 = vmatmul.mubr.msk.bf16.vlgmr.msra.gmra.mrb[40].mxu0 %vm6438_vm1, %v4340_v60  ;;  %vm6451_vm1 = vmmov %vm6449_vm4 }
 0x3c2   : > { %4362 = vmatpush1.bf16.msk.msra.mxu0 %vm5286_vm7, %v5713_v46  ;;  %2358 = vmatprep.mubr.bf16.mxu0 %v4846_v0 }
 0x3c3   : > { %2288 = vmatpush1.bf16.msra.mxu1 %v2056_v3  ;;  %4363 = vmatprep.subr.msk.bf16.mxu0 %vm6445_vm8, %v2042_v12  ;;  %vm6452_vm8 = vmmov %vm6448_vm5 }
 0x3c4   : > { %4367 = vmatprep.subr.msk.bf16.mxu1 %vm5329_vm15, %v5725_v25 }
 0x3c6   : > { %4356 = vmatmul.mubr.msk.bf16.vlgmr.msra.gmra.mrb[40].mxu1 %vm6446_vm6, %v4340_v60  ;;  %2329 = vmatpush1.bf16.msra.mxu0 %v2062_v52  ;;  %vm6453_vm6 = vmmov %vm6451_vm1 }
 0x3c7   : > { %4370 = vmatpush1.bf16.msk.msra.mxu1 %vm5346_vm2, %v4335_v11  ;;  %4375 = vmatprep.subr.msk.bf16.mxu0 %vm5155_vm9, %v5663_v40  ;;  %v4339_v40 = vld [vmem:[%s6305_s8 + $0x4] sm:$0xf] }
 0x3c8   : > { %4371 = vmatprep.subr.msk.bf16.mxu1 %vm6447_vm14, %v2044_v58  ;;  %2399 = vmatprep.mubr.bf16.mxu1 %v4846_v0  ;;  %vm6454_vm14 = vmmov %vm6448_vm5 }
 0x3c9   : > { %4364 = vmatmul.mubr.msk.bf16.vlgmr.msra.gmra.mrb[44].mxu0 %vm6448_vm5, %v4340_v60  ;;  %vm6455_vm5 = vmmov %vm6451_vm1 }
 0x3ca   : > { %4378 = vmatpush1.bf16.msk.msra.mxu0 %vm5196_vm13, %v5675_v61  ;;  %2492 = vmatprep.mubr.bf16.mxu0 %v4846_v0 }
 0x3cb   : > { %2370 = vmatpush1.bf16.msra.mxu1 %v2068_v30  ;;  %4379 = vmatprep.subr.msk.bf16.mxu0 %vm6449_vm4, %v5685_v10  ;;  %vm6456_vm4 = vmmov %vm6451_vm1 }
 0x3cc   : > { %4383 = vmatprep.subr.msk.bf16.mxu1 %vm5231_vm10, %v5693_v48 }
 0x3ce   : > { %4372 = vmatmul.mubr.msk.bf16.vlgmr.msra.gmra.mrb[44].mxu1 %vm6450_vm11, %v4340_v60  ;;  %2463 = vmatpush1.bf16.msra.mxu0 %v5689_v2  ;;  %vm6457_vm11 = vmmov %vm6452_vm8 }
 0x3cf   : > { %4386 = vmatpush1.bf16.msk.msra.mxu1 %vm5251_vm12, %v5691_v21  ;;  %4391 = vmatprep.subr.msk.bf16.mxu0 %vm5216_vm0, %v5699_v50 }
 0x3d0   : > { %4387 = vmatprep.subr.msk.bf16.mxu1 %vm6451_vm1, %v5730_v49  ;;  %2533 = vmatprep.mubr.bf16.mxu1 %v4846_v0 }
 0x3d1   : > { %4380 = vmatmul.mubr.msk.bf16.vlgmr.msra.gmra.mrb[48].mxu0 %vm6452_vm8, %v4339_v40  ;;  %vm6458_vm8 = vmmov %vm6451_vm1 }
 0x3d2   : > { %4394 = vmatpush1.bf16.msk.msra.mxu0 %vm5286_vm7, %v5713_v46  ;;  %2574 = vmatprep.mubr.bf16.mxu0 %v4846_v0 }
 0x3d3   : > { %2504 = vmatpush1.bf16.msra.mxu1 %v2056_v3  ;;  %4395 = vmatprep.subr.msk.bf16.mxu0 %vm6453_vm6, %v2042_v12  ;;  %vm6459_vm6 = vmmov %vm6457_vm11 }
 0x3d4   : > { %4399 = vmatprep.subr.msk.bf16.mxu1 %vm5329_vm15, %v5725_v25 }
 0x3d6   : > { %4388 = vmatmul.mubr.msk.bf16.vlgmr.msra.gmra.mrb[48].mxu1 %vm6454_vm14, %v4339_v40  ;;  %2545 = vmatpush1.bf16.msra.mxu0 %v2062_v52  ;;  %vm6460_vm14 = vmmov %vm6451_vm1 }
 0x3d7   : > { %4402 = vmatpush1.bf16.msk.msra.mxu1 %vm5346_vm2, %v4335_v11  ;;  %4405 = vmatprep.subr.msk.bf16.mxu0 %vm6455_vm5, %v5519_v24  ;;  %v2712_v24 = vld [vmem:[%s6308_s11] sm:$0xf]  ;;  %vm6461_vm5 = vcmask 64512   ;;  %vm6484_vm2 = vcmask 1043456  }
 0x3d8   : > { %4403 = vmatprep.subr.msk.bf16.mxu1 %vm6456_vm4, %v2044_v58  ;;  %2615 = vmatprep.mubr.bf16.mxu1 %v4846_v0  ;;  %vm6462_vm4 = vmmov %vm6451_vm1 }
 0x3d9   : > { %4396 = vmatmul.mubr.msk.bf16.vlgmr.msra.gmra.mrb[52].mxu0 %vm6457_vm11, %v4339_v40  ;;  %vm6463_vm11 = vmmov %vm6461_vm5 }
 0x3da   : > { %2717 = vmatpush1.bf16.msra.mxu0 %v5548_v34  ;;  %2748 = vmatprep.mubr.bf16.mxu0 %v4846_v0 }
 0x3db   : > { %2586 = vmatpush1.bf16.msra.mxu1 %v2068_v30  ;;  %4409 = vmatprep.subr.msk.bf16.mxu0 %vm6451_vm1, %v5581_v7 }
 0x3dc   : > { %4407 = vmatprep.subr.msk.bf16.mxu1 %vm6458_vm8, %v5530_v37  ;;  %vm6464_vm8 = vmmov %vm6461_vm5 }
 0x3de   : > { %4404 = vmatmul.mubr.msk.bf16.vlgmr.msra.gmra.mrb[52].mxu1 %vm6459_vm6, %v4339_v40  ;;  %vm6465_vm6 = vmmov %vm6451_vm1 }
 0x3df   : > { %2758 = vmatpush1.bf16.msra.mxu1 %v5540_v45  ;;  %2789 = vmatprep.mubr.bf16.mxu1 %v4846_v0 }
 0x3e0   : > { %4411 = vmatprep.subr.msk.bf16.mxu1 %vm6460_vm14, %v5561_v53  ;;  %vm6466_vm14 = vmmov %vm6461_vm5 }
 0x3e1   : > { %4406 = vmatmul.mubr.msk.bf16.vlgmr.msra.gmra.mrb[56].mxu0 %vm6461_vm5, %v2712_v24  ;;  %vm6467_vm5 = vmmov %vm6451_vm1 }
 0x3e2   : > { %2799 = vmatpush1.bf16.msra.mxu0 %v5597_v38  ;;  %2830 = vmatprep.mubr.bf16.mxu0 %v4846_v0 }
 0x3e3   : > { %4413 = vmatprep.subr.msk.bf16.mxu0 %vm6462_vm4, %v5585_v27  ;;  %vm6468_vm4 = vmmov %vm6464_vm8 }
 0x3e6   : > { %4408 = vmatmul.mubr.msk.bf16.vlgmr.msra.gmra.mrb[56].mxu1 %vm6463_vm11, %v2712_v24  ;;  %vm6469_vm11 = vmmov %vm6468_vm4 }
 0x3e7   : > { %2840 = vmatpush1.bf16.msra.mxu1 %v5568_v23  ;;  %2871 = vmatprep.mubr.bf16.mxu1 %v4846_v0 }
 0x3e8   : > { %4415 = vmatprep.subr.msk.bf16.mxu1 %vm6451_vm1, %v5557_v36  ;;  %vm6470_vm1 = vmmov %vm6468_vm4 }
 0x3e9   : > { %4410 = vmatmul.mubr.msk.bf16.vlgmr.msra.gmra.mrb[60].mxu0 %vm6464_vm8, %v2712_v24  ;;  %vm6471_vm8 = vmmov %vm6470_vm1 }
 0x3ea   : > { %2884 = vmatpush1.bf16.msra.mxu0 %v5605_v1  ;;  %2915 = vmatprep.mubr.bf16.mxu0 %v4846_v0 }
 0x3eb   : > { %4417 = vmatprep.subr.msk.bf16.mxu0 %vm6465_vm6, %v5611_v33  ;;  %vm6472_vm6 = vcmask 261120  }
 0x3ee   : > { %4412 = vmatmul.mubr.msk.bf16.vlgmr.msra.gmra.mrb[60].mxu1 %vm6466_vm14, %v2712_v24  ;;  %vm6473_vm14 = vmmov %vm6472_vm6 }
 0x3ef   : > { %2925 = vmatpush1.bf16.msra.mxu1 %v5579_v16  ;;  %2956 = vmatprep.mubr.bf16.mxu1 %v4846_v0 }
 0x3f0   : > { %4419 = vmatprep.subr.msk.bf16.mxu1 %vm6467_vm5, %v5591_v62  ;;  %v2711_v62 = vld [vmem:[%s6307_s10] sm:$0xf]  ;;  %vm6474_vm5 = vmmov %vm6472_vm6 }
 0x3f1   : > { %4414 = vmatmul.mubr.msk.bf16.vlgmr.msra.gmra.mrb[56].mxu0 %vm6468_vm4, %v2711_v62  ;;  %vm6475_vm4 = vcmp.ge.s32.totalorder %v5480_v51, 32 }
 0x3f2   : > { %2966 = vmatpush1.bf16.msra.mxu0 %v5632_v13  ;;  %2997 = vmatprep.mubr.bf16.mxu0 %v4846_v0 }
 0x3f6   : > { %4416 = vmatmul.mubr.msk.bf16.vlgmr.msra.gmra.mrb[56].mxu1 %vm6469_vm11, %v2711_v62  ;;  %vm6476_vm11 = vcmask 785408  }
 0x3f7   : > { %3007 = vmatpush1.bf16.msra.mxu1 %v5622_v5  ;;  %3038 = vmatprep.mubr.bf16.mxu1 %v4846_v0 }
 0x3f9   : > { %4418 = vmatmul.mubr.msk.bf16.vlgmr.msra.gmra.mrb[60].mxu0 %vm6470_vm1, %v2711_v62  ;;  %vm6477_vm1 = vmmov %vm6474_vm5 }
 0x3fa   : > { %3115 = vmatprep.mubr.bf16.mxu0 %v4846_v0 }
 0x3fe   : > { %4420 = vmatmul.mubr.msk.bf16.vlgmr.msra.gmra.mrb[60].mxu1 %vm6471_vm8, %v2711_v62  ;;  %vm6478_vm8 = vmmov %vm6476_vm11 }
 0x3ff   : > { %3156 = vmatprep.mubr.bf16.mxu1 %v4846_v0 }
 0x482   : > { %v2107_v37 = vpop.f32.mrb[32].mxu0 }
 0x483   : > { %v2109_v45 = vpop.f32.mrb[33].mxu0 }
 0x484   : > { %v2111_v34 = vpop.f32.mrb[34].mxu0 }
 0x485   : > { %v2112_v36 = vpop.f32.mrb[35].mxu0 }
 0x489   : > { %v2148_v53 = vpop.f32.mrb[32].mxu1 }
 0x48a   : > { %2423 = vrot.lane.b32.xlu0 %v2148_v53, %s4850_s18  ;;  %v2150_v23 = vpop.f32.mrb[33].mxu1 }
 0x48b   : > { %v2152_v7 = vpop.f32.mrb[34].mxu1  ;;  %2425 = vrot.lane.b32.xlu1 %v2150_v23, %s4850_s18  ;;  %v5915_v23 = vpop.permute.xlu0 %2692 }
 0x48c   : > { %v2153_v27 = vpop.f32.mrb[35].mxu1  ;;  %v2189_v38 = vpop.f32.mrb[36].mxu0 }
 0x48d   : > { %v2191_v1 = vpop.f32.mrb[37].mxu0 }
 0x48e   : > { %v2193_v16 = vpop.f32.mrb[38].mxu0 }
 0x48f   : > { %2419 = vrot.lane.b32.xlu1 %v2107_v37, %s4850_s18  ;;  %v2194_v33 = vpop.f32.mrb[39].mxu0 }
 0x491   : > { %v2230_v61 = vpop.f32.mrb[36].mxu1 }
 0x492   : > { %v2232_v10 = vpop.f32.mrb[37].mxu1 }
 0x493   : > { %2409 = vrot.lane.b32.xlu0 %v2232_v10, %s4850_s18  ;;  %v2234_v2 = vpop.f32.mrb[38].mxu1  ;;  %2421 = vrot.lane.b32.xlu1 %v2109_v45, %s4850_s18 }
 0x494   : > { %v2235_v21 = vpop.f32.mrb[39].mxu1  ;;  %v2278_v48 = vpop.f32.mrb[40].mxu0 }
 0x495   : > { %v2280_v50 = vpop.f32.mrb[41].mxu0 }
 0x496   : > { %v2282_v8 = vpop.f32.mrb[42].mxu0 }
 0x497   : > { %2429 = vrot.lane.b32.xlu1 %v2191_v1, %s4850_s18  ;;  %v2283_v46 = vpop.f32.mrb[43].mxu0 }
 0x499   : > { %v2319_v13 = vpop.f32.mrb[40].mxu1 }
 0x49a   : > { %2636 = vrot.lane.b32.xlu0 %v2319_v13, %s4851_s29  ;;  %v2321_v5 = vpop.f32.mrb[41].mxu1 }
 0x49b   : > { %v2323_v25 = vpop.f32.mrb[42].mxu1  ;;  %2638 = vrot.lane.b32.xlu1 %v2321_v5, %s4851_s29 }
 0x49c   : > { %v2324_v49 = vpop.f32.mrb[43].mxu1  ;;  %v2360_v20 = vpop.f32.mrb[44].mxu0 }
 0x49d   : > { %v2362_v44 = vpop.f32.mrb[45].mxu0 }
 0x49e   : > { %2634 = vrot.lane.b32.xlu0 %v2280_v50, %s4851_s29  ;;  %v2364_v6 = vpop.f32.mrb[46].mxu0 }
 0x49f   : > { %2632 = vrot.lane.b32.xlu1 %v2278_v48, %s4851_s29  ;;  %v2365_v15 = vpop.f32.mrb[47].mxu0 }
 0x4a1   : > { %v2401_v3 = vpop.f32.mrb[44].mxu1 }
 0x4a2   : > { %v2403_v55 = vpop.f32.mrb[45].mxu1  ;;  %2640 = vrot.lane.b32.xlu0 %v2360_v20, %s4851_s29 }
 0x4a3   : > { %v2405_v63 = vpop.f32.mrb[46].mxu1  ;;  %2646 = vrot.lane.b32.xlu1 %v2403_v55, %s4851_s29 }
 0x4a4   : > { %v2406_v47 = vpop.f32.mrb[47].mxu1  ;;  %v2494_v12 = vpop.f32.mrb[48].mxu0 }
 0x4a5   : > { %v2496_v39 = vpop.f32.mrb[49].mxu0 }
 0x4a6   : > { %2431 = vrot.lane.b32.xlu0 %v2230_v61, %s4850_s18  ;;  %v2498_v14 = vpop.f32.mrb[50].mxu0 }
 0x4a7   : > { %2644 = vrot.lane.b32.xlu1 %v2401_v3, %s4851_s29  ;;  %v2499_v32 = vpop.f32.mrb[51].mxu0 }
 0x4a9   : > { %v2535_v11 = vpop.f32.mrb[48].mxu1 }
 0x4aa   : > { %2427 = vrot.lane.b32.xlu0 %v2189_v38, %s4850_s18  ;;  %v2537_v58 = vpop.f32.mrb[49].mxu1 }
 0x4ab   : > { %v2539_v52 = vpop.f32.mrb[50].mxu1 }
 0x4ac   : > { %v2540_v9 = vpop.f32.mrb[51].mxu1  ;;  %v5908_v30 = vpop.f32.mrb[52].mxu0 }
 0x4ad   : > { %v5910_v60 = vpop.f32.mrb[53].mxu0 }
 0x4ae   : > { %2642 = vrot.lane.b32.xlu0 %v2362_v44, %s4851_s29  ;;  %v2580_v40 = vpop.f32.mrb[54].mxu0 }
 0x4af   : > { %v2581_v24 = vpop.f32.mrb[55].mxu0 }
 0x4b1   : > { %v2617_v37 = vpop.f32.mrb[52].mxu1 }
 0x4b2   : > { %v2619_v45 = vpop.f32.mrb[53].mxu1 }
 0x4b3   : > { %v2621_v34 = vpop.f32.mrb[54].mxu1 }
 0x4b4   : > { %v2622_v36 = vpop.f32.mrb[55].mxu1 }
 0x4fc   : > { %v2424_v27 = vpop.permute.xlu0 %2423 }
 0x4fd   : > { %v5913_v53 = vpop.permute.xlu1 %2425 }
 0x4fe   : > { %v2435_v5 = vsel %vm6477_vm1, %v2424_v27, %v5913_v53 }
 0x4ff   : > { %v2538_v55 = vadd.f32 %v2537_v58, %v2435_v5 }
 0x501   : > { %v2420_v7 = vpop.permute.xlu1 %2419 }
 0x505   : > { %v2422_v38 = vpop.permute.xlu1 %2421  ;;  %v2410_v1 = vpop.permute.xlu0 %2409 }
 0x506   : > { %v2434_v33 = vsel %vm6472_vm6, %v2422_v38, %v2424_v27  ;;  %v2448_v62 = vsel %vm6473_vm14, %v2410_v1, %v2420_v7  ;;  %v2433_v2 = vsel %vm6474_vm5, %v2420_v7, %v2422_v38  ;;  %vm6479_vm6 = vmmov %vm6478_vm8 }
 0x507   : > { %v2536_v10 = vadd.f32 %v2535_v11, %v2434_v33  ;;  %v2449_v48 = vsel %vm6475_vm4, %v2448_v62, 0.0  ;;  %v2497_v46 = vadd.f32 %v2496_v39, %v2433_v2 }
 0x508   : > { %v2495_v25 = vadd.f32 %v2494_v12, %v2449_v48 }
 0x509   : > { %v2430_v16 = vpop.permute.xlu1 %2429 }
 0x50c   : > { %v2637_v61 = vpop.permute.xlu0 %2636 }
 0x50d   : > { %v2639_v21 = vpop.permute.xlu1 %2638 }
 0x50e   : > { %v2650_v50 = vsel %vm6476_vm11, %v2637_v61, %v2639_v21  ;;  %vm6480_vm11 = vmmov %vm6479_vm6 }
 0x50f   : > { %v2675_v8 = vadd.f32 %v2650_v50, %v2536_v10 }
 0x510   : > { %v2635_v13 = vpop.permute.xlu0 %2634 }
 0x511   : > { %v2649_v49 = vsel %vm6478_vm8, %v2635_v13, %v2637_v61  ;;  %v2633_v20 = vpop.permute.xlu1 %2632  ;;  %v2697_v44 = vmul.f32 %v5915_v23, %v2675_v8  ;;  %vm2684_vm14 = vcmp.ge.f32.partialorder %v2675_v8, 0.0  ;;  %vm6481_vm8 = vmmov %vm6479_vm6 }
 0x512   : > { %v2674_v6 = vadd.f32 %v2649_v49, %v2497_v46  ;;  %v2648_v15 = vsel %vm6479_vm6, %v2633_v20, %v2635_v13  ;;  %vm6482_vm6 = vcmask 261120  }
 0x513   : > { %v2673_v3 = vadd.f32 %v2648_v15, %v2495_v25  ;;  %v2705_v52 = vsel %vm2684_vm14, %v2675_v8, %v2697_v44  ;;  %vm6483_vm3 = vmmov %vm6482_vm6 }
 0x514   : > { %vm2683_vm5 = vcmp.ge.f32.partialorder %v2674_v6, 0.0  ;;  %v2696_v63 = vmul.f32 %v5915_v23, %v2674_v6  ;;  %v2641_v47 = vpop.permute.xlu0 %2640  ;;  %v3050_v33 = vpack.c.bf16 %v2705_v52, %v2705_v52  ;;  %vm6485_vm14 = vmmov %vm6481_vm8 }
 0x515   : > { %vm2682_vm4 = vcmp.ge.f32.partialorder %v2673_v3, 0.0  ;;  %v2695_v39 = vmul.f32 %v5915_v23, %v2673_v3  ;;  %v2651_v12 = vsel %vm6480_vm11, %v2639_v21, %v2641_v47  ;;  %v2647_v14 = vpop.permute.xlu1 %2646 }
 0x516   : > { %v2704_v32 = vsel %vm2683_vm5, %v2674_v6, %v2696_v63  ;;  %v2676_v11 = vadd.f32 %v2651_v12, %v2538_v55  ;;  %v2664_v58 = vsel %vm6481_vm8, %v2647_v14, %v2633_v20  ;;  %vm6486_vm5 = vcmp.lt.s32.totalorder %v5500_v57, 992 }
 0x517   : > { %v3049_v9 = vpack.c.bf16 %v2704_v32, %v2704_v32  ;;  %v2703_v40 = vsel %vm2682_vm4, %v2673_v3, %v2695_v39  ;;  %v2672_v21 = vsel %vm6486_vm5, %v2664_v58, 0.0  ;;  %vm6487_vm4 = vmmov %vm6484_vm2  ;;  %vm6492_vm5 = vcmask 785408  }
 0x518   : > { %vm2685_vm1 = vcmp.ge.f32.partialorder %v2676_v11, 0.0  ;;  %v2698_v24 = vmul.f32 %v5915_v23, %v2676_v11  ;;  %v2432_v34 = vpop.permute.xlu0 %2431  ;;  %v3048_v36 = vpack.c.bf16 %v2703_v40, %v2703_v40  ;;  %vm6489_vm11 = vmmov %vm6487_vm4 }
 0x519   : > { %v2438_v7 = vsel %vm6482_vm6, %v2430_v16, %v2432_v34  ;;  %v2439_v27 = vsel %vm6483_vm3, %v2432_v34, %v2410_v1  ;;  %v2645_v38 = vpop.permute.xlu1 %2644  ;;  %4421 = vmatprep.subr.msk.bf16.mxu0 %vm6484_vm2, %v3049_v9  ;;  %v3047_v1 = vld [vmem:[%s6309_s12] sm:$0xf]  ;;  %vm6488_vm2 = vmmov %vm6483_vm3 }
 0x51a   : > { %v2706_v62 = vsel %vm2685_vm1, %v2676_v11, %v2698_v24  ;;  %v2618_v61 = vadd.f32 %v2617_v37, %v2438_v7  ;;  %v2620_v10 = vadd.f32 %v2619_v45, %v2439_v27  ;;  %v2654_v2 = vsel %vm6485_vm14, %v2645_v38, %v2647_v14  ;;  %vm6490_vm1 = vmmov %vm6487_vm4 }
 0x51b   : > { %v3060_v48 = vsel %vm6487_vm4, %v3048_v36, 0  ;;  %v3051_v50 = vpack.c.bf16 %v2706_v62, %v2706_v62  ;;  %v3066_v5 = vsel %vm6490_vm1, %v3050_v33, 0  ;;  %vm6491_vm14 = vcmask 64512   ;;  %vm6493_vm4 = vmmov %vm6492_vm5 }
 0x51c   : > { %v2680_v8 = vadd.f32 %v2672_v21, %v2620_v10  ;;  %v2679_v46 = vadd.f32 %v2654_v2, %v2618_v61  ;;  %3084 = vmatpush1.bf16.msra.mxu0 %v3060_v48  ;;  %v2428_v13 = vpop.permute.xlu0 %2427 }
 0x51d   : > { %v2436_v37 = vsel %vm6483_vm3, %v5913_v53, %v2428_v13  ;;  %v2437_v45 = vsel %vm6488_vm2, %v2428_v13, %v2430_v16  ;;  %4423 = vmatprep.subr.msk.bf16.mxu1 %vm6489_vm11, %v3051_v50  ;;  %vm6494_vm3 = vmmov %vm6491_vm14 }
 0x51e   : > { %vm2689_vm8 = vcmp.ge.f32.partialorder %v2680_v8, 0.0  ;;  %v2702_v25 = vmul.f32 %v5915_v23, %v2680_v8  ;;  %vm2688_vm6 = vcmp.ge.f32.partialorder %v2679_v46, 0.0  ;;  %v2701_v49 = vmul.f32 %v5915_v23, %v2679_v46  ;;  %3125 = vmatpush1.bf16.msra.mxu1 %v3066_v5  ;;  %vm6495_vm2 = vmmov %vm6490_vm1  ;;  %v3998_v5 = vld [vmem:[%s6312_s15] sm:$0xff] }
 0x51f   : > { %4422 = vmatmul.mubr.msk.bf16.vlgmr.msra.gmra.mrb[56].mxu0 %vm6491_vm14, %v3047_v1  ;;  %v2577_v20 = vadd.f32 %v5908_v30, %v2436_v37  ;;  %v2579_v44 = vadd.f32 %v5910_v60, %v2437_v45  ;;  %vm6496_vm11 = vmmov %vm6490_vm1  ;;  %v3997_v45 = vld [vmem:[%s6311_s14] sm:$0xff] }
 0x520   : > { %v2643_v53 = vpop.permute.xlu0 %2642  ;;  %v2710_v6 = vsel %vm2689_vm8, %v2680_v8, %v2702_v25  ;;  %v2709_v16 = vsel %vm2688_vm6, %v2679_v46, %v2701_v49  ;;  %3197 = vmatprep.mubr.bf16.mxu0 %v4846_v0  ;;  %vm6497_vm6 = vmmov %vm6495_vm2 }
 0x521   : > { %v2652_v15 = vsel %vm6492_vm5, %v2641_v47, %v2643_v53  ;;  %v2653_v3 = vsel %vm6493_vm4, %v2643_v53, %v2645_v38  ;;  %4424 = vmatmul.mubr.msk.bf16.vlgmr.msra.gmra.mrb[56].mxu1 %vm6494_vm3, %v3047_v1  ;;  %v3055_v55 = vpack.c.bf16 %v2710_v6, %v2710_v6  ;;  %v3054_v63 = vpack.c.bf16 %v2709_v16, %v2709_v16  ;;  %vm6498_vm14 = vmmov %vm6494_vm3 }
 0x522   : > { %v2677_v39 = vadd.f32 %v2652_v15, %v2577_v20  ;;  %v2678_v12 = vadd.f32 %v2653_v3, %v2579_v44  ;;  %3238 = vmatprep.mubr.bf16.mxu1 %v4846_v0  ;;  %vm6499_vm5 = vmmov %vm6495_vm2 }
 0x523   : > { %4427 = vmatprep.subr.msk.bf16.mxu1 %vm6495_vm2, %v3055_v55  ;;  %v3078_v30 = vsel %vm6496_vm11, %v3054_v63, 0  ;;  %vm6500_vm4 = vmmov %vm6494_vm3  ;;  %vm6501_vm3 = vcmask 7168  }
 0x524   : > { %vm2686_vm1 = vcmp.ge.f32.partialorder %v2677_v39, 0.0  ;;  %vm2687_vm8 = vcmp.ge.f32.partialorder %v2678_v12, 0.0  ;;  %v2699_v60 = vmul.f32 %v5915_v23, %v2677_v39  ;;  %v2700_v47 = vmul.f32 %v5915_v23, %v2678_v12  ;;  %3207 = vmatpush1.bf16.msra.mxu1 %v3078_v30  ;;  %vm6502_vm2 = vmmov %vm6501_vm3 }
 0x525   : > { %vm6503_vm11 = vmmov %vm6502_vm2 }
 0x526   : > { %v2708_v14 = vsel %vm2687_vm8, %v2678_v12, %v2700_v47  ;;  %v2707_v32 = vsel %vm2686_vm1, %v2677_v39, %v2699_v60  ;;  %vm6504_vm1 = vcmask 1039360  }
 0x527   : > { %v3053_v11 = vpack.c.bf16 %v2708_v14, %v2708_v14  ;;  %v3052_v52 = vpack.c.bf16 %v2707_v32, %v2707_v32  ;;  %vm6505_vm8 = vmmov %vm6504_vm1 }
 0x529   : > { %4425 = vmatprep.subr.msk.bf16.mxu0 %vm6497_vm6, %v3053_v11  ;;  %4428 = vmatmul.mubr.msk.bf16.vlgmr.msra.gmra.mrb[60].mxu1 %vm6498_vm14, %v3047_v1  ;;  %v3072_v9 = vsel %vm6499_vm5, %v3052_v52, 0  ;;  %vm6506_vm6 = vcmp.eq.s32.totalorder %v5142_v31, 1  ;;  %vm6507_vm14 = vcmp.eq.s32.totalorder %v5222_v18, 1  ;;  %vm6508_vm5 = vmmov %vm6502_vm2 }
 0x52a   : > { %3166 = vmatpush1.bf16.msra.mxu0 %v3072_v9  ;;  %3462 = vmatprep.mubr.bf16.mxu1 %v4846_v0 }
 0x52d   : > { %4426 = vmatmul.mubr.msk.bf16.vlgmr.msra.gmra.mrb[60].mxu0 %vm6500_vm4, %v3047_v1  ;;  %vm6509_vm4 = vmmov %vm6502_vm2 }
 0x52e   : > { %3421 = vmatprep.mubr.bf16.mxu0 %v4846_v0 }
 0x5f2   : > { %v5968_v40 = vpop.f32.mrb[56].mxu0 }
 0x5f3   : > { %v3119_v23 = vpop.f32.mrb[57].mxu0 }
 0x5f4   : > { %v4704_v24 = vpack.i.bf16 %v3119_v23, %v5968_v40  ;;  %v3121_v58 = vpop.f32.mrb[58].mxu0  ;;  %v3158_v34 = vpop.f32.mrb[56].mxu1 }
 0x5f5   : > { %v3122_v36 = vpop.f32.mrb[59].mxu0  ;;  %v3160_v7 = vpop.f32.mrb[57].mxu1 }
 0x5f6   : > { %v4714_v27 = vpack.i.bf16 %v3160_v7, %v3158_v34  ;;  %4705 = vrot.lane.b32.xlu0 %v4704_v24, %s4848_s28  ;;  %v3162_v38 = vpop.f32.mrb[58].mxu1 }
 0x5f7   : > { %v3163_v33 = vpop.f32.mrb[59].mxu1 }
 0x5f8   : > { %4710 = vrot.lane.b32.xlu1 %v4714_v27, %s4848_s28 }
 0x5fa   : > { %4715 = vrot.lane.b32.xlu0 %v4714_v27, %s4847_s16 }
 0x5fc   : > { %v5974_v62 = vpop.f32.mrb[60].mxu1 }
 0x5fd   : > { %v5976_v61 = vpop.f32.mrb[61].mxu1 }
 0x5fe   : > { %v4734_v10 = vpack.i.bf16 %v5976_v61, %v5974_v62  ;;  %v4719_v2 = vpack.i.bf16 %v5974_v62, %v5976_v61  ;;  %3306 = vrot.lane.b32.xlu0 %v3119_v23, %s4847_s16  ;;  %v3244_v21 = vpop.f32.mrb[62].mxu1 }
 0x5ff   : > { %v3245_v48 = vpop.f32.mrb[63].mxu1 }
 0x600   : > { %4720 = vrot.lane.b32.xlu1 %v4719_v2, %s4848_s28  ;;  %v5984_v50 = vpop.f32.mrb[60].mxu0 }
 0x601   : > { %v4724_v8 = vpack.i.bf16 %v5968_v40, %v5984_v50  ;;  %v5988_v46 = vpop.f32.mrb[61].mxu0 }
 0x602   : > { %4735 = vrot.lane.b32.xlu0 %v4734_v10, %s4847_s16  ;;  %v4729_v13 = vpack.i.bf16 %v5988_v46, %v5984_v50  ;;  %v3203_v1 = vpop.f32.mrb[62].mxu0 }
 0x603   : > { %v3204_v37 = vpop.f32.mrb[63].mxu0 }
 0x604   : > { %4725 = vrot.lane.b32.xlu1 %v4724_v8, %s4847_s16 }
 0x606   : > { %4001 = vperm.xlu0 %4672, %v3997_v45  }
 0x608   : > { %4730 = vrot.lane.b32.xlu1 %v4729_v13, %s4848_s28 }
 0x60c   : > { %3314 = vrot.lane.b32.xlu1 %v5988_v46, %s4847_s16  ;;  %s6570_s16 = sshll.u32 %s5048_s24, 5 }
 0x60d   : > { %s564_s28 = scalar_lea.vmem [#allocation5], %s6570_s16  ;;  %s4852_s16 = smov [#allocation5]  }
 0x60e   : > { %s4106_s30 = sshll.u32 %s564_s28, 4  ;;  %s4781_s2 = sshll.u32 %s4852_s16, 4  ;;  %s6255_s30 = int_to_ptr.vmem [resolvable:$true] %s4106_s30  ;;  %s4782_s2 = int_to_ptr.vmem [resolvable:$false] %s4781_s2 }
 0x60f   : > { %p4784_p7 = scmp.lt.s32.totalorder %s6255_s30, %s4782_s2 }
 0x610   : > { %4014 = vperm.xlu1 %4673, %v3998_v5  }
 0x668   : > { %v4706_v25 = vpop.permute.xlu0 %4705 }
 0x669   : > { %v4708_v49 = vunpack.i.h.bf16 %v4706_v25  ;;  %v4707_v20 = vunpack.i.l.bf16 %v4706_v25 }
 0x66a   : > { %v4711_v44 = vpop.permute.xlu1 %4710 }
 0x66b   : > { %v3280_v53 = vsel %vm6501_vm3, %v4707_v20, %v4708_v49  ;;  %v4713_v6 = vunpack.i.h.bf16 %v4711_v44  ;;  %v4712_v16 = vunpack.i.l.bf16 %v4711_v44  ;;  %vm6510_vm3 = vmmov %vm6504_vm1 }
 0x66c   : > { %v6004_v15 = vpack.c.bf16 %v3119_v23, %v3280_v53  ;;  %v4716_v3 = vpop.permute.xlu0 %4715 }
 0x66d   : > { %v3281_v55 = vsel %vm6502_vm2, %v4708_v49, %v4712_v16  ;;  %v3282_v63 = vsel %vm6503_vm11, %v4712_v16, %v4713_v6  ;;  %v4718_v39 = vunpack.i.h.bf16 %v4716_v3  ;;  %v4717_v12 = vunpack.i.l.bf16 %v4716_v3  ;;  %vm6511_vm2 = vmmov %vm6504_vm1 }
 0x66e   : > { %v6008_v30 = vpack.c.bf16 %v3160_v7, %v3282_v63  ;;  %v6010_v60 = vpack.c.bf16 %v3158_v34, %v3281_v55  ;;  %4431 = vmatprep.subr.msk.bf16.mxu0 %vm5155_vm9, %v6004_v15  ;;  %vm6512_vm11 = vmmov %vm6504_vm1 }
 0x66f   : > { %v3322_v14 = vsel %vm6504_vm1, %v4717_v12, %v4718_v39  ;;  %vm6513_vm1 = vcmask 1043456  }
 0x670   : > { %v3307_v47 = vpop.permute.xlu0 %3306  ;;  %4439 = vmatprep.subr.msk.bf16.mxu1 %vm5231_vm10, %v6008_v30  ;;  %v3339_v24 = vsel %vm6507_vm14, %v3322_v14, 0.0  ;;  %vm6516_vm14 = vcmp.eq.s32.totalorder %v5137_v28, 1 }
 0x671   : > { %v3321_v32 = vsel %vm6505_vm8, %v3307_v47, %v4717_v12  ;;  %4442 = vmatpush1.bf16.msk.msra.mxu1 %vm5251_vm12, %v6010_v60  ;;  %v3355_v31 = vpack.c.bf16 %v3339_v24, %v3339_v24  ;;  %vm6514_vm8 = vmmov %vm6511_vm2 }
 0x672   : > { %v4721_v11 = vpop.permute.xlu1 %4720  ;;  %v3338_v9 = vsel %vm6506_vm6, %v3321_v32, 0.0  ;;  %vm6515_vm6 = vcmp.eq.s32.totalorder %v5188_v56, 1 }
 0x673   : > { %v4722_v52 = vunpack.i.l.bf16 %v4721_v11  ;;  %v4723_v58 = vunpack.i.h.bf16 %v4721_v11  ;;  %v6031_v33 = vpack.c.bf16 %v3338_v9, %v3338_v9 }
 0x674   : > { %v4736_v23 = vpop.permute.xlu0 %4735 }
 0x675   : > { %v3295_v34 = vsel %vm6508_vm5, %v4722_v52, %v4707_v20  ;;  %v4738_v36 = vunpack.i.h.bf16 %v4736_v23  ;;  %v4737_v7 = vunpack.i.l.bf16 %v4736_v23  ;;  %v3286_v18 = vsel %vm6509_vm4, %v4723_v58, %v4722_v52  ;;  %vm6517_vm5 = vmmov %vm6513_vm1 }
 0x676   : > { %v6029_v27 = vpack.c.bf16 %v5968_v40, %v3295_v34  ;;  %v4726_v38 = vpop.permute.xlu1 %4725  ;;  %v6050_v20 = vpack.c.bf16 %v5976_v61, %v3286_v18  ;;  %v6053_v44 = vsel %vm6517_vm5, %v3355_v31, 0  ;;  %vm6518_vm4 = vcmp.eq.s32.totalorder %v5264_v41, 1 }
 0x677   : > { %v4728_v10 = vunpack.i.h.bf16 %v4726_v38  ;;  %v4727_v2 = vunpack.i.l.bf16 %v4726_v38  ;;  %v3326_v21 = vsel %vm6510_vm3, %v4737_v7, %v4738_v36  ;;  %vm6519_vm3 = vcmask 7168  }
 0x678   : > { %4434 = vmatpush1.bf16.msk.msra.mxu0 %vm5196_vm13, %v6029_v27  ;;  %v3343_v53 = vsel %vm6518_vm4, %v3326_v21, 0.0  ;;  %vm6526_vm4 = vcmp.eq.s32.totalorder %v5225_v19, 1 }
 0x679   : > { %v3320_v48 = vsel %vm6511_vm2, %v4728_v10, %v3307_v47  ;;  %v3323_v8 = vsel %vm6512_vm11, %v4718_v39, %v4727_v2  ;;  %4435 = vmatprep.subr.msk.bf16.mxu0 %vm6513_vm1, %v6031_v33  ;;  %v3336_v40 = vsel %vm6514_vm8, %v4738_v36, %v4728_v10  ;;  %vm6520_vm2 = vmmov %vm6519_vm3 }
 0x67a   : > { %v3340_v13 = vsel %vm6515_vm6, %v3323_v8, 0.0  ;;  %v4731_v1 = vpop.permute.xlu1 %4730  ;;  %v3337_v37 = vsel %vm6516_vm14, %v3320_v48, 0.0  ;;  %vm6521_vm11 = vmmov %vm6520_vm2  ;;  %vm6523_vm6 = vcmp.eq.s32.totalorder %v5267_v43, 1  ;;  %vm6524_vm14 = vcmask 1039360  }
 0x67b   : > { %v4733_v45 = vunpack.i.h.bf16 %v4731_v1  ;;  %v4732_v5 = vunpack.i.l.bf16 %v4731_v1  ;;  %v6047_v25 = vpack.c.bf16 %v3340_v13, %v3340_v13  ;;  %v3353_v49 = vpack.c.bf16 %v3337_v37, %v3337_v37  ;;  %vm6522_vm8 = vmmov %vm6513_vm1  ;;  %v4025_v37 = vld [vmem:[%s6550_s1] sm:$0xff]  ;;  %s4092_s1 = scalar_lea.sflag [#allocation4], %s5048_s24 }
 0x67c   : > { %v3344_v61 = vsel %vm6523_vm6, %v3336_v40, 0.0  ;;  %vm6525_vm5 = vmmov %vm6524_vm14  ;;  %v3359_v43 = vpack.c.bf16 %v3343_v53, %v3343_v53 }
 0x67d   : > { %v3285_v56 = vsel %vm6519_vm3, %v4733_v45, %v4723_v58  ;;  %v3283_v16 = vsel %vm6520_vm2, %v4713_v6, %v4732_v5  ;;  %v3284_v28 = vsel %vm6521_vm11, %v4732_v5, %v4733_v45  ;;  %4443 = vmatprep.subr.msk.bf16.mxu1 %vm6513_vm1, %v6047_v25  ;;  %v6063_v3 = vsel %vm6522_vm8, %v3353_v49, 0  ;;  %v3361_v6 = vld [vmem:[%s6310_s13] sm:$0xf]  ;;  %vm6531_vm6 = vmmov %vm6522_vm8 }
 0x67e   : > { %v6068_v55 = vpack.c.bf16 %v5988_v46, %v3284_v28  ;;  %3392 = vmatpush1.bf16.msra.mxu0 %v6063_v3  ;;  %3433 = vmatpush1.bf16.msra.mxu1 %v6053_v44  ;;  %v3315_v41 = vpop.permute.xlu1 %3314  ;;  %v6081_v46 = vpack.c.bf16 %v5974_v62, %v3285_v56  ;;  %v4449_v12 = vpack.c.bf16 %v5984_v50, %v3283_v16  ;;  %vm6527_vm3 = vcmp.eq.s32.totalorder %v5180_v54, 1  ;;  %v4462_v50 = vld [vmem:[%s6310_s13 + $0x8] sm:$0xf] }
 0x67f   : > { %v3324_v63 = vsel %vm6524_vm14, %v4727_v2, %v3315_v41  ;;  %v3325_v39 = vsel %vm6525_vm5, %v3315_v41, %v4737_v7  ;;  %4455 = vmatprep.subr.msk.bf16.mxu1 %vm5329_vm15, %v6050_v20  ;;  %vm6528_vm2 = vcmask 195584   ;;  %v3360_v62 = vpack.c.bf16 %v3344_v61, %v3344_v61  ;;  %vm6532_vm14 = vmmov %vm6531_vm6 }
 0x680   : > { %v3341_v47 = vsel %vm6526_vm4, %v3324_v63, 0.0  ;;  %v3342_v14 = vsel %vm6527_vm3, %v3325_v39, 0.0  ;;  %4447 = vmatprep.subr.msk.bf16.mxu0 %vm5216_vm0, %v6068_v55  ;;  %vm6529_vm11 = vmmov %vm6528_vm2  ;;  %vm6530_vm1 = vnez %v6384_v29 }
 0x681   : > { %v3357_v32 = vpack.c.bf16 %v3341_v47, %v3341_v47  ;;  %v3358_v11 = vpack.c.bf16 %v3342_v14, %v3342_v14  ;;  %4444 = vmatmul.mubr.msk.bf16.vlgmr.msra.gmra.mrb[64].mxu1 %vm6528_vm2, %v3361_v6  ;;  %4436 = vmatmul.mubr.msk.bf16.vlgmr.msra.gmra.mrb[64].mxu0 %vm6529_vm11, %v3361_v6  ;;  %vm6533_vm5 = vmmov %vm6531_vm6 }
 0x682   : > { %4450 = vmatpush1.bf16.msk.msra.mxu0 %vm5286_vm7, %v4449_v12  ;;  %4458 = vmatpush1.bf16.msk.msra.mxu1 %vm6530_vm1, %v6081_v46  ;;  %v3384_v19 = vsel %vm6533_vm5, %v3359_v43, 0  ;;  %vm6534_vm4 = vmmov %vm6528_vm2 }
 0x683   : > { %4451 = vmatprep.subr.msk.bf16.mxu0 %vm6522_vm8, %v3358_v11  ;;  %4459 = vmatprep.subr.msk.bf16.mxu1 %vm6531_vm6, %v3360_v62  ;;  %v3378_v54 = vsel %vm6532_vm14, %v3357_v32, 0  ;;  %vm6535_vm3 = vmmov %vm6528_vm2 }
 0x684   : > { %3544 = vmatprep.mubr.bf16.mxu1 %v4846_v0  ;;  %3503 = vmatprep.mubr.bf16.mxu0 %v4846_v0  ;;  %vm6536_vm2 = vmmov %vm6533_vm5 }
 0x685   : > { %vm6537_vm11 = vmmov %vm6536_vm2  ;;  %v4002_v39 = vpop.permute.xlu0 %4001 }
 0x686   : > { %3474 = vmatpush1.bf16.msra.mxu0 %v3378_v54  ;;  %3515 = vmatpush1.bf16.msra.mxu1 %v3384_v19  ;;  %vm6538_vm8 = vmmov %vm6535_vm3 }
 0x687   : > { %4465 = vmatprep.subr.msk.bf16.mxu0 %vm5155_vm9, %v6004_v15  ;;  %4473 = vmatprep.subr.msk.bf16.mxu1 %vm5231_vm10, %v6008_v30  ;;  %vm6539_vm6 = vmmov %vm6535_vm3 }
 0x688   : > { %vm6540_vm14 = vmmov %vm6536_vm2 }
 0x689   : > { %4460 = vmatmul.mubr.msk.bf16.vlgmr.msra.gmra.mrb[68].mxu1 %vm6534_vm4, %v3361_v6  ;;  %4452 = vmatmul.mubr.msk.bf16.vlgmr.msra.gmra.mrb[68].mxu0 %vm6535_vm3, %v3361_v6  ;;  %vm6541_vm5 = vmmov %vm6536_vm2 }
 0x68a   : > { %4468 = vmatpush1.bf16.msk.msra.mxu0 %vm5196_vm13, %v6029_v27  ;;  %4476 = vmatpush1.bf16.msk.msra.mxu1 %vm5251_vm12, %v6010_v60  ;;  %vm6542_vm4 = vmmov %vm6535_vm3 }
 0x68b   : > { %4469 = vmatprep.subr.msk.bf16.mxu0 %vm6536_vm2, %v6031_v33  ;;  %4477 = vmatprep.subr.msk.bf16.mxu1 %vm6537_vm11, %v6047_v25  ;;  %vm6547_vm11 = vmmov %vm6536_vm2 }
 0x68c   : > { %3633 = vmatprep.mubr.bf16.mxu1 %v4846_v0  ;;  %3592 = vmatprep.mubr.bf16.mxu0 %v4846_v0 }
 0x68e   : > { %3563 = vmatpush1.bf16.msra.mxu0 %v6063_v3  ;;  %3604 = vmatpush1.bf16.msra.mxu1 %v6053_v44 }
 0x68f   : > { %4481 = vmatprep.subr.msk.bf16.mxu0 %vm5216_vm0, %v6068_v55  ;;  %4489 = vmatprep.subr.msk.bf16.mxu1 %vm5329_vm15, %v6050_v20  ;;  %v6209_v43 = vpop.permute.xlu1 %4014 }
 0x691   : > { %4478 = vmatmul.mubr.msk.bf16.vlgmr.msra.gmra.mrb[72].mxu1 %vm6538_vm8, %v4462_v50  ;;  %4470 = vmatmul.mubr.msk.bf16.vlgmr.msra.gmra.mrb[72].mxu0 %vm6539_vm6, %v4462_v50  ;;  %vm6554_vm6 = vcmask 785408  }
 0x692   : > { %4484 = vmatpush1.bf16.msk.msra.mxu0 %vm5286_vm7, %v4449_v12  ;;  %4492 = vmatpush1.bf16.msk.msra.mxu1 %vm6530_vm1, %v6081_v46 }
 0x693   : > { %4485 = vmatprep.subr.msk.bf16.mxu0 %vm6540_vm14, %v3358_v11  ;;  %4493 = vmatprep.subr.msk.bf16.mxu1 %vm6541_vm5, %v3360_v62  ;;  %vm6556_vm5 = vcmp.ge.s32.totalorder %v5480_v51, 32 }
 0x694   : > { %3715 = vmatprep.mubr.bf16.mxu1 %v4846_v0  ;;  %3674 = vmatprep.mubr.bf16.mxu0 %v4846_v0 }
 0x696   : > { %3645 = vmatpush1.bf16.msra.mxu0 %v3378_v54  ;;  %3686 = vmatpush1.bf16.msra.mxu1 %v3384_v19 }
 0x697   : > { %4497 = vmatprep.subr.msk.bf16.mxu0 %vm5155_vm9, %v6004_v15  ;;  %4505 = vmatprep.subr.msk.bf16.mxu1 %vm5231_vm10, %v6008_v30  ;;  %vm6543_vm9 = vmmov %vm6536_vm2 }
 0x698   : > { %vm6545_vm10 = vmmov %vm6535_vm3 }
 0x699   : > { %4494 = vmatmul.mubr.msk.bf16.vlgmr.msra.gmra.mrb[76].mxu1 %vm6542_vm4, %v4462_v50  ;;  %4486 = vmatmul.mubr.msk.bf16.vlgmr.msra.gmra.mrb[76].mxu0 %vm6535_vm3, %v4462_v50 }
 0x69a   : > { %4500 = vmatpush1.bf16.msk.msra.mxu0 %vm5196_vm13, %v6029_v27  ;;  %4508 = vmatpush1.bf16.msk.msra.mxu1 %vm5251_vm12, %v6010_v60  ;;  %vm6544_vm13 = vmmov %vm6535_vm3 }
 0x69b   : > { %4501 = vmatprep.subr.msk.bf16.mxu0 %vm6536_vm2, %v6031_v33  ;;  %4509 = vmatprep.subr.msk.bf16.mxu1 %vm6543_vm9, %v6047_v25  ;;  %vm6546_vm12 = vmmov %vm6536_vm2 }
 0x69c   : > { %3808 = vmatprep.mubr.bf16.mxu0 %v4846_v0  ;;  %3849 = vmatprep.mubr.bf16.mxu1 %v4846_v0 }
 0x69e   : > { %3779 = vmatpush1.bf16.msra.mxu0 %v6063_v3  ;;  %3820 = vmatpush1.bf16.msra.mxu1 %v6053_v44 }
 0x69f   : > { %4513 = vmatprep.subr.msk.bf16.mxu0 %vm5216_vm0, %v6068_v55  ;;  %4521 = vmatprep.subr.msk.bf16.mxu1 %vm5329_vm15, %v6050_v20  ;;  %vm6548_vm15 = vmmov %vm6535_vm3 }
 0x6a0   : > { %vm6549_vm0 = vmmov %vm6535_vm3 }
 0x6a1   : > { %4502 = vmatmul.mubr.msk.bf16.vlgmr.msra.gmra.mrb[80].mxu0 %vm6544_vm13, %v4461_v42  ;;  %4510 = vmatmul.mubr.msk.bf16.vlgmr.msra.gmra.mrb[80].mxu1 %vm6545_vm10, %v4461_v42  ;;  %vm6561_vm13 = vmmov %vm6554_vm6  ;;  %vm6562_vm10 = vcmp.lt.s32.totalorder %v5500_v57, 992 }
 0x6a2   : > { %4516 = vmatpush1.bf16.msk.msra.mxu0 %vm5286_vm7, %v4449_v12  ;;  %4524 = vmatpush1.bf16.msk.msra.mxu1 %vm6530_vm1, %v6081_v46  ;;  %vm6551_vm7 = vcmask 261120  }
 0x6a3   : > { %4517 = vmatprep.subr.msk.bf16.mxu0 %vm6546_vm12, %v3358_v11  ;;  %4525 = vmatprep.subr.msk.bf16.mxu1 %vm6547_vm11, %v3360_v62  ;;  %vm6552_vm1 = vmmov %vm6551_vm7 }
 0x6a4   : > { %3890 = vmatprep.mubr.bf16.mxu0 %v4846_v0  ;;  %3931 = vmatprep.mubr.bf16.mxu1 %v4846_v0  ;;  %vm6553_vm8 = vmmov %vm6552_vm1 }
 0x6a5   : > { %vm6555_vm14 = vmmov %vm6552_vm1 }
 0x6a6   : > { %3861 = vmatpush1.bf16.msra.mxu0 %v3378_v54  ;;  %3902 = vmatpush1.bf16.msra.mxu1 %v3384_v19  ;;  %vm6557_vm4 = vmmov %vm6552_vm1 }
 0x6a7   : > { %vm6558_vm3 = vmmov %vm6552_vm1 }
 0x6a8   : > { %vm6559_vm2 = vmmov %vm6552_vm1 }
 0x6a9   : > { %4518 = vmatmul.mubr.msk.bf16.vlgmr.msra.gmra.mrb[84].mxu0 %vm6548_vm15, %v4461_v42  ;;  %4526 = vmatmul.mubr.msk.bf16.vlgmr.msra.gmra.mrb[84].mxu1 %vm6549_vm0, %v4461_v42  ;;  %vm6560_vm9 = vmmov %vm6552_vm1 }
 0x6aa   : > { %vm6563_vm12 = vmmov %vm6554_vm6 }
 0x6ab   : > { %vm6564_vm11 = vmmov %vm6554_vm6 }
 0x6ac   : > { %vm6565_vm15 = vmmov %vm6554_vm6 }
 0x6ad   : > { %vm6566_vm0 = vmmov %vm6554_vm6 }
 0x754   : > { %v3464_v59 = vpop.f32.mrb[64].mxu1  ;;  %v3423_v4 = vpop.f32.mrb[64].mxu0 }
 0x755   : > { %3739 = vrot.lane.b32.xlu0 %v3464_v59, %s4850_s18  ;;  %v3466_v22 = vpop.f32.mrb[65].mxu1  ;;  %v3425_v35 = vpop.f32.mrb[65].mxu0 }
 0x756   : > { %3741 = vrot.lane.b32.xlu1 %v3466_v22, %s4850_s18  ;;  %v3468_v26 = vpop.f32.mrb[66].mxu1  ;;  %v3427_v17 = vpop.f32.mrb[66].mxu0 }
 0x757   : > { %v3469_v29 = vpop.f32.mrb[67].mxu1  ;;  %v3428_v15 = vpop.f32.mrb[67].mxu0 }
 0x759   : > { %3735 = vrot.lane.b32.xlu0 %v3423_v4, %s4850_s18 }
 0x75a   : > { %3737 = vrot.lane.b32.xlu1 %v3425_v35, %s4850_s18 }
 0x75c   : > { %v3546_v0 = vpop.f32.mrb[68].mxu1  ;;  %v3505_v30 = vpop.f32.mrb[68].mxu0 }
 0x75d   : > { %v3548_v60 = vpop.f32.mrb[69].mxu1  ;;  %3747 = vrot.lane.b32.xlu0 %v3546_v0, %s4850_s18  ;;  %v3507_v52 = vpop.f32.mrb[69].mxu0 }
 0x75e   : > { %3725 = vrot.lane.b32.xlu1 %v3548_v60, %s4850_s18  ;;  %v3550_v9 = vpop.f32.mrb[70].mxu1  ;;  %v3509_v23 = vpop.f32.mrb[70].mxu0 }
 0x75f   : > { %v3551_v24 = vpop.f32.mrb[71].mxu1  ;;  %v3510_v58 = vpop.f32.mrb[71].mxu0 }
 0x761   : > { %3743 = vrot.lane.b32.xlu0 %v3505_v30, %s4850_s18 }
 0x762   : > { %3745 = vrot.lane.b32.xlu1 %v3507_v52, %s4850_s18  ;;  %s6572_s18 = sld [smem:[#allocation17_spill]] }
 0x764   : > { %v3635_v34 = vpop.f32.mrb[72].mxu1  ;;  %v3594_v36 = vpop.f32.mrb[72].mxu0 }
 0x765   : > { %v3637_v7 = vpop.f32.mrb[73].mxu1  ;;  %v3596_v27 = vpop.f32.mrb[73].mxu0 }
 0x766   : > { %3954 = vrot.lane.b32.xlu0 %v3637_v7, %s4851_s29  ;;  %3952 = vrot.lane.b32.xlu1 %v3635_v34, %s4851_s29  ;;  %v3639_v38 = vpop.f32.mrb[74].mxu1  ;;  %v3598_v33 = vpop.f32.mrb[74].mxu0 }
 0x767   : > { %v3640_v10 = vpop.f32.mrb[75].mxu1  ;;  %v3599_v2 = vpop.f32.mrb[75].mxu0 }
 0x76a   : > { %3948 = vrot.lane.b32.xlu0 %v3594_v36, %s4851_s29 }
 0x76c   : > { %v3717_v31 = vpop.f32.mrb[76].mxu1  ;;  %v3676_v18 = vpop.f32.mrb[76].mxu0 }
 0x76d   : > { %v3719_v21 = vpop.f32.mrb[77].mxu1  ;;  %v3678_v48 = vpop.f32.mrb[77].mxu0 }
 0x76e   : > { %3962 = vrot.lane.b32.xlu1 %v3719_v21, %s4851_s29  ;;  %3950 = vrot.lane.b32.xlu0 %v3596_v27, %s4851_s29  ;;  %v3680_v8 = vpop.f32.mrb[78].mxu0  ;;  %v3721_v40 = vpop.f32.mrb[78].mxu1 }
 0x76f   : > { %v3681_v13 = vpop.f32.mrb[79].mxu0  ;;  %v3722_v1 = vpop.f32.mrb[79].mxu1 }
 0x772   : > { %3956 = vrot.lane.b32.xlu1 %v3676_v18, %s4851_s29  ;;  %3958 = vrot.lane.b32.xlu0 %v3678_v48, %s4851_s29 }
 0x774   : > { %v3851_v45 = vpop.f32.mrb[80].mxu1  ;;  %v3810_v5 = vpop.f32.mrb[80].mxu0 }
 0x775   : > { %v3853_v25 = vpop.f32.mrb[81].mxu1  ;;  %v3812_v49 = vpop.f32.mrb[81].mxu0 }
 0x776   : > { %3960 = vrot.lane.b32.xlu1 %v3717_v31, %s4851_s29  ;;  %4036 = vperm.xlu0 %4672, %v4025_v37   ;;  %v3814_v20 = vpop.f32.mrb[82].mxu0  ;;  %v3855_v44 = vpop.f32.mrb[82].mxu1  ;;  %s6569_s29 = sld [smem:[#allocation9_spill]] }
 0x777   : > { %v3856_v53 = vpop.f32.mrb[83].mxu1  ;;  %v3815_v56 = vpop.f32.mrb[83].mxu0 }
 0x77c   : > { %v3933_v16 = vpop.f32.mrb[84].mxu1  ;;  %v3892_v28 = vpop.f32.mrb[84].mxu0  ;;  %s4541_s21 = sshll.u32 %s6569_s29, 9  ;;  %s4777_s29 = scalar_lea.vmem %s6255_s30, 512 }
 0x77d   : > { %v3935_v3 = vpop.f32.mrb[85].mxu1  ;;  %v3894_v61 = vpop.f32.mrb[85].mxu0  ;;  %s6253_s19 = scalar_lea.hbm %s6572_s18, %s4541_s21  ;;  %p4778_p6 = scmp.ne.s32.totalorder %s6255_s30, %s4777_s29 }
 0x77e   : > { %v3896_v55 = vpop.f32.mrb[86].mxu0  ;;  %v3937_v41 = vpop.f32.mrb[86].mxu1  ;;  %s4783_s21 = scalar_lea.vmem %s4782_s2, 1024 }
 0x77f   : > { %v3897_v6 = vpop.f32.mrb[87].mxu0  ;;  %v3938_v63 = vpop.f32.mrb[87].mxu1  ;;  %p4779_p12 = pnand %p4778_p6, %p6573_p11  ;;  %p4785_p10 = scmp.lt.s32.totalorder %s4783_s21, %s4777_s29 }
 0x781   : > { %p4780_p13 = pneg %p4779_p12  ;;  %p4786_p2 = por %p4785_p10, %p4784_p7 }
 0x783   : > { %p4787_p4 = pnand %p4786_p2, %p4780_p13 }
 0x7c7   : > { %v3740_v46 = vpop.permute.xlu0 %3739 }
 0x7c8   : > { %v3742_v12 = vpop.permute.xlu1 %3741 }
 0x7c9   : > { %v3751_v15 = vsel %vm6555_vm14, %v3740_v46, %v3742_v12 }
 0x7ca   : > { %v3854_v2 = vadd.f32 %v3853_v25, %v3751_v15 }
 0x7cb   : > { %v3736_v47 = vpop.permute.xlu0 %3735 }
 0x7cc   : > { %v3738_v14 = vpop.permute.xlu1 %3737 }
 0x7cd   : > { %v3750_v59 = vsel %vm6551_vm7, %v3738_v14, %v3740_v46  ;;  %v3749_v26 = vsel %vm6553_vm8, %v3736_v47, %v3738_v14  ;;  %vm6567_vm7 = vmmov %vm6566_vm0 }
 0x7ce   : > { %v3852_v29 = vadd.f32 %v3851_v45, %v3750_v59  ;;  %v3813_v60 = vadd.f32 %v3812_v49, %v3749_v26 }
 0x7cf   : > { %v3748_v32 = vpop.permute.xlu0 %3747 }
 0x7d0   : > { %v3726_v11 = vpop.permute.xlu1 %3725 }
 0x7d1   : > { %v3764_v4 = vsel %vm6552_vm1, %v3726_v11, %v3736_v47  ;;  %v3755_v30 = vsel %vm6557_vm4, %v3748_v32, %v3726_v11  ;;  %vm6568_vm1 = vmmov %vm6566_vm0 }
 0x7d2   : > { %v3765_v0 = vsel %vm6556_vm5, %v3764_v4, 0.0  ;;  %v3936_v38 = vadd.f32 %v3935_v3, %v3755_v30 }
 0x7d3   : > { %v3744_v62 = vpop.permute.xlu0 %3743  ;;  %v3811_v27 = vadd.f32 %v3810_v5, %v3765_v0 }
 0x7d4   : > { %v3746_v54 = vpop.permute.xlu1 %3745  ;;  %v3752_v9 = vsel %vm6559_vm2, %v3742_v12, %v3744_v62 }
 0x7d5   : > { %v3754_v52 = vsel %vm6558_vm3, %v3746_v54, %v3748_v32  ;;  %v3753_v23 = vsel %vm6560_vm9, %v3744_v62, %v3746_v54  ;;  %v3893_v18 = vadd.f32 %v3892_v28, %v3752_v9 }
 0x7d6   : > { %v3934_v31 = vadd.f32 %v3933_v16, %v3754_v52  ;;  %v3895_v21 = vadd.f32 %v3894_v61, %v3753_v23 }
 0x7d8   : > { %v3955_v19 = vpop.permute.xlu0 %3954  ;;  %v3953_v50 = vpop.permute.xlu1 %3952 }
 0x7d9   : > { %v3966_v34 = vsel %vm6561_vm13, %v3953_v50, %v3955_v19 }
 0x7da   : > { %v3991_v48 = vadd.f32 %v3966_v34, %v3852_v29 }
 0x7dc   : > { %v3949_v42 = vpop.permute.xlu0 %3948  ;;  %v4006_v44 = vmul.f32 %v4002_v39, %v3991_v48 }
 0x7de   : > { %v4019_v55 = vadd.f32 %v6209_v43, %v4006_v44 }
 0x7e0   : > { %v3963_v22 = vpop.permute.xlu1 %3962  ;;  %v3951_v35 = vpop.permute.xlu0 %3950  ;;  %vm4028_vm8 = vcmp.ge.f32.partialorder %v4019_v55, 0.0 }
 0x7e1   : > { %v3980_v17 = vsel %vm6554_vm6, %v3963_v22, %v3949_v42  ;;  %v3964_v7 = vsel %vm6563_vm12, %v3949_v42, %v3951_v35  ;;  %v3965_v51 = vsel %vm6564_vm11, %v3951_v35, %v3953_v50 }
 0x7e2   : > { %v3988_v36 = vsel %vm6562_vm10, %v3980_v17, 0.0  ;;  %v3989_v40 = vadd.f32 %v3964_v7, %v3811_v27  ;;  %v3990_v13 = vadd.f32 %v3965_v51, %v3813_v60 }
 0x7e3   : > { %v3996_v8 = vadd.f32 %v3988_v36, %v3936_v38 }
 0x7e4   : > { %v3957_v24 = vpop.permute.xlu1 %3956  ;;  %v3959_v58 = vpop.permute.xlu0 %3958  ;;  %v4004_v56 = vmul.f32 %v4002_v39, %v3989_v40  ;;  %v4005_v25 = vmul.f32 %v4002_v39, %v3990_v13 }
 0x7e5   : > { %v3967_v33 = vsel %vm6565_vm15, %v3955_v19, %v3957_v24  ;;  %v3968_v10 = vsel %vm6566_vm0, %v3957_v24, %v3959_v58  ;;  %v4011_v53 = vmul.f32 %v4002_v39, %v3996_v8 }
 0x7e6   : > { %v3992_v1 = vadd.f32 %v3967_v33, %v3854_v2  ;;  %v3993_v37 = vadd.f32 %v3968_v10, %v3893_v18  ;;  %v4017_v6 = vadd.f32 %v6209_v43, %v4004_v56  ;;  %v4018_v63 = vadd.f32 %v6209_v43, %v4005_v25 }
 0x7e7   : > { %v4024_v41 = vadd.f32 %v6209_v43, %v4011_v53 }
 0x7e8   : > { %v3961_v57 = vpop.permute.xlu1 %3960  ;;  %v4007_v16 = vmul.f32 %v4002_v39, %v3992_v1  ;;  %v4008_v28 = vmul.f32 %v4002_v39, %v3993_v37  ;;  %vm4026_vm14 = vcmp.ge.f32.partialorder %v4017_v6, 0.0  ;;  %vm4027_vm5 = vcmp.ge.f32.partialorder %v4018_v63, 0.0 }
 0x7e9   : > { %v3969_v45 = vsel %vm6567_vm7, %v3959_v58, %v3961_v57  ;;  %v3970_v5 = vsel %vm6568_vm1, %v3961_v57, %v3963_v22  ;;  %vm4033_vm6 = vcmp.ge.f32.partialorder %v4024_v41, 0.0 }
 0x7ea   : > { %v3994_v49 = vadd.f32 %v3969_v45, %v3895_v21  ;;  %v3995_v20 = vadd.f32 %v3970_v5, %v3934_v31  ;;  %v4020_v46 = vadd.f32 %v6209_v43, %v4007_v16  ;;  %v4021_v12 = vadd.f32 %v6209_v43, %v4008_v28 }
 0x7ec   : > { %v4009_v3 = vmul.f32 %v4002_v39, %v3994_v49  ;;  %v4010_v61 = vmul.f32 %v4002_v39, %v3995_v20  ;;  %vm4029_vm4 = vcmp.ge.f32.partialorder %v4020_v46, 0.0  ;;  %vm4030_vm3 = vcmp.ge.f32.partialorder %v4021_v12, 0.0 }
 0x7ee   : > { %v4022_v47 = vadd.f32 %v6209_v43, %v4009_v3  ;;  %v4023_v14 = vadd.f32 %v6209_v43, %v4010_v61 }
 0x7f0   : > { %vm4031_vm2 = vcmp.ge.f32.partialorder %v4022_v47, 0.0  ;;  %vm4032_vm9 = vcmp.ge.f32.partialorder %v4023_v14, 0.0 }
 0x7f5   : > { %v4037_v39 = vpop.permute.xlu0 %4036 }
 0x7f6   : > { %v4039_v32 = vmul.f32 %v4037_v39, %v4017_v6  ;;  %v4040_v11 = vmul.f32 %v4037_v39, %v4018_v63  ;;  %v4041_v62 = vmul.f32 %v4037_v39, %v4019_v55  ;;  %v4042_v54 = vmul.f32 %v4037_v39, %v4020_v46 }
 0x7f7   : > { %v4043_v19 = vmul.f32 %v4037_v39, %v4021_v12  ;;  %v4044_v50 = vmul.f32 %v4037_v39, %v4022_v47  ;;  %v4045_v42 = vmul.f32 %v4037_v39, %v4023_v14  ;;  %v4046_v59 = vmul.f32 %v4037_v39, %v4024_v41 }
 0x7f8   : > { %v4047_v43 = vsel %vm4026_vm14, %v4017_v6, %v4039_v32  ;;  %v4048_v4 = vsel %vm4027_vm5, %v4018_v63, %v4040_v11  ;;  %v4049_v22 = vsel %vm4028_vm8, %v4019_v55, %v4041_v62  ;;  %v4050_v35 = vsel %vm4029_vm4, %v4020_v46, %v4042_v54 }
 0x7f9   : > { %v4051_v26 = vsel %vm4030_vm3, %v4021_v12, %v4043_v19  ;;  %v4052_v17 = vsel %vm4031_vm2, %v4022_v47, %v4044_v50  ;;  %v4053_v29 = vsel %vm4032_vm9, %v4023_v14, %v4045_v42  ;;  %v4054_v15 = vsel %vm4033_vm6, %v4024_v41, %v4046_v59 }
 0x7fa   : > { %v4537_v0 = vpack.c.bf16 %v4048_v4, %v4047_v43  ;;  %v4538_v30 = vpack.c.bf16 %v4050_v35, %v4049_v22  ;;  %v4539_v60 = vpack.c.bf16 %v4052_v17, %v4051_v26  ;;  %v4540_v52 = vpack.c.bf16 %v4054_v15, %v4053_v29 }
 0x7fc   : > { %4087 = vst [vmem:[%s564_s28] sm:$0xff] %v4537_v0  ;;  %4088 = vst [vmem:[%s564_s28 + $0x8] sm:$0xff] %v4538_v30 }
 0x7fd   : > { %4089 = vst [vmem:[%s564_s28 + $0x10] sm:$0xff] %v4539_v60  ;;  %4090 = vst [vmem:[%s564_s28 + $0x18] sm:$0xff] %v4540_v52 }
 0x7fe   : > { %4790 = shalt.err (!%p4787_p4)
}
 0x7ff   : > { %s4791_s24 = scalar_lea.hbm %s6253_s19, 512  ;;  %s4795_s23 = scalar_lea.hbm %s6572_s18, 1024 }
 0x800   : > { %p4792_p5 = scmp.ne.s32.totalorder %s6253_s19, %s4791_s24  ;;  %p4796_p0 = scmp.lt.u32.totalorder %s6253_s19, %s6572_s18 }
 0x801   : > { %p4797_p1 = scmp.lt.u32.totalorder %s4795_s23, %s4791_s24  ;;  %p4799_p6 = scmp.lt.u32.totalorder %s4791_s24, %s6253_s19 }
 0x802   : > { %p4793_p8 = pnand %p4792_p5, %p6573_p11 }
 0x803   : > { %p4798_p3 = por %p4797_p1, %p4796_p0 }
 0x804   : > { %p4794_p9 = pneg %p4793_p8 }
 0x805   : > { %p4800_p12 = por %p4799_p6, %p4798_p3 }
 0x807   : > { %p4801_p13 = pnand %p4800_p12, %p4794_p9 }
 0x809   : > { %4804 = shalt.err (!%p4801_p13)
}
 0x80a   : > { %4592 = dma.vmem_to_hbm [thread:$0]  (%p6573_p11), %s6255_s30, 512, %s6253_s19, %s4092_s1  }
 0x80b PF: > { %s6574_s29 = sld [smem:[#allocation8_spill]]  ;;  %p6575_p7 = scmp.ne.s32.totalorder %s6356_s22, 0 }
 0x80c   : > { %p6576_p10 = scmp.ge.s32.totalorder %s4843_s27, 2 }
 0x80e   : > { %p4599_p2 = pnand %p6576_p10, %p6575_p7 }
 0x811   : > { %s4118_s21 = sand.u32 1, %s6574_s29  }
 0x812   : > { %s4119_s28 = scalar_lea.sflag [#allocation4], %s4118_s21 }
 0x813   : > { %4826 = dma.done.wait (!%p4599_p2), %s4119_s28, 512  }
 0x814   : > { %4828 = vsyncadd (!%p4599_p2), %s4119_s28, 4294966784  ;;  %s6577_s27 = sld [smem:[#allocation10_spill]]  ;;  %s6578_s0 = sld [smem:[#allocation11_spill]] }
 0x815   : > { %s6579_s24 = smov %s4835_s25  ;;  %s6580_s25 = smov %s4839_s26 }
 0x81a   : > { %p30_p4 = scmp.ge.s32.totalorder %s6577_s27, 4   ;;  %s6581_s26 = smov %s6578_s0 }
 0x81c   :  { %32 = sbr.rel (!%p30_p4) target bundleno = 11 (0xb), region = 139 }
 0x823   :  { %4124 = vsyncpa [#allocation3], 1 }
 0x824   :  { %4126 = vsyncpa [#allocation3 + $0x1], 1 }
 0x825   :  { %4127 = vsyncpa [#allocation4], 1 }
 0x826   :  { %4129 = vsyncpa [#allocation4 + $0x1], 1 }

</bundles_post_ra>
